<compile_context>
chip_gen: v6e
topology: v6e:2x2x1
jax: 0.10.0
libtpu: 0.0.40
codegen_flags: <defaults>
</compile_context>

<pallas_src>
import numpy as np
import jax
import jax.numpy as jnp
from jax.experimental import pallas as pl
from jax.experimental.pallas import tpu as pltpu

HIDDEN_SIZE = 100   # module-level constant from the PyTorch file (unused self.lstm)
NUM_LAYERS = 2
LANE = 128


def _round_up(n, m):
    return ((n + m - 1) // m) * m


def _pad_gate_cols(w_t, hid, hp):
    """(K, 4*hid) -> (K, 4*hp): each PyTorch gate block [i, f, g, o] zero-padded to hp lanes."""
    blocks = [jnp.pad(w_t[:, g * hid:(g + 1) * hid], ((0, 0), (0, hp - hid)))
              for g in range(4)]
    return jnp.concatenate(blocks, axis=1)


# ----------------------------------------------------------------------------
# Fused kernel: all layers, all time steps, plus the final FC, in one call.
# ----------------------------------------------------------------------------
def _make_fused_rnn_kernel(num_layers, T, hp, o_pad):
    def kernel(*refs):
        idx = 0
        x_ref = refs[idx]; idx += 1                                   # (T*B, D) bf16
        w_ih0_ref, w_hh0_ref, b0_ref, h00_ref, c00_ref = refs[idx:idx + 5]; idx += 5
        deep = []
        for _ in range(num_layers - 1):
            deep.append(refs[idx:idx + 4]); idx += 4                  # (w_cat, bias, h0, c0)
        fc_w_ref = refs[idx]; idx += 1
        fc_b_ref = refs[idx]; idx += 1
        out_ref = refs[idx]

        B = h00_ref.shape[0]
        G0 = 4 * hp[0]

        # ---- hoisted, time-major layer-0 input projection: one matmul for all T ----
        xg0 = (jnp.dot(x_ref[...], w_ih0_ref[...],
                       preferred_element_type=jnp.float32)
               + b0_ref[...]).reshape(T, B, G0)                       # (T, B, 4*Hp0) f32

        # ---- hoist weight / bias / state loads out of the unrolled time loop ----
        w_hh0 = w_hh0_ref[...]                                        # (Hp0, 4*Hp0) bf16
        w_cat = [None] + [deep[i][0][...] for i in range(num_layers - 1)]
        b_bc = [None] + [jnp.broadcast_to(deep[i][1][...], (B, 4 * hp[i + 1]))
                         for i in range(num_layers - 1)]
        h = [h00_ref[...]] + [deep[i][2][...] for i in range(num_layers - 1)]
        c = [c00_ref[...]] + [deep[i][3][...] for i in range(num_layers - 1)]

        def cell(gates, c_prev, H):
            # H is a multiple of 128 -> every slice is a whole-vreg lane-aligned select
            i_g = jax.nn.sigmoid(gates[:, 0 * H:1 * H])
            f_g = jax.nn.sigmoid(gates[:, 1 * H:2 * H])
            g_g = jnp.tanh(gates[:, 2 * H:3 * H])
            o_g = jax.nn.sigmoid(gates[:, 3 * H:4 * H])
            c_new = f_g * c_prev + i_g * g_g
            h_new = o_g * jnp.tanh(c_new)
            return h_new, c_new

        # ---- recurrence: T small & static -> fully unrolled, static indexing ----
        for t in range(T):
            # layer 0: input contribution (and bias) precomputed above
            gates = xg0[t] + jnp.dot(h[0].astype(jnp.bfloat16), w_hh0,
                                     preferred_element_type=jnp.float32)
            h[0], c[0] = cell(gates, c[0], hp[0])
            # deeper layers: one fused [h_below | h_self] @ [W_ih ; W_hh] dot per layer
            for l in range(1, num_layers):
                hcat = jnp.concatenate([h[l - 1], h[l]], axis=1).astype(jnp.bfloat16)
                gates = (jnp.dot(hcat, w_cat[l],
                                 preferred_element_type=jnp.float32)
                         + b_bc[l])
                h[l], c[l] = cell(gates, c[l], hp[l])

        # ---- final FC on last hidden of the top layer (padded to o_pad lanes) ----
        fc = (jnp.dot(h[-1].astype(jnp.bfloat16), fc_w_ref[...],
                      preferred_element_type=jnp.float32)
              + fc_b_ref[...])                                        # (B, o_pad) f32

        # single lane-dense packed store: [fc | h_0..h_{L-1} | c_0..c_{L-1}]
        out_ref[...] = jnp.concatenate([fc] + h + c, axis=1)

    return kernel


# ----------------------------------------------------------------------------
# Model: mirrors the PyTorch RNN module's forward pass.
# ----------------------------------------------------------------------------
class PallasRNN:
    def __init__(self, input_size, arch, output_size, key):
        self.input_size = input_size
        self.hidden_size = HIDDEN_SIZE
        self.num_layers = NUM_LAYERS
        self.arch = list(arch)
        self.output_size = output_size
        self.hp = [_round_up(h, LANE) for h in self.arch]     # lane-padded hidden sizes
        self.o_pad = _round_up(output_size, LANE)

        keys = jax.random.split(key, len(arch) + 1)
        self.raw = []          # unpadded f32 params (for the pure-JAX reference)
        self.k_layer0 = None   # padded / bf16 kernel params
        self.k_deep = []
        for i, hid in enumerate(arch):
            in_dim = input_size if i == 0 else arch[i - 1]
            k = 1.0 / np.sqrt(hid)
            k1, k2, k3, k4 = jax.random.split(keys[i], 4)
            w_ih = jax.random.uniform(k1, (4 * hid, in_dim), jnp.float32, -k, k)
            w_hh = jax.random.uniform(k2, (4 * hid, hid), jnp.float32, -k, k)
            b_ih = jax.random.uniform(k3, (4 * hid,), jnp.float32, -k, k)
            b_hh = jax.random.uniform(k4, (4 * hid,), jnp.float32, -k, k)
            w_ih_t = w_ih.T                                   # (in_dim, 4*hid)
            w_hh_t = w_hh.T                                   # (hid, 4*hid)
            bias = (b_ih + b_hh).reshape(1, 4 * hid)
            self.raw.append(dict(w_ih_t=w_ih_t, w_hh_t=w_hh_t, bias=bias))

            hp = self.hp[i]
            bias_p = _pad_gate_cols(bias, hid, hp)            # (1, 4*hp) f32
            w_hh_p = _pad_gate_cols(
                jnp.pad(w_hh_t, ((0, hp - hid), (0, 0))), hid, hp)      # (hp, 4*hp)
            if i == 0:
                w_ih_p = _pad_gate_cols(w_ih_t, hid, hp)      # (in_dim, 4*hp)
                self.k_layer0 = dict(w_ih=w_ih_p.astype(jnp.bfloat16),
                                     w_hh=w_hh_p.astype(jnp.bfloat16),
                                     bias=bias_p)
            else:
                hp_prev = self.hp[i - 1]
                w_ih_p = _pad_gate_cols(
                    jnp.pad(w_ih_t, ((0, hp_prev - in_dim), (0, 0))), hid, hp)
                w_cat = jnp.concatenate([w_ih_p, w_hh_p], axis=0)       # (hp_prev+hp, 4*hp)
                self.k_deep.append(dict(w_cat=w_cat.astype(jnp.bfloat16),
                                        bias=bias_p))

        kf1, kf2 = jax.random.split(keys[-1], 2)
        kfc = 1.0 / np.sqrt(arch[-1])
        fc_w = jax.random.uniform(kf1, (output_size, arch[-1]), jnp.float32, -kfc, kfc)
        fc_b = jax.random.uniform(kf2, (output_size,), jnp.float32, -kfc, kfc)
        self.raw_fc_w_t = fc_w.T                              # (arch[-1], out)
        self.raw_fc_b = fc_b.reshape(1, output_size)
        self.k_fc_w = jnp.pad(self.raw_fc_w_t,
                              ((0, self.hp[-1] - arch[-1]),
                               (0, self.o_pad - output_size))).astype(jnp.bfloat16)
        self.k_fc_b = jnp.pad(self.raw_fc_b, ((0, 0), (0, self.o_pad - output_size)))

    def __call__(self, x, hidden):
        h0_all, c0_all = hidden                               # per layer: (1, B, hid_l)
        B, T, D = x.shape
        L = len(self.arch)

        # time-major, flattened, bf16 x (one-time XLA layout op, off the critical path)
        x_tm = jnp.transpose(x, (1, 0, 2)).reshape(T * B, D).astype(jnp.bfloat16)

        inputs = [x_tm,
                  self.k_layer0["w_ih"], self.k_layer0["w_hh"], self.k_layer0["bias"],
                  jnp.pad(h0_all[0][0], ((0, 0), (0, self.hp[0] - self.arch[0]))),
                  jnp.pad(c0_all[0][0], ((0, 0), (0, self.hp[0] - self.arch[0])))]
        for l in range(1, L):
            inputs += [self.k_deep[l - 1]["w_cat"], self.k_deep[l - 1]["bias"],
                       jnp.pad(h0_all[l][0], ((0, 0), (0, self.hp[l] - self.arch[l]))),
                       jnp.pad(c0_all[l][0], ((0, 0), (0, self.hp[l] - self.arch[l])))]
        inputs += [self.k_fc_w, self.k_fc_b]

        packed_width = self.o_pad + 2 * sum(self.hp)          # lane-dense multiple of 128
        vmem = pltpu.MemorySpace.VMEM
        packed = pl.pallas_call(
            _make_fused_rnn_kernel(L, T, tuple(self.hp), self.o_pad),
            out_shape=jax.ShapeDtypeStruct((B, packed_width), jnp.float32),
            in_specs=[pl.BlockSpec(memory_space=vmem) for _ in inputs],
            out_specs=pl.BlockSpec(memory_space=vmem),
            compiler_params=pltpu.CompilerParams(vmem_limit_bytes=32 * 1024 * 1024),
        )(*inputs)

        # split the packed lane-dense slab back into fc / hn / cn
        fc_out = packed[:, :self.output_size]
        hn, cn = [], []
        off = self.o_pad
        for l in range(L):
            hn.append(packed[:, off:off + self.arch[l]][None])
            off += self.hp[l]
        for l in range(L):
            cn.append(packed[:, off:off + self.arch[l]][None])
            off += self.hp[l]
        return fc_out, (hn, cn)

    # pure-JAX reference (dot_dtype=bf16 mirrors the kernel's MXU precision policy)
    def reference(self, x, hidden, dot_dtype=jnp.float32):
        h0, c0 = hidden
        out = x
        for i, p in enumerate(self.raw):
            hid = self.arch[i]
            w_ih_t = p["w_ih_t"].astype(dot_dtype)
            w_hh_t = p["w_hh_t"].astype(dot_dtype)
            bias = p["bias"]

            def step(carry, x_t, w_ih_t=w_ih_t, w_hh_t=w_hh_t, bias=bias, hid=hid):
                hh, cc = carry
                gates = (jnp.dot(x_t.astype(dot_dtype), w_ih_t,
                                 preferred_element_type=jnp.float32)
                         + jnp.dot(hh.astype(dot_dtype), w_hh_t,
                                   preferred_element_type=jnp.float32)
                         + bias)
                i_g = jax.nn.sigmoid(gates[:, 0 * hid:1 * hid])
                f_g = jax.nn.sigmoid(gates[:, 1 * hid:2 * hid])
                g_g = jnp.tanh(gates[:, 2 * hid:3 * hid])
                o_g = jax.nn.sigmoid(gates[:, 3 * hid:4 * hid])
                c_new = f_g * cc + i_g * g_g
                h_new = o_g * jnp.tanh(c_new)
                return (h_new, c_new), h_new

            (_, _), ys = jax.lax.scan(step, (h0[i][0], c0[i][0]),
                                      jnp.transpose(out, (1, 0, 2)))
            out = jnp.transpose(ys, (1, 0, 2))
        last = out[:, -1, :]
        return (jnp.dot(last.astype(dot_dtype), self.raw_fc_w_t.astype(dot_dtype),
                        preferred_element_type=jnp.float32) + self.raw_fc_b)


if __name__ == "__main__":
    key = jax.random.PRNGKey(0)
    kp, kx, kh, kc = jax.random.split(key, 4)

    B, T, input_size = 2, 8, 16
    arch = [32, 32]
    output_size = 10
    L = len(arch)

    model = PallasRNN(input_size, arch, output_size, kp)

    x = jax.random.normal(kx, (B, T, input_size), jnp.float32)
    hkeys = jax.random.split(kh, L)
    ckeys = jax.random.split(kc, L)
    h0 = [jax.random.normal(hkeys[i], (1, B, arch[i]), jnp.float32) for i in range(L)]
    c0 = [jax.random.normal(ckeys[i], (1, B, arch[i]), jnp.float32) for i in range(L)]

    out, (hn, cn) = model(x, (h0, c0))
    out = jax.block_until_ready(out)
    assert out.shape == (B, output_size)

    # like-for-like check: reference with the same bf16-operand / f32-accum policy
    ref_mixed = model.reference(x, (h0, c0), dot_dtype=jnp.bfloat16)
    assert jnp.allclose(out, ref_mixed, atol=5e-3, rtol=5e-3), \
        "mismatch vs mixed-precision JAX reference"
    # coarse semantic check against the full-f32 reference (bf16 MXU operands drift)
    ref_f32 = model.reference(x, (h0, c0), dot_dtype=jnp.float32)
    assert jnp.allclose(out, ref_f32, atol=1e-1, rtol=1e-1), \
        "mismatch vs f32 JAX reference"

    assert all(hi.shape == (1, B, arch[i]) for i, hi in enumerate(hn))
    assert all(ci.shape == (1, B, arch[i]) for i, ci in enumerate(cn))

    print("KERNEL_OK")
</pallas_src>

<mosaic_0001>
module attributes {stable_mosaic.version = 11 : i64} {
  func.func @kernel(%arg0: memref<16x16xbf16, #tpu.memory_space<vmem>>, %arg1: memref<16x512xbf16, #tpu.memory_space<vmem>>, %arg2: memref<128x512xbf16, #tpu.memory_space<vmem>>, %arg3: memref<1x512xf32, #tpu.memory_space<vmem>>, %arg4: memref<2x128xf32, #tpu.memory_space<vmem>>, %arg5: memref<2x128xf32, #tpu.memory_space<vmem>>, %arg6: memref<256x512xbf16, #tpu.memory_space<vmem>>, %arg7: memref<1x512xf32, #tpu.memory_space<vmem>>, %arg8: memref<2x128xf32, #tpu.memory_space<vmem>>, %arg9: memref<2x128xf32, #tpu.memory_space<vmem>>, %arg10: memref<128x128xbf16, #tpu.memory_space<vmem>>, %arg11: memref<1x128xf32, #tpu.memory_space<vmem>>, %arg12: memref<2x640xf32, #tpu.memory_space<vmem>>) attributes {dimension_semantics = [], scalar_prefetch = 0 : i64, scratch_operands = 0 : i64, tpu.core_type = #tpu.core_type<tc>} {
    %c0 = arith.constant 0 : index
    %c0_0 = arith.constant 0 : index
    %0 = vector.load %arg0[%c0, %c0_0] : memref<16x16xbf16, #tpu.memory_space<vmem>>, vector<16x16xbf16>
    %c0_1 = arith.constant 0 : index
    %c0_2 = arith.constant 0 : index
    %1 = vector.load %arg1[%c0_1, %c0_2] : memref<16x512xbf16, #tpu.memory_space<vmem>>, vector<16x512xbf16>
    %cst = arith.constant dense<0.000000e+00> : vector<16x512xf32>
    %2 = tpu.matmul %0, %1, %cst {dimension_numbers = #tpu.dot_dimension_numbers<[1], [0], [0], [1], [0, 0, 1, 1], [], []>} : vector<16x16xbf16>, vector<16x512xbf16>, vector<16x512xf32> -> vector<16x512xf32>
    %c0_3 = arith.constant 0 : index
    %c0_4 = arith.constant 0 : index
    %3 = vector.load %arg3[%c0_3, %c0_4] : memref<1x512xf32, #tpu.memory_space<vmem>>, vector<1x512xf32>
    %4 = vector.broadcast %3 : vector<1x512xf32> to vector<16x512xf32>
    %5 = arith.addf %2, %4 : vector<16x512xf32>
    %6 = vector.shape_cast %5 : vector<16x512xf32> to vector<8x2x512xf32>
    %c0_5 = arith.constant 0 : index
    %c0_6 = arith.constant 0 : index
    %7 = vector.load %arg2[%c0_5, %c0_6] : memref<128x512xbf16, #tpu.memory_space<vmem>>, vector<128x512xbf16>
    %c0_7 = arith.constant 0 : index
    %c0_8 = arith.constant 0 : index
    %8 = vector.load %arg6[%c0_7, %c0_8] : memref<256x512xbf16, #tpu.memory_space<vmem>>, vector<256x512xbf16>
    %c0_9 = arith.constant 0 : index
    %c0_10 = arith.constant 0 : index
    %9 = vector.load %arg7[%c0_9, %c0_10] : memref<1x512xf32, #tpu.memory_space<vmem>>, vector<1x512xf32>
    %10 = vector.shape_cast %9 : vector<1x512xf32> to vector<1x512xf32>
    %11 = vector.broadcast %10 : vector<1x512xf32> to vector<2x512xf32>
    %c0_11 = arith.constant 0 : index
    %c0_12 = arith.constant 0 : index
    %12 = vector.load %arg4[%c0_11, %c0_12] : memref<2x128xf32, #tpu.memory_space<vmem>>, vector<2x128xf32>
    %c0_13 = arith.constant 0 : index
    %c0_14 = arith.constant 0 : index
    %13 = vector.load %arg8[%c0_13, %c0_14] : memref<2x128xf32, #tpu.memory_space<vmem>>, vector<2x128xf32>
    %c0_15 = arith.constant 0 : index
    %c0_16 = arith.constant 0 : index
    %14 = vector.load %arg5[%c0_15, %c0_16] : memref<2x128xf32, #tpu.memory_space<vmem>>, vector<2x128xf32>
    %c0_17 = arith.constant 0 : index
    %c0_18 = arith.constant 0 : index
    %15 = vector.load %arg9[%c0_17, %c0_18] : memref<2x128xf32, #tpu.memory_space<vmem>>, vector<2x128xf32>
    %16 = vector.extract_strided_slice %6 {offsets = [0, 0, 0], sizes = [1, 2, 512], strides = [1, 1, 1]} : vector<8x2x512xf32> to vector<1x2x512xf32>
    %17 = vector.shape_cast %16 : vector<1x2x512xf32> to vector<2x512xf32>
    %18 = arith.truncf %12 : vector<2x128xf32> to vector<2x128xbf16>
    %cst_19 = arith.constant dense<0.000000e+00> : vector<2x512xf32>
    %19 = tpu.matmul %18, %7, %cst_19 {dimension_numbers = #tpu.dot_dimension_numbers<[1], [0], [0], [1], [0, 0, 1, 1], [], []>} : vector<2x128xbf16>, vector<128x512xbf16>, vector<2x512xf32> -> vector<2x512xf32>
    %20 = arith.addf %17, %19 : vector<2x512xf32>
    %21 = vector.extract_strided_slice %20 {offsets = [0, 0], sizes = [2, 128], strides = [1, 1]} : vector<2x512xf32> to vector<2x128xf32>
    %22 = arith.negf %21 : vector<2x128xf32>
    %23 = math.exp %22 : vector<2x128xf32>
    %cst_20 = arith.constant 1.000000e+00 : f32
    %24 = vector.broadcast %cst_20 : f32 to vector<2x128xf32>
    %25 = arith.addf %24, %23 : vector<2x128xf32>
    %26 = arith.divf %24, %25 : vector<2x128xf32>
    %27 = vector.extract_strided_slice %20 {offsets = [0, 128], sizes = [2, 128], strides = [1, 1]} : vector<2x512xf32> to vector<2x128xf32>
    %28 = arith.negf %27 : vector<2x128xf32>
    %29 = math.exp %28 : vector<2x128xf32>
    %cst_21 = arith.constant 1.000000e+00 : f32
    %30 = vector.broadcast %cst_21 : f32 to vector<2x128xf32>
    %31 = arith.addf %30, %29 : vector<2x128xf32>
    %32 = arith.divf %30, %31 : vector<2x128xf32>
    %33 = vector.extract_strided_slice %20 {offsets = [0, 256], sizes = [2, 128], strides = [1, 1]} : vector<2x512xf32> to vector<2x128xf32>
    %34 = math.tanh %33 : vector<2x128xf32>
    %35 = vector.extract_strided_slice %20 {offsets = [0, 384], sizes = [2, 128], strides = [1, 1]} : vector<2x512xf32> to vector<2x128xf32>
    %36 = arith.negf %35 : vector<2x128xf32>
    %37 = math.exp %36 : vector<2x128xf32>
    %cst_22 = arith.constant 1.000000e+00 : f32
    %38 = vector.broadcast %cst_22 : f32 to vector<2x128xf32>
    %39 = arith.addf %38, %37 : vector<2x128xf32>
    %40 = arith.divf %38, %39 : vector<2x128xf32>
    %41 = arith.mulf %32, %14 : vector<2x128xf32>
    %42 = arith.mulf %26, %34 : vector<2x128xf32>
    %43 = arith.addf %41, %42 : vector<2x128xf32>
    %44 = math.tanh %43 : vector<2x128xf32>
    %45 = arith.mulf %40, %44 : vector<2x128xf32>
    %46 = tpu.concatenate %45, %13 in 1 : vector<2x128xf32>, vector<2x128xf32> -> vector<2x256xf32>
    %47 = arith.truncf %46 : vector<2x256xf32> to vector<2x256xbf16>
    %cst_23 = arith.constant dense<0.000000e+00> : vector<2x512xf32>
    %48 = tpu.matmul %47, %8, %cst_23 {dimension_numbers = #tpu.dot_dimension_numbers<[1], [0], [0], [1], [0, 0, 1, 1], [], []>} : vector<2x256xbf16>, vector<256x512xbf16>, vector<2x512xf32> -> vector<2x512xf32>
    %49 = arith.addf %48, %11 : vector<2x512xf32>
    %50 = vector.extract_strided_slice %49 {offsets = [0, 0], sizes = [2, 128], strides = [1, 1]} : vector<2x512xf32> to vector<2x128xf32>
    %51 = arith.negf %50 : vector<2x128xf32>
    %52 = math.exp %51 : vector<2x128xf32>
    %cst_24 = arith.constant 1.000000e+00 : f32
    %53 = vector.broadcast %cst_24 : f32 to vector<2x128xf32>
    %54 = arith.addf %53, %52 : vector<2x128xf32>
    %55 = arith.divf %53, %54 : vector<2x128xf32>
    %56 = vector.extract_strided_slice %49 {offsets = [0, 128], sizes = [2, 128], strides = [1, 1]} : vector<2x512xf32> to vector<2x128xf32>
    %57 = arith.negf %56 : vector<2x128xf32>
    %58 = math.exp %57 : vector<2x128xf32>
    %cst_25 = arith.constant 1.000000e+00 : f32
    %59 = vector.broadcast %cst_25 : f32 to vector<2x128xf32>
    %60 = arith.addf %59, %58 : vector<2x128xf32>
    %61 = arith.divf %59, %60 : vector<2x128xf32>
    %62 = vector.extract_strided_slice %49 {offsets = [0, 256], sizes = [2, 128], strides = [1, 1]} : vector<2x512xf32> to vector<2x128xf32>
    %63 = math.tanh %62 : vector<2x128xf32>
    %64 = vector.extract_strided_slice %49 {offsets = [0, 384], sizes = [2, 128], strides = [1, 1]} : vector<2x512xf32> to vector<2x128xf32>
    %65 = arith.negf %64 : vector<2x128xf32>
    %66 = math.exp %65 : vector<2x128xf32>
    %cst_26 = arith.constant 1.000000e+00 : f32
    %67 = vector.broadcast %cst_26 : f32 to vector<2x128xf32>
    %68 = arith.addf %67, %66 : vector<2x128xf32>
    %69 = arith.divf %67, %68 : vector<2x128xf32>
    %70 = arith.mulf %61, %15 : vector<2x128xf32>
    %71 = arith.mulf %55, %63 : vector<2x128xf32>
    %72 = arith.addf %70, %71 : vector<2x128xf32>
    %73 = math.tanh %72 : vector<2x128xf32>
    %74 = arith.mulf %69, %73 : vector<2x128xf32>
    %75 = vector.extract_strided_slice %6 {offsets = [1, 0, 0], sizes = [1, 2, 512], strides = [1, 1, 1]} : vector<8x2x512xf32> to vector<1x2x512xf32>
    %76 = vector.shape_cast %75 : vector<1x2x512xf32> to vector<2x512xf32>
    %77 = arith.truncf %45 : vector<2x128xf32> to vector<2x128xbf16>
    %cst_27 = arith.constant dense<0.000000e+00> : vector<2x512xf32>
    %78 = tpu.matmul %77, %7, %cst_27 {dimension_numbers = #tpu.dot_dimension_numbers<[1], [0], [0], [1], [0, 0, 1, 1], [], []>} : vector<2x128xbf16>, vector<128x512xbf16>, vector<2x512xf32> -> vector<2x512xf32>
    %79 = arith.addf %76, %78 : vector<2x512xf32>
    %80 = vector.extract_strided_slice %79 {offsets = [0, 0], sizes = [2, 128], strides = [1, 1]} : vector<2x512xf32> to vector<2x128xf32>
    %81 = arith.negf %80 : vector<2x128xf32>
    %82 = math.exp %81 : vector<2x128xf32>
    %cst_28 = arith.constant 1.000000e+00 : f32
    %83 = vector.broadcast %cst_28 : f32 to vector<2x128xf32>
    %84 = arith.addf %83, %82 : vector<2x128xf32>
    %85 = arith.divf %83, %84 : vector<2x128xf32>
    %86 = vector.extract_strided_slice %79 {offsets = [0, 128], sizes = [2, 128], strides = [1, 1]} : vector<2x512xf32> to vector<2x128xf32>
    %87 = arith.negf %86 : vector<2x128xf32>
    %88 = math.exp %87 : vector<2x128xf32>
    %cst_29 = arith.constant 1.000000e+00 : f32
    %89 = vector.broadcast %cst_29 : f32 to vector<2x128xf32>
    %90 = arith.addf %89, %88 : vector<2x128xf32>
    %91 = arith.divf %89, %90 : vector<2x128xf32>
    %92 = vector.extract_strided_slice %79 {offsets = [0, 256], sizes = [2, 128], strides = [1, 1]} : vector<2x512xf32> to vector<2x128xf32>
    %93 = math.tanh %92 : vector<2x128xf32>
    %94 = vector.extract_strided_slice %79 {offsets = [0, 384], sizes = [2, 128], strides = [1, 1]} : vector<2x512xf32> to vector<2x128xf32>
    %95 = arith.negf %94 : vector<2x128xf32>
    %96 = math.exp %95 : vector<2x128xf32>
    %cst_30 = arith.constant 1.000000e+00 : f32
    %97 = vector.broadcast %cst_30 : f32 to vector<2x128xf32>
    %98 = arith.addf %97, %96 : vector<2x128xf32>
    %99 = arith.divf %97, %98 : vector<2x128xf32>
    %100 = arith.mulf %91, %43 : vector<2x128xf32>
    %101 = arith.mulf %85, %93 : vector<2x128xf32>
    %102 = arith.addf %100, %101 : vector<2x128xf32>
    %103 = math.tanh %102 : vector<2x128xf32>
    %104 = arith.mulf %99, %103 : vector<2x128xf32>
    %105 = tpu.concatenate %104, %74 in 1 : vector<2x128xf32>, vector<2x128xf32> -> vector<2x256xf32>
    %106 = arith.truncf %105 : vector<2x256xf32> to vector<2x256xbf16>
    %cst_31 = arith.constant dense<0.000000e+00> : vector<2x512xf32>
    %107 = tpu.matmul %106, %8, %cst_31 {dimension_numbers = #tpu.dot_dimension_numbers<[1], [0], [0], [1], [0, 0, 1, 1], [], []>} : vector<2x256xbf16>, vector<256x512xbf16>, vector<2x512xf32> -> vector<2x512xf32>
    %108 = arith.addf %107, %11 : vector<2x512xf32>
    %109 = vector.extract_strided_slice %108 {offsets = [0, 0], sizes = [2, 128], strides = [1, 1]} : vector<2x512xf32> to vector<2x128xf32>
    %110 = arith.negf %109 : vector<2x128xf32>
    %111 = math.exp %110 : vector<2x128xf32>
    %cst_32 = arith.constant 1.000000e+00 : f32
    %112 = vector.broadcast %cst_32 : f32 to vector<2x128xf32>
    %113 = arith.addf %112, %111 : vector<2x128xf32>
    %114 = arith.divf %112, %113 : vector<2x128xf32>
    %115 = vector.extract_strided_slice %108 {offsets = [0, 128], sizes = [2, 128], strides = [1, 1]} : vector<2x512xf32> to vector<2x128xf32>
    %116 = arith.negf %115 : vector<2x128xf32>
    %117 = math.exp %116 : vector<2x128xf32>
    %cst_33 = arith.constant 1.000000e+00 : f32
    %118 = vector.broadcast %cst_33 : f32 to vector<2x128xf32>
    %119 = arith.addf %118, %117 : vector<2x128xf32>
    %120 = arith.divf %118, %119 : vector<2x128xf32>
    %121 = vector.extract_strided_slice %108 {offsets = [0, 256], sizes = [2, 128], strides = [1, 1]} : vector<2x512xf32> to vector<2x128xf32>
    %122 = math.tanh %121 : vector<2x128xf32>
    %123 = vector.extract_strided_slice %108 {offsets = [0, 384], sizes = [2, 128], strides = [1, 1]} : vector<2x512xf32> to vector<2x128xf32>
    %124 = arith.negf %123 : vector<2x128xf32>
    %125 = math.exp %124 : vector<2x128xf32>
    %cst_34 = arith.constant 1.000000e+00 : f32
    %126 = vector.broadcast %cst_34 : f32 to vector<2x128xf32>
    %127 = arith.addf %126, %125 : vector<2x128xf32>
    %128 = arith.divf %126, %127 : vector<2x128xf32>
    %129 = arith.mulf %120, %72 : vector<2x128xf32>
    %130 = arith.mulf %114, %122 : vector<2x128xf32>
    %131 = arith.addf %129, %130 : vector<2x128xf32>
    %132 = math.tanh %131 : vector<2x128xf32>
    %133 = arith.mulf %128, %132 : vector<2x128xf32>
    %134 = vector.extract_strided_slice %6 {offsets = [2, 0, 0], sizes = [1, 2, 512], strides = [1, 1, 1]} : vector<8x2x512xf32> to vector<1x2x512xf32>
    %135 = vector.shape_cast %134 : vector<1x2x512xf32> to vector<2x512xf32>
    %136 = arith.truncf %104 : vector<2x128xf32> to vector<2x128xbf16>
    %cst_35 = arith.constant dense<0.000000e+00> : vector<2x512xf32>
    %137 = tpu.matmul %136, %7, %cst_35 {dimension_numbers = #tpu.dot_dimension_numbers<[1], [0], [0], [1], [0, 0, 1, 1], [], []>} : vector<2x128xbf16>, vector<128x512xbf16>, vector<2x512xf32> -> vector<2x512xf32>
    %138 = arith.addf %135, %137 : vector<2x512xf32>
    %139 = vector.extract_strided_slice %138 {offsets = [0, 0], sizes = [2, 128], strides = [1, 1]} : vector<2x512xf32> to vector<2x128xf32>
    %140 = arith.negf %139 : vector<2x128xf32>
    %141 = math.exp %140 : vector<2x128xf32>
    %cst_36 = arith.constant 1.000000e+00 : f32
    %142 = vector.broadcast %cst_36 : f32 to vector<2x128xf32>
    %143 = arith.addf %142, %141 : vector<2x128xf32>
    %144 = arith.divf %142, %143 : vector<2x128xf32>
    %145 = vector.extract_strided_slice %138 {offsets = [0, 128], sizes = [2, 128], strides = [1, 1]} : vector<2x512xf32> to vector<2x128xf32>
    %146 = arith.negf %145 : vector<2x128xf32>
    %147 = math.exp %146 : vector<2x128xf32>
    %cst_37 = arith.constant 1.000000e+00 : f32
    %148 = vector.broadcast %cst_37 : f32 to vector<2x128xf32>
    %149 = arith.addf %148, %147 : vector<2x128xf32>
    %150 = arith.divf %148, %149 : vector<2x128xf32>
    %151 = vector.extract_strided_slice %138 {offsets = [0, 256], sizes = [2, 128], strides = [1, 1]} : vector<2x512xf32> to vector<2x128xf32>
    %152 = math.tanh %151 : vector<2x128xf32>
    %153 = vector.extract_strided_slice %138 {offsets = [0, 384], sizes = [2, 128], strides = [1, 1]} : vector<2x512xf32> to vector<2x128xf32>
    %154 = arith.negf %153 : vector<2x128xf32>
    %155 = math.exp %154 : vector<2x128xf32>
    %cst_38 = arith.constant 1.000000e+00 : f32
    %156 = vector.broadcast %cst_38 : f32 to vector<2x128xf32>
    %157 = arith.addf %156, %155 : vector<2x128xf32>
    %158 = arith.divf %156, %157 : vector<2x128xf32>
    %159 = arith.mulf %150, %102 : vector<2x128xf32>
    %160 = arith.mulf %144, %152 : vector<2x128xf32>
    %161 = arith.addf %159, %160 : vector<2x128xf32>
    %162 = math.tanh %161 : vector<2x128xf32>
    %163 = arith.mulf %158, %162 : vector<2x128xf32>
    %164 = tpu.concatenate %163, %133 in 1 : vector<2x128xf32>, vector<2x128xf32> -> vector<2x256xf32>
    %165 = arith.truncf %164 : vector<2x256xf32> to vector<2x256xbf16>
    %cst_39 = arith.constant dense<0.000000e+00> : vector<2x512xf32>
    %166 = tpu.matmul %165, %8, %cst_39 {dimension_numbers = #tpu.dot_dimension_numbers<[1], [0], [0], [1], [0, 0, 1, 1], [], []>} : vector<2x256xbf16>, vector<256x512xbf16>, vector<2x512xf32> -> vector<2x512xf32>
    %167 = arith.addf %166, %11 : vector<2x512xf32>
    %168 = vector.extract_strided_slice %167 {offsets = [0, 0], sizes = [2, 128], strides = [1, 1]} : vector<2x512xf32> to vector<2x128xf32>
    %169 = arith.negf %168 : vector<2x128xf32>
    %170 = math.exp %169 : vector<2x128xf32>
    %cst_40 = arith.constant 1.000000e+00 : f32
    %171 = vector.broadcast %cst_40 : f32 to vector<2x128xf32>
    %172 = arith.addf %171, %170 : vector<2x128xf32>
    %173 = arith.divf %171, %172 : vector<2x128xf32>
    %174 = vector.extract_strided_slice %167 {offsets = [0, 128], sizes = [2, 128], strides = [1, 1]} : vector<2x512xf32> to vector<2x128xf32>
    %175 = arith.negf %174 : vector<2x128xf32>
    %176 = math.exp %175 : vector<2x128xf32>
    %cst_41 = arith.constant 1.000000e+00 : f32
    %177 = vector.broadcast %cst_41 : f32 to vector<2x128xf32>
    %178 = arith.addf %177, %176 : vector<2x128xf32>
    %179 = arith.divf %177, %178 : vector<2x128xf32>
    %180 = vector.extract_strided_slice %167 {offsets = [0, 256], sizes = [2, 128], strides = [1, 1]} : vector<2x512xf32> to vector<2x128xf32>
    %181 = math.tanh %180 : vector<2x128xf32>
    %182 = vector.extract_strided_slice %167 {offsets = [0, 384], sizes = [2, 128], strides = [1, 1]} : vector<2x512xf32> to vector<2x128xf32>
    %183 = arith.negf %182 : vector<2x128xf32>
    %184 = math.exp %183 : vector<2x128xf32>
    %cst_42 = arith.constant 1.000000e+00 : f32
    %185 = vector.broadcast %cst_42 : f32 to vector<2x128xf32>
    %186 = arith.addf %185, %184 : vector<2x128xf32>
    %187 = arith.divf %185, %186 : vector<2x128xf32>
    %188 = arith.mulf %179, %131 : vector<2x128xf32>
    %189 = arith.mulf %173, %181 : vector<2x128xf32>
    %190 = arith.addf %188, %189 : vector<2x128xf32>
    %191 = math.tanh %190 : vector<2x128xf32>
    %192 = arith.mulf %187, %191 : vector<2x128xf32>
    %193 = vector.extract_strided_slice %6 {offsets = [3, 0, 0], sizes = [1, 2, 512], strides = [1, 1, 1]} : vector<8x2x512xf32> to vector<1x2x512xf32>
    %194 = vector.shape_cast %193 : vector<1x2x512xf32> to vector<2x512xf32>
    %195 = arith.truncf %163 : vector<2x128xf32> to vector<2x128xbf16>
    %cst_43 = arith.constant dense<0.000000e+00> : vector<2x512xf32>
    %196 = tpu.matmul %195, %7, %cst_43 {dimension_numbers = #tpu.dot_dimension_numbers<[1], [0], [0], [1], [0, 0, 1, 1], [], []>} : vector<2x128xbf16>, vector<128x512xbf16>, vector<2x512xf32> -> vector<2x512xf32>
    %197 = arith.addf %194, %196 : vector<2x512xf32>
    %198 = vector.extract_strided_slice %197 {offsets = [0, 0], sizes = [2, 128], strides = [1, 1]} : vector<2x512xf32> to vector<2x128xf32>
    %199 = arith.negf %198 : vector<2x128xf32>
    %200 = math.exp %199 : vector<2x128xf32>
    %cst_44 = arith.constant 1.000000e+00 : f32
    %201 = vector.broadcast %cst_44 : f32 to vector<2x128xf32>
    %202 = arith.addf %201, %200 : vector<2x128xf32>
    %203 = arith.divf %201, %202 : vector<2x128xf32>
    %204 = vector.extract_strided_slice %197 {offsets = [0, 128], sizes = [2, 128], strides = [1, 1]} : vector<2x512xf32> to vector<2x128xf32>
    %205 = arith.negf %204 : vector<2x128xf32>
    %206 = math.exp %205 : vector<2x128xf32>
    %cst_45 = arith.constant 1.000000e+00 : f32
    %207 = vector.broadcast %cst_45 : f32 to vector<2x128xf32>
    %208 = arith.addf %207, %206 : vector<2x128xf32>
    %209 = arith.divf %207, %208 : vector<2x128xf32>
    %210 = vector.extract_strided_slice %197 {offsets = [0, 256], sizes = [2, 128], strides = [1, 1]} : vector<2x512xf32> to vector<2x128xf32>
    %211 = math.tanh %210 : vector<2x128xf32>
    %212 = vector.extract_strided_slice %197 {offsets = [0, 384], sizes = [2, 128], strides = [1, 1]} : vector<2x512xf32> to vector<2x128xf32>
    %213 = arith.negf %212 : vector<2x128xf32>
    %214 = math.exp %213 : vector<2x128xf32>
    %cst_46 = arith.constant 1.000000e+00 : f32
    %215 = vector.broadcast %cst_46 : f32 to vector<2x128xf32>
    %216 = arith.addf %215, %214 : vector<2x128xf32>
    %217 = arith.divf %215, %216 : vector<2x128xf32>
    %218 = arith.mulf %209, %161 : vector<2x128xf32>
    %219 = arith.mulf %203, %211 : vector<2x128xf32>
    %220 = arith.addf %218, %219 : vector<2x128xf32>
    %221 = math.tanh %220 : vector<2x128xf32>
    %222 = arith.mulf %217, %221 : vector<2x128xf32>
    %223 = tpu.concatenate %222, %192 in 1 : vector<2x128xf32>, vector<2x128xf32> -> vector<2x256xf32>
    %224 = arith.truncf %223 : vector<2x256xf32> to vector<2x256xbf16>
    %cst_47 = arith.constant dense<0.000000e+00> : vector<2x512xf32>
    %225 = tpu.matmul %224, %8, %cst_47 {dimension_numbers = #tpu.dot_dimension_numbers<[1], [0], [0], [1], [0, 0, 1, 1], [], []>} : vector<2x256xbf16>, vector<256x512xbf16>, vector<2x512xf32> -> vector<2x512xf32>
    %226 = arith.addf %225, %11 : vector<2x512xf32>
    %227 = vector.extract_strided_slice %226 {offsets = [0, 0], sizes = [2, 128], strides = [1, 1]} : vector<2x512xf32> to vector<2x128xf32>
    %228 = arith.negf %227 : vector<2x128xf32>
    %229 = math.exp %228 : vector<2x128xf32>
    %cst_48 = arith.constant 1.000000e+00 : f32
    %230 = vector.broadcast %cst_48 : f32 to vector<2x128xf32>
    %231 = arith.addf %230, %229 : vector<2x128xf32>
    %232 = arith.divf %230, %231 : vector<2x128xf32>
    %233 = vector.extract_strided_slice %226 {offsets = [0, 128], sizes = [2, 128], strides = [1, 1]} : vector<2x512xf32> to vector<2x128xf32>
    %234 = arith.negf %233 : vector<2x128xf32>
    %235 = math.exp %234 : vector<2x128xf32>
    %cst_49 = arith.constant 1.000000e+00 : f32
    %236 = vector.broadcast %cst_49 : f32 to vector<2x128xf32>
    %237 = arith.addf %236, %235 : vector<2x128xf32>
    %238 = arith.divf %236, %237 : vector<2x128xf32>
    %239 = vector.extract_strided_slice %226 {offsets = [0, 256], sizes = [2, 128], strides = [1, 1]} : vector<2x512xf32> to vector<2x128xf32>
    %240 = math.tanh %239 : vector<2x128xf32>
    %241 = vector.extract_strided_slice %226 {offsets = [0, 384], sizes = [2, 128], strides = [1, 1]} : vector<2x512xf32> to vector<2x128xf32>
    %242 = arith.negf %241 : vector<2x128xf32>
    %243 = math.exp %242 : vector<2x128xf32>
    %cst_50 = arith.constant 1.000000e+00 : f32
    %244 = vector.broadcast %cst_50 : f32 to vector<2x128xf32>
    %245 = arith.addf %244, %243 : vector<2x128xf32>
    %246 = arith.divf %244, %245 : vector<2x128xf32>
    %247 = arith.mulf %238, %190 : vector<2x128xf32>
    %248 = arith.mulf %232, %240 : vector<2x128xf32>
    %249 = arith.addf %247, %248 : vector<2x128xf32>
    %250 = math.tanh %249 : vector<2x128xf32>
    %251 = arith.mulf %246, %250 : vector<2x128xf32>
    %252 = vector.extract_strided_slice %6 {offsets = [4, 0, 0], sizes = [1, 2, 512], strides = [1, 1, 1]} : vector<8x2x512xf32> to vector<1x2x512xf32>
    %253 = vector.shape_cast %252 : vector<1x2x512xf32> to vector<2x512xf32>
    %254 = arith.truncf %222 : vector<2x128xf32> to vector<2x128xbf16>
    %cst_51 = arith.constant dense<0.000000e+00> : vector<2x512xf32>
    %255 = tpu.matmul %254, %7, %cst_51 {dimension_numbers = #tpu.dot_dimension_numbers<[1], [0], [0], [1], [0, 0, 1, 1], [], []>} : vector<2x128xbf16>, vector<128x512xbf16>, vector<2x512xf32> -> vector<2x512xf32>
    %256 = arith.addf %253, %255 : vector<2x512xf32>
    %257 = vector.extract_strided_slice %256 {offsets = [0, 0], sizes = [2, 128], strides = [1, 1]} : vector<2x512xf32> to vector<2x128xf32>
    %258 = arith.negf %257 : vector<2x128xf32>
    %259 = math.exp %258 : vector<2x128xf32>
    %cst_52 = arith.constant 1.000000e+00 : f32
    %260 = vector.broadcast %cst_52 : f32 to vector<2x128xf32>
    %261 = arith.addf %260, %259 : vector<2x128xf32>
    %262 = arith.divf %260, %261 : vector<2x128xf32>
    %263 = vector.extract_strided_slice %256 {offsets = [0, 128], sizes = [2, 128], strides = [1, 1]} : vector<2x512xf32> to vector<2x128xf32>
    %264 = arith.negf %263 : vector<2x128xf32>
    %265 = math.exp %264 : vector<2x128xf32>
    %cst_53 = arith.constant 1.000000e+00 : f32
    %266 = vector.broadcast %cst_53 : f32 to vector<2x128xf32>
    %267 = arith.addf %266, %265 : vector<2x128xf32>
    %268 = arith.divf %266, %267 : vector<2x128xf32>
    %269 = vector.extract_strided_slice %256 {offsets = [0, 256], sizes = [2, 128], strides = [1, 1]} : vector<2x512xf32> to vector<2x128xf32>
    %270 = math.tanh %269 : vector<2x128xf32>
    %271 = vector.extract_strided_slice %256 {offsets = [0, 384], sizes = [2, 128], strides = [1, 1]} : vector<2x512xf32> to vector<2x128xf32>
    %272 = arith.negf %271 : vector<2x128xf32>
    %273 = math.exp %272 : vector<2x128xf32>
    %cst_54 = arith.constant 1.000000e+00 : f32
    %274 = vector.broadcast %cst_54 : f32 to vector<2x128xf32>
    %275 = arith.addf %274, %273 : vector<2x128xf32>
    %276 = arith.divf %274, %275 : vector<2x128xf32>
    %277 = arith.mulf %268, %220 : vector<2x128xf32>
    %278 = arith.mulf %262, %270 : vector<2x128xf32>
    %279 = arith.addf %277, %278 : vector<2x128xf32>
    %280 = math.tanh %279 : vector<2x128xf32>
    %281 = arith.mulf %276, %280 : vector<2x128xf32>
    %282 = tpu.concatenate %281, %251 in 1 : vector<2x128xf32>, vector<2x128xf32> -> vector<2x256xf32>
    %283 = arith.truncf %282 : vector<2x256xf32> to vector<2x256xbf16>
    %cst_55 = arith.constant dense<0.000000e+00> : vector<2x512xf32>
    %284 = tpu.matmul %283, %8, %cst_55 {dimension_numbers = #tpu.dot_dimension_numbers<[1], [0], [0], [1], [0, 0, 1, 1], [], []>} : vector<2x256xbf16>, vector<256x512xbf16>, vector<2x512xf32> -> vector<2x512xf32>
    %285 = arith.addf %284, %11 : vector<2x512xf32>
    %286 = vector.extract_strided_slice %285 {offsets = [0, 0], sizes = [2, 128], strides = [1, 1]} : vector<2x512xf32> to vector<2x128xf32>
    %287 = arith.negf %286 : vector<2x128xf32>
    %288 = math.exp %287 : vector<2x128xf32>
    %cst_56 = arith.constant 1.000000e+00 : f32
    %289 = vector.broadcast %cst_56 : f32 to vector<2x128xf32>
    %290 = arith.addf %289, %288 : vector<2x128xf32>
    %291 = arith.divf %289, %290 : vector<2x128xf32>
    %292 = vector.extract_strided_slice %285 {offsets = [0, 128], sizes = [2, 128], strides = [1, 1]} : vector<2x512xf32> to vector<2x128xf32>
    %293 = arith.negf %292 : vector<2x128xf32>
    %294 = math.exp %293 : vector<2x128xf32>
    %cst_57 = arith.constant 1.000000e+00 : f32
    %295 = vector.broadcast %cst_57 : f32 to vector<2x128xf32>
    %296 = arith.addf %295, %294 : vector<2x128xf32>
    %297 = arith.divf %295, %296 : vector<2x128xf32>
    %298 = vector.extract_strided_slice %285 {offsets = [0, 256], sizes = [2, 128], strides = [1, 1]} : vector<2x512xf32> to vector<2x128xf32>
    %299 = math.tanh %298 : vector<2x128xf32>
    %300 = vector.extract_strided_slice %285 {offsets = [0, 384], sizes = [2, 128], strides = [1, 1]} : vector<2x512xf32> to vector<2x128xf32>
    %301 = arith.negf %300 : vector<2x128xf32>
    %302 = math.exp %301 : vector<2x128xf32>
    %cst_58 = arith.constant 1.000000e+00 : f32
    %303 = vector.broadcast %cst_58 : f32 to vector<2x128xf32>
    %304 = arith.addf %303, %302 : vector<2x128xf32>
    %305 = arith.divf %303, %304 : vector<2x128xf32>
    %306 = arith.mulf %297, %249 : vector<2x128xf32>
    %307 = arith.mulf %291, %299 : vector<2x128xf32>
    %308 = arith.addf %306, %307 : vector<2x128xf32>
    %309 = math.tanh %308 : vector<2x128xf32>
    %310 = arith.mulf %305, %309 : vector<2x128xf32>
    %311 = vector.extract_strided_slice %6 {offsets = [5, 0, 0], sizes = [1, 2, 512], strides = [1, 1, 1]} : vector<8x2x512xf32> to vector<1x2x512xf32>
    %312 = vector.shape_cast %311 : vector<1x2x512xf32> to vector<2x512xf32>
    %313 = arith.truncf %281 : vector<2x128xf32> to vector<2x128xbf16>
    %cst_59 = arith.constant dense<0.000000e+00> : vector<2x512xf32>
    %314 = tpu.matmul %313, %7, %cst_59 {dimension_numbers = #tpu.dot_dimension_numbers<[1], [0], [0], [1], [0, 0, 1, 1], [], []>} : vector<2x128xbf16>, vector<128x512xbf16>, vector<2x512xf32> -> vector<2x512xf32>
    %315 = arith.addf %312, %314 : vector<2x512xf32>
    %316 = vector.extract_strided_slice %315 {offsets = [0, 0], sizes = [2, 128], strides = [1, 1]} : vector<2x512xf32> to vector<2x128xf32>
    %317 = arith.negf %316 : vector<2x128xf32>
    %318 = math.exp %317 : vector<2x128xf32>
    %cst_60 = arith.constant 1.000000e+00 : f32
    %319 = vector.broadcast %cst_60 : f32 to vector<2x128xf32>
    %320 = arith.addf %319, %318 : vector<2x128xf32>
    %321 = arith.divf %319, %320 : vector<2x128xf32>
    %322 = vector.extract_strided_slice %315 {offsets = [0, 128], sizes = [2, 128], strides = [1, 1]} : vector<2x512xf32> to vector<2x128xf32>
    %323 = arith.negf %322 : vector<2x128xf32>
    %324 = math.exp %323 : vector<2x128xf32>
    %cst_61 = arith.constant 1.000000e+00 : f32
    %325 = vector.broadcast %cst_61 : f32 to vector<2x128xf32>
    %326 = arith.addf %325, %324 : vector<2x128xf32>
    %327 = arith.divf %325, %326 : vector<2x128xf32>
    %328 = vector.extract_strided_slice %315 {offsets = [0, 256], sizes = [2, 128], strides = [1, 1]} : vector<2x512xf32> to vector<2x128xf32>
    %329 = math.tanh %328 : vector<2x128xf32>
    %330 = vector.extract_strided_slice %315 {offsets = [0, 384], sizes = [2, 128], strides = [1, 1]} : vector<2x512xf32> to vector<2x128xf32>
    %331 = arith.negf %330 : vector<2x128xf32>
    %332 = math.exp %331 : vector<2x128xf32>
    %cst_62 = arith.constant 1.000000e+00 : f32
    %333 = vector.broadcast %cst_62 : f32 to vector<2x128xf32>
    %334 = arith.addf %333, %332 : vector<2x128xf32>
    %335 = arith.divf %333, %334 : vector<2x128xf32>
    %336 = arith.mulf %327, %279 : vector<2x128xf32>
    %337 = arith.mulf %321, %329 : vector<2x128xf32>
    %338 = arith.addf %336, %337 : vector<2x128xf32>
    %339 = math.tanh %338 : vector<2x128xf32>
    %340 = arith.mulf %335, %339 : vector<2x128xf32>
    %341 = tpu.concatenate %340, %310 in 1 : vector<2x128xf32>, vector<2x128xf32> -> vector<2x256xf32>
    %342 = arith.truncf %341 : vector<2x256xf32> to vector<2x256xbf16>
    %cst_63 = arith.constant dense<0.000000e+00> : vector<2x512xf32>
    %343 = tpu.matmul %342, %8, %cst_63 {dimension_numbers = #tpu.dot_dimension_numbers<[1], [0], [0], [1], [0, 0, 1, 1], [], []>} : vector<2x256xbf16>, vector<256x512xbf16>, vector<2x512xf32> -> vector<2x512xf32>
    %344 = arith.addf %343, %11 : vector<2x512xf32>
    %345 = vector.extract_strided_slice %344 {offsets = [0, 0], sizes = [2, 128], strides = [1, 1]} : vector<2x512xf32> to vector<2x128xf32>
    %346 = arith.negf %345 : vector<2x128xf32>
    %347 = math.exp %346 : vector<2x128xf32>
    %cst_64 = arith.constant 1.000000e+00 : f32
    %348 = vector.broadcast %cst_64 : f32 to vector<2x128xf32>
    %349 = arith.addf %348, %347 : vector<2x128xf32>
    %350 = arith.divf %348, %349 : vector<2x128xf32>
    %351 = vector.extract_strided_slice %344 {offsets = [0, 128], sizes = [2, 128], strides = [1, 1]} : vector<2x512xf32> to vector<2x128xf32>
    %352 = arith.negf %351 : vector<2x128xf32>
    %353 = math.exp %352 : vector<2x128xf32>
    %cst_65 = arith.constant 1.000000e+00 : f32
    %354 = vector.broadcast %cst_65 : f32 to vector<2x128xf32>
    %355 = arith.addf %354, %353 : vector<2x128xf32>
    %356 = arith.divf %354, %355 : vector<2x128xf32>
    %357 = vector.extract_strided_slice %344 {offsets = [0, 256], sizes = [2, 128], strides = [1, 1]} : vector<2x512xf32> to vector<2x128xf32>
    %358 = math.tanh %357 : vector<2x128xf32>
    %359 = vector.extract_strided_slice %344 {offsets = [0, 384], sizes = [2, 128], strides = [1, 1]} : vector<2x512xf32> to vector<2x128xf32>
    %360 = arith.negf %359 : vector<2x128xf32>
    %361 = math.exp %360 : vector<2x128xf32>
    %cst_66 = arith.constant 1.000000e+00 : f32
    %362 = vector.broadcast %cst_66 : f32 to vector<2x128xf32>
    %363 = arith.addf %362, %361 : vector<2x128xf32>
    %364 = arith.divf %362, %363 : vector<2x128xf32>
    %365 = arith.mulf %356, %308 : vector<2x128xf32>
    %366 = arith.mulf %350, %358 : vector<2x128xf32>
    %367 = arith.addf %365, %366 : vector<2x128xf32>
    %368 = math.tanh %367 : vector<2x128xf32>
    %369 = arith.mulf %364, %368 : vector<2x128xf32>
    %370 = vector.extract_strided_slice %6 {offsets = [6, 0, 0], sizes = [1, 2, 512], strides = [1, 1, 1]} : vector<8x2x512xf32> to vector<1x2x512xf32>
    %371 = vector.shape_cast %370 : vector<1x2x512xf32> to vector<2x512xf32>
    %372 = arith.truncf %340 : vector<2x128xf32> to vector<2x128xbf16>
    %cst_67 = arith.constant dense<0.000000e+00> : vector<2x512xf32>
    %373 = tpu.matmul %372, %7, %cst_67 {dimension_numbers = #tpu.dot_dimension_numbers<[1], [0], [0], [1], [0, 0, 1, 1], [], []>} : vector<2x128xbf16>, vector<128x512xbf16>, vector<2x512xf32> -> vector<2x512xf32>
    %374 = arith.addf %371, %373 : vector<2x512xf32>
    %375 = vector.extract_strided_slice %374 {offsets = [0, 0], sizes = [2, 128], strides = [1, 1]} : vector<2x512xf32> to vector<2x128xf32>
    %376 = arith.negf %375 : vector<2x128xf32>
    %377 = math.exp %376 : vector<2x128xf32>
    %cst_68 = arith.constant 1.000000e+00 : f32
    %378 = vector.broadcast %cst_68 : f32 to vector<2x128xf32>
    %379 = arith.addf %378, %377 : vector<2x128xf32>
    %380 = arith.divf %378, %379 : vector<2x128xf32>
    %381 = vector.extract_strided_slice %374 {offsets = [0, 128], sizes = [2, 128], strides = [1, 1]} : vector<2x512xf32> to vector<2x128xf32>
    %382 = arith.negf %381 : vector<2x128xf32>
    %383 = math.exp %382 : vector<2x128xf32>
    %cst_69 = arith.constant 1.000000e+00 : f32
    %384 = vector.broadcast %cst_69 : f32 to vector<2x128xf32>
    %385 = arith.addf %384, %383 : vector<2x128xf32>
    %386 = arith.divf %384, %385 : vector<2x128xf32>
    %387 = vector.extract_strided_slice %374 {offsets = [0, 256], sizes = [2, 128], strides = [1, 1]} : vector<2x512xf32> to vector<2x128xf32>
    %388 = math.tanh %387 : vector<2x128xf32>
    %389 = vector.extract_strided_slice %374 {offsets = [0, 384], sizes = [2, 128], strides = [1, 1]} : vector<2x512xf32> to vector<2x128xf32>
    %390 = arith.negf %389 : vector<2x128xf32>
    %391 = math.exp %390 : vector<2x128xf32>
    %cst_70 = arith.constant 1.000000e+00 : f32
    %392 = vector.broadcast %cst_70 : f32 to vector<2x128xf32>
    %393 = arith.addf %392, %391 : vector<2x128xf32>
    %394 = arith.divf %392, %393 : vector<2x128xf32>
    %395 = arith.mulf %386, %338 : vector<2x128xf32>
    %396 = arith.mulf %380, %388 : vector<2x128xf32>
    %397 = arith.addf %395, %396 : vector<2x128xf32>
    %398 = math.tanh %397 : vector<2x128xf32>
    %399 = arith.mulf %394, %398 : vector<2x128xf32>
    %400 = tpu.concatenate %399, %369 in 1 : vector<2x128xf32>, vector<2x128xf32> -> vector<2x256xf32>
    %401 = arith.truncf %400 : vector<2x256xf32> to vector<2x256xbf16>
    %cst_71 = arith.constant dense<0.000000e+00> : vector<2x512xf32>
    %402 = tpu.matmul %401, %8, %cst_71 {dimension_numbers = #tpu.dot_dimension_numbers<[1], [0], [0], [1], [0, 0, 1, 1], [], []>} : vector<2x256xbf16>, vector<256x512xbf16>, vector<2x512xf32> -> vector<2x512xf32>
    %403 = arith.addf %402, %11 : vector<2x512xf32>
    %404 = vector.extract_strided_slice %403 {offsets = [0, 0], sizes = [2, 128], strides = [1, 1]} : vector<2x512xf32> to vector<2x128xf32>
    %405 = arith.negf %404 : vector<2x128xf32>
    %406 = math.exp %405 : vector<2x128xf32>
    %cst_72 = arith.constant 1.000000e+00 : f32
    %407 = vector.broadcast %cst_72 : f32 to vector<2x128xf32>
    %408 = arith.addf %407, %406 : vector<2x128xf32>
    %409 = arith.divf %407, %408 : vector<2x128xf32>
    %410 = vector.extract_strided_slice %403 {offsets = [0, 128], sizes = [2, 128], strides = [1, 1]} : vector<2x512xf32> to vector<2x128xf32>
    %411 = arith.negf %410 : vector<2x128xf32>
    %412 = math.exp %411 : vector<2x128xf32>
    %cst_73 = arith.constant 1.000000e+00 : f32
    %413 = vector.broadcast %cst_73 : f32 to vector<2x128xf32>
    %414 = arith.addf %413, %412 : vector<2x128xf32>
    %415 = arith.divf %413, %414 : vector<2x128xf32>
    %416 = vector.extract_strided_slice %403 {offsets = [0, 256], sizes = [2, 128], strides = [1, 1]} : vector<2x512xf32> to vector<2x128xf32>
    %417 = math.tanh %416 : vector<2x128xf32>
    %418 = vector.extract_strided_slice %403 {offsets = [0, 384], sizes = [2, 128], strides = [1, 1]} : vector<2x512xf32> to vector<2x128xf32>
    %419 = arith.negf %418 : vector<2x128xf32>
    %420 = math.exp %419 : vector<2x128xf32>
    %cst_74 = arith.constant 1.000000e+00 : f32
    %421 = vector.broadcast %cst_74 : f32 to vector<2x128xf32>
    %422 = arith.addf %421, %420 : vector<2x128xf32>
    %423 = arith.divf %421, %422 : vector<2x128xf32>
    %424 = arith.mulf %415, %367 : vector<2x128xf32>
    %425 = arith.mulf %409, %417 : vector<2x128xf32>
    %426 = arith.addf %424, %425 : vector<2x128xf32>
    %427 = math.tanh %426 : vector<2x128xf32>
    %428 = arith.mulf %423, %427 : vector<2x128xf32>
    %429 = vector.extract_strided_slice %6 {offsets = [7, 0, 0], sizes = [1, 2, 512], strides = [1, 1, 1]} : vector<8x2x512xf32> to vector<1x2x512xf32>
    %430 = vector.shape_cast %429 : vector<1x2x512xf32> to vector<2x512xf32>
    %431 = arith.truncf %399 : vector<2x128xf32> to vector<2x128xbf16>
    %cst_75 = arith.constant dense<0.000000e+00> : vector<2x512xf32>
    %432 = tpu.matmul %431, %7, %cst_75 {dimension_numbers = #tpu.dot_dimension_numbers<[1], [0], [0], [1], [0, 0, 1, 1], [], []>} : vector<2x128xbf16>, vector<128x512xbf16>, vector<2x512xf32> -> vector<2x512xf32>
    %433 = arith.addf %430, %432 : vector<2x512xf32>
    %434 = vector.extract_strided_slice %433 {offsets = [0, 0], sizes = [2, 128], strides = [1, 1]} : vector<2x512xf32> to vector<2x128xf32>
    %435 = arith.negf %434 : vector<2x128xf32>
    %436 = math.exp %435 : vector<2x128xf32>
    %cst_76 = arith.constant 1.000000e+00 : f32
    %437 = vector.broadcast %cst_76 : f32 to vector<2x128xf32>
    %438 = arith.addf %437, %436 : vector<2x128xf32>
    %439 = arith.divf %437, %438 : vector<2x128xf32>
    %440 = vector.extract_strided_slice %433 {offsets = [0, 128], sizes = [2, 128], strides = [1, 1]} : vector<2x512xf32> to vector<2x128xf32>
    %441 = arith.negf %440 : vector<2x128xf32>
    %442 = math.exp %441 : vector<2x128xf32>
    %cst_77 = arith.constant 1.000000e+00 : f32
    %443 = vector.broadcast %cst_77 : f32 to vector<2x128xf32>
    %444 = arith.addf %443, %442 : vector<2x128xf32>
    %445 = arith.divf %443, %444 : vector<2x128xf32>
    %446 = vector.extract_strided_slice %433 {offsets = [0, 256], sizes = [2, 128], strides = [1, 1]} : vector<2x512xf32> to vector<2x128xf32>
    %447 = math.tanh %446 : vector<2x128xf32>
    %448 = vector.extract_strided_slice %433 {offsets = [0, 384], sizes = [2, 128], strides = [1, 1]} : vector<2x512xf32> to vector<2x128xf32>
    %449 = arith.negf %448 : vector<2x128xf32>
    %450 = math.exp %449 : vector<2x128xf32>
    %cst_78 = arith.constant 1.000000e+00 : f32
    %451 = vector.broadcast %cst_78 : f32 to vector<2x128xf32>
    %452 = arith.addf %451, %450 : vector<2x128xf32>
    %453 = arith.divf %451, %452 : vector<2x128xf32>
    %454 = arith.mulf %445, %397 : vector<2x128xf32>
    %455 = arith.mulf %439, %447 : vector<2x128xf32>
    %456 = arith.addf %454, %455 : vector<2x128xf32>
    %457 = math.tanh %456 : vector<2x128xf32>
    %458 = arith.mulf %453, %457 : vector<2x128xf32>
    %459 = tpu.concatenate %458, %428 in 1 : vector<2x128xf32>, vector<2x128xf32> -> vector<2x256xf32>
    %460 = arith.truncf %459 : vector<2x256xf32> to vector<2x256xbf16>
    %cst_79 = arith.constant dense<0.000000e+00> : vector<2x512xf32>
    %461 = tpu.matmul %460, %8, %cst_79 {dimension_numbers = #tpu.dot_dimension_numbers<[1], [0], [0], [1], [0, 0, 1, 1], [], []>} : vector<2x256xbf16>, vector<256x512xbf16>, vector<2x512xf32> -> vector<2x512xf32>
    %462 = arith.addf %461, %11 : vector<2x512xf32>
    %463 = vector.extract_strided_slice %462 {offsets = [0, 0], sizes = [2, 128], strides = [1, 1]} : vector<2x512xf32> to vector<2x128xf32>
    %464 = arith.negf %463 : vector<2x128xf32>
    %465 = math.exp %464 : vector<2x128xf32>
    %cst_80 = arith.constant 1.000000e+00 : f32
    %466 = vector.broadcast %cst_80 : f32 to vector<2x128xf32>
    %467 = arith.addf %466, %465 : vector<2x128xf32>
    %468 = arith.divf %466, %467 : vector<2x128xf32>
    %469 = vector.extract_strided_slice %462 {offsets = [0, 128], sizes = [2, 128], strides = [1, 1]} : vector<2x512xf32> to vector<2x128xf32>
    %470 = arith.negf %469 : vector<2x128xf32>
    %471 = math.exp %470 : vector<2x128xf32>
    %cst_81 = arith.constant 1.000000e+00 : f32
    %472 = vector.broadcast %cst_81 : f32 to vector<2x128xf32>
    %473 = arith.addf %472, %471 : vector<2x128xf32>
    %474 = arith.divf %472, %473 : vector<2x128xf32>
    %475 = vector.extract_strided_slice %462 {offsets = [0, 256], sizes = [2, 128], strides = [1, 1]} : vector<2x512xf32> to vector<2x128xf32>
    %476 = math.tanh %475 : vector<2x128xf32>
    %477 = vector.extract_strided_slice %462 {offsets = [0, 384], sizes = [2, 128], strides = [1, 1]} : vector<2x512xf32> to vector<2x128xf32>
    %478 = arith.negf %477 : vector<2x128xf32>
    %479 = math.exp %478 : vector<2x128xf32>
    %cst_82 = arith.constant 1.000000e+00 : f32
    %480 = vector.broadcast %cst_82 : f32 to vector<2x128xf32>
    %481 = arith.addf %480, %479 : vector<2x128xf32>
    %482 = arith.divf %480, %481 : vector<2x128xf32>
    %483 = arith.mulf %474, %426 : vector<2x128xf32>
    %484 = arith.mulf %468, %476 : vector<2x128xf32>
    %485 = arith.addf %483, %484 : vector<2x128xf32>
    %486 = math.tanh %485 : vector<2x128xf32>
    %487 = arith.mulf %482, %486 : vector<2x128xf32>
    %488 = arith.truncf %487 : vector<2x128xf32> to vector<2x128xbf16>
    %c0_83 = arith.constant 0 : index
    %c0_84 = arith.constant 0 : index
    %489 = vector.load %arg10[%c0_83, %c0_84] : memref<128x128xbf16, #tpu.memory_space<vmem>>, vector<128x128xbf16>
    %cst_85 = arith.constant dense<0.000000e+00> : vector<2x128xf32>
    %490 = tpu.matmul %488, %489, %cst_85 {dimension_numbers = #tpu.dot_dimension_numbers<[1], [0], [0], [1], [0, 0, 1, 1], [], []>} : vector<2x128xbf16>, vector<128x128xbf16>, vector<2x128xf32> -> vector<2x128xf32>
    %c0_86 = arith.constant 0 : index
    %c0_87 = arith.constant 0 : index
    %491 = vector.load %arg11[%c0_86, %c0_87] : memref<1x128xf32, #tpu.memory_space<vmem>>, vector<1x128xf32>
    %492 = vector.broadcast %491 : vector<1x128xf32> to vector<2x128xf32>
    %493 = arith.addf %490, %492 : vector<2x128xf32>
    %494 = tpu.concatenate %493, %458, %487, %456, %485 in 1 : vector<2x128xf32>, vector<2x128xf32>, vector<2x128xf32>, vector<2x128xf32>, vector<2x128xf32> -> vector<2x640xf32>
    %c0_88 = arith.constant 0 : index
    %c0_89 = arith.constant 0 : index
    %495 = vector.load %arg12[%c0_88, %c0_89] : memref<2x640xf32, #tpu.memory_space<vmem>>, vector<2x640xf32>
    tpu.vector_store %arg12[%c0_88, %c0_89], %494 {strides = array<i32>} : memref<2x640xf32, #tpu.memory_space<vmem>>, vector<2x640xf32>,
    return
  }
}

</mosaic_0001>

<bundles_post_ra>
// kernel: tpu_custom_call.1
= control target key start
LH: loop header
LB: loop body
LE: loop exit
PB: predicated region body
PF: predicated region fallthrough
CT: control target
= control target key end

     0   :  { %17 = vsyncpa [#allocation3], 0  ;;  %s5786_s0 = inlined_call_operand.hbm [shape: bf16[16,16], index: 0, kind: input, shape index: {}]   ;;  %s5787_s1 = inlined_call_operand.hbm [shape: bf16[16,512], index: 1, kind: input, shape index: {}]   ;;  %s5788_s2 = inlined_call_operand.hbm [shape: bf16[128,512], index: 2, kind: input, shape index: {}]   ;;  %s5789_s3 = inlined_call_operand.vmem [shape: f32[1,512], index: 3, kind: input, shape index: {}]   ;;  %s5790_s4 = inlined_call_operand.hbm [shape: f32[2,128], index: 4, kind: input, shape index: {}]   ;;  %s5791_s5 = inlined_call_operand.hbm [shape: f32[2,128], index: 5, kind: input, shape index: {}]   ;;  %s5792_s6 = inlined_call_operand.hbm [shape: bf16[256,512], index: 6, kind: input, shape index: {}]   ;;  %s5793_s7 = inlined_call_operand.vmem [shape: f32[1,512], index: 7, kind: input, shape index: {}]   ;;  %s5794_s8 = inlined_call_operand.vmem [shape: f32[2,128], index: 8, kind: input, shape index: {}]   ;;  %s5795_s9 = inlined_call_operand.vmem [shape: f32[2,128], index: 9, kind: input, shape index: {}]   ;;  %s5796_s10 = inlined_call_operand.hbm [shape: bf16[128,128], index: 10, kind: input, shape index: {}]   ;;  %s5797_s11 = inlined_call_operand.vmem [shape: f32[1,128], index: 11, kind: input, shape index: {}]   ;;  %s5798_s12 = inlined_call_operand.hbm [shape: f32[2,640], index: 12, kind: output, shape index: {}]  }
   0x1   :  { %18 = vsyncpa [#allocation6], 0 }
   0x2   :  { %19 = vsyncpa [#allocation9], 0 }
   0x3   :  { %20 = vsyncpa [#allocation12], 0 }
   0x4   :  { %21 = vsyncpa [#allocation4], 0  ;;  %s4066_s21 = smov [#allocation5]  }
   0x5   :  { %s39_s22 = sshll.u32 %s4066_s21, 4  ;;  %s40_s22 = int_to_ptr.vmem [resolvable:$true] %s39_s22 }
   0x6   :  { %s3904_s23 = scalar_lea.vmem %s40_s22, 512  ;;  %p3909_p1 = scmp.lt.s32.totalorder %s40_s22, %s40_s22 }
   0x7   :  { %p3905_p0 = scmp.ne.s32.totalorder %s40_s22, %s3904_s23  ;;  %p3910_p2 = scmp.lt.s32.totalorder %s3904_s23, %s3904_s23 }
   0x9   :  { %p3911_p3 = por %p3910_p2, %p3909_p1 }
   0xb   :  { %p3912_p4 = pnand %p3911_p3, %p3905_p0 }
   0xd   :  { %3915 = shalt.err (!%p3912_p4)
}
   0xe   :  { %s4067_s24 = smov 256   ;;  %s4068_s25 = smov 16  }
   0xf   :  { %45 = dma.hbm_to_vmem [thread:$0]  %s5787_s1, 512, %s40_s22, [#allocation6], %s4067_s24, %s4067_s24, %s4068_s25  }
  0x10   :  { %s4069_s28 = smov [#allocation8]   ;;  %s4070_s30 = smov [#allocation11]  }
  0x11   :  { %s66_s29 = sshll.u32 %s4069_s28, 4  ;;  %s85_s13 = sshll.u32 %s4070_s30, 4  ;;  %s67_s29 = int_to_ptr.vmem [resolvable:$true] %s66_s29  ;;  %s86_s13 = int_to_ptr.vmem [resolvable:$true] %s85_s13 }
  0x12   :  { %s3924_s14 = scalar_lea.vmem %s67_s29, 32  ;;  %p3929_p6 = scmp.lt.s32.totalorder %s67_s29, %s67_s29 }
  0x13   :  { %p3925_p5 = scmp.ne.s32.totalorder %s67_s29, %s3924_s14  ;;  %p3930_p7 = scmp.lt.s32.totalorder %s3924_s14, %s3924_s14 }
  0x15   :  { %p3931_p8 = por %p3930_p7, %p3929_p6 }
  0x17   :  { %p3932_p9 = pnand %p3931_p8, %p3925_p5 }
  0x19   :  { %3935 = shalt.err (!%p3932_p9)
}
  0x1a   :  { %69 = dma.hbm_to_vmem [thread:$0]  %s5790_s4, 32, %s67_s29, [#allocation9]  }
  0x1b   :  { %s3944_s17 = scalar_lea.vmem %s86_s13, 8192  ;;  %p3949_p11 = scmp.lt.s32.totalorder %s86_s13, %s86_s13 }
  0x1c   :  { %p3945_p10 = scmp.ne.s32.totalorder %s86_s13, %s3944_s17  ;;  %p3950_p12 = scmp.lt.s32.totalorder %s3944_s17, %s3944_s17 }
  0x1e   :  { %p3951_p13 = por %p3950_p12, %p3949_p11 }
  0x20   :  { %p3952_p0 = pnand %p3951_p13, %p3945_p10 }
  0x22   :  { %3955 = shalt.err (!%p3952_p0)
}
  0x23   :  { %91 = dma.hbm_to_vmem [thread:$0]  %s5792_s6, 8192, %s86_s13, [#allocation12], %s4067_s24, %s4067_s24, %s4068_s25  }
  0x24   :  { %s4071_s19 = smov [#allocation2]  }
  0x25   :  { %s27_s20 = sshll.u32 %s4071_s19, 4  ;;  %s28_s20 = int_to_ptr.vmem [resolvable:$true] %s27_s20 }
  0x26   :  { %s3964_s21 = scalar_lea.vmem %s28_s20, 128  ;;  %p3969_p2 = scmp.lt.s32.totalorder %s28_s20, %s28_s20 }
  0x27   :  { %p3965_p1 = scmp.ne.s32.totalorder %s28_s20, %s3964_s21  ;;  %p3970_p3 = scmp.lt.s32.totalorder %s3964_s21, %s3964_s21 }
  0x29   :  { %p3971_p4 = por %p3970_p3, %p3969_p2 }
  0x2b   :  { %p3972_p5 = pnand %p3971_p4, %p3965_p1 }
  0x2d   :  { %3975 = shalt.err (!%p3972_p5)
}
  0x2e   :  { %s4072_s4 = smov 64   ;;  %s4073_s22 = smov 4  }
  0x2f   :  { %33 = dma.hbm_to_vmem [thread:$0]  %s5786_s0, 128, %s28_s20, [#allocation3], %s4072_s4, %s4072_s4, %s4073_s22  }
  0x30   :  { %s4074_s6 = smov [#allocation7]   ;;  %s4075_s28 = smov [#allocation10]  }
  0x31   :  { %s51_s27 = sshll.u32 %s4074_s6, 4  ;;  %s76_s29 = sshll.u32 %s4075_s28, 4  ;;  %s52_s27 = int_to_ptr.vmem [resolvable:$true] %s51_s27  ;;  %s77_s29 = int_to_ptr.vmem [resolvable:$true] %s76_s29 }
  0x32   :  { %s3984_s30 = scalar_lea.vmem %s52_s27, 4096  ;;  %p3989_p7 = scmp.lt.s32.totalorder %s52_s27, %s52_s27 }
  0x33   :  { %p3985_p6 = scmp.ne.s32.totalorder %s52_s27, %s3984_s30  ;;  %p3990_p8 = scmp.lt.s32.totalorder %s3984_s30, %s3984_s30 }
  0x35   :  { %p3991_p9 = por %p3990_p8, %p3989_p7 }
  0x37   :  { %p3992_p10 = pnand %p3991_p9, %p3985_p6 }
  0x39   :  { %3995 = shalt.err (!%p3992_p10)
}
  0x3a   :  { %57 = dma.hbm_to_vmem [thread:$0]  %s5788_s2, 4096, %s52_s27, [#allocation6], %s4067_s24, %s4067_s24, %s4068_s25  }
  0x3b   :  { %s4004_s0 = scalar_lea.vmem %s77_s29, 32  ;;  %p4009_p12 = scmp.lt.s32.totalorder %s77_s29, %s77_s29 }
  0x3c   :  { %p4005_p11 = scmp.ne.s32.totalorder %s77_s29, %s4004_s0  ;;  %p4010_p13 = scmp.lt.s32.totalorder %s4004_s0, %s4004_s0 }
  0x3e   :  { %p4011_p0 = por %p4010_p13, %p4009_p12 }
  0x40   :  { %p4012_p1 = pnand %p4011_p0, %p4005_p11 }
  0x42   :  { %4015 = shalt.err (!%p4012_p1)
}
  0x43   :  { %79 = dma.hbm_to_vmem [thread:$0]  %s5791_s5, 32, %s77_s29, [#allocation9]  }
  0x44   :  { %s4076_s17 = smov [#allocation13]  }
  0x45   :  { %s103_s1 = sshll.u32 %s4076_s17, 4  ;;  %s104_s1 = int_to_ptr.vmem [resolvable:$true] %s103_s1 }
  0x46   :  { %s4024_s18 = scalar_lea.vmem %s104_s1, 1024  ;;  %p4029_p3 = scmp.lt.s32.totalorder %s104_s1, %s104_s1 }
  0x47   :  { %p4025_p2 = scmp.ne.s32.totalorder %s104_s1, %s4024_s18  ;;  %p4030_p4 = scmp.lt.s32.totalorder %s4024_s18, %s4024_s18 }
  0x49   :  { %p4031_p5 = por %p4030_p4, %p4029_p3 }
  0x4b   :  { %p4032_p6 = pnand %p4031_p5, %p4025_p2 }
  0x4d   :  { %4035 = shalt.err (!%p4032_p6)
}
  0x4e   :  { %109 = dma.hbm_to_vmem [thread:$0]  %s5796_s10, 1024, %s104_s1, [#allocation12], %s4072_s4, %s4072_s4, %s4073_s22  }
  0x4f   :  { %4056 = dma.done.wait [#allocation3], 128  }
  0x50   :  { %4057 = vsyncadd [#allocation3], 4294967168 }
  0x51   :  { %4058 = dma.done.wait [#allocation6], 4608  }
  0x52   :  { %4059 = vsyncadd [#allocation6], 4294962688 }
  0x53   :  { %4060 = dma.done.wait [#allocation9], 64  }
  0x54   :  { %4061 = vsyncadd [#allocation9], 4294967232 }
  0x55   :  { %4062 = dma.done.wait [#allocation12], 9216  }
  0x56   :  { %4063 = vsyncadd [#allocation12], 4294958080  ;;  %v5799_v0 = vmov 0   ;;  %v3289_v1 = vld [vmem:[#allocation5 + $0x4] ss:$16 sps:$4 sm:$0xff]   ;;  %v3292_v3 = vld [vmem:[#allocation2] sm:$0xff]  }
  0x57   :  { %223 = vmatprep.mubr.bf16.mxu1 %v5799_v0  ;;  %680 = vmatprep.mubr.bf16.mxu0 %v5799_v0  ;;  %v3291_v2 = vld [vmem:[#allocation5] ss:$16 sps:$4 sm:$0xff]   ;;  %vm187_vm0 = vcmask 130048   ;;  %v3293_v4 = vld [vmem:[#allocation5 + $0x8] ss:$16 sps:$4 sm:$0xff]   ;;  %vm4080_vm1 = vmmov 0  }
  0x58   :  { %205 = vmatprep.subr.bf16.mxu1 %v3289_v1  ;;  %v3295_v5 = vld [vmem:[#allocation5 + $0xc] ss:$16 sps:$4 sm:$0xff]   ;;  %v4185_v6 = vld [vmem:[#allocation7 + $0xe4] ss:$16 sps:$4 sm:$0xff]   ;;  %v4187_v7 = vld [vmem:[#allocation7 + $0xe0] ss:$16 sps:$4 sm:$0xff]  }
  0x59   :  { %206 = vmatpush1.bf16.msra.mxu1 %v3291_v2  ;;  %v4189_v8 = vld [vmem:[#allocation7 + $0xc4] ss:$16 sps:$4 sm:$0xff]   ;;  %648 = vmatprep.subr.bf16.mxu0 %v4185_v6  ;;  %v4194_v9 = vld [vmem:[#allocation7 + $0xc0] ss:$16 sps:$4 sm:$0xff]   ;;  %v4196_v10 = vld [vmem:[#allocation7 + $0xec] ss:$16 sps:$4 sm:$0xff]  }
  0x5a   :  { %248 = vmatprep.subr.bf16.mxu1 %v3295_v5  ;;  %649 = vmatpush1.bf16.msra.mxu0 %v4187_v7  ;;  %6157 = vst [vmem:[#allocation20_spill] sm:$0xff] %v4196_v10  ;;  %v4200_v11 = vld [vmem:[#allocation7 + $0xa4] ss:$16 sps:$4 sm:$0xff]   ;;  %v4204_v12 = vld [vmem:[#allocation7 + $0xe8] ss:$16 sps:$4 sm:$0xff]   ;;  %s4081_s4 = smov [#allocation14]  }
  0x5b   :  { %650 = vmatprep.subr.bf16.mxu0 %v4189_v8  ;;  %v4206_v13 = vld [vmem:[#allocation7 + $0xa0] ss:$16 sps:$4 sm:$0xff]   ;;  %v4209_v14 = vld [vmem:[#allocation7 + $0xcc] ss:$16 sps:$4 sm:$0xff]   ;;  %v4211_v15 = vld [vmem:[#allocation7 + $0x84] ss:$16 sps:$4 sm:$0xff]  }
  0x5c   :  { %3088 = vmatmul.mubr.msk.bf16.vlgmr.msra.gmra.mxu1 %vm187_vm0, %v3292_v3  ;;  %v4216_v16 = vld [vmem:[#allocation7 + $0xc8] ss:$16 sps:$4 sm:$0xff]   ;;  %v4218_v17 = vld [vmem:[#allocation7 + $0x80] ss:$16 sps:$4 sm:$0xff]   ;;  %v4222_v18 = vld [vmem:[#allocation7 + $0xac] ss:$16 sps:$4 sm:$0xff]  }
  0x5d   :  { %249 = vmatpush1.bf16.msra.mxu1 %v3293_v4  ;;  %266 = vmatprep.mubr.bf16.mxu1 %v5799_v0  ;;  %v4224_v19 = vld [vmem:[#allocation7 + $0x64] ss:$16 sps:$4 sm:$0xff]   ;;  %v4229_v20 = vld [vmem:[#allocation7 + $0xa8] ss:$16 sps:$4 sm:$0xff]   ;;  %v4231_v21 = vld [vmem:[#allocation7 + $0x60] ss:$16 sps:$4 sm:$0xff]  }
  0x5e   :  { %689 = vmatprep.subr.bf16.mxu1 %v4196_v10  ;;  %651 = vmatpush1.bf16.msra.mxu0 %v4194_v9  ;;  %v4235_v22 = vld [vmem:[#allocation7 + $0x8c] ss:$16 sps:$4 sm:$0xff]   ;;  %v4237_v23 = vld [vmem:[#allocation7 + $0x44] ss:$16 sps:$4 sm:$0xff]   ;;  %v4241_v24 = vld [vmem:[#allocation7 + $0x88] ss:$16 sps:$4 sm:$0xff]  }
  0x5f   :  { %652 = vmatprep.subr.bf16.mxu0 %v4200_v11  ;;  %v4243_v25 = vld [vmem:[#allocation7 + $0x40] ss:$16 sps:$4 sm:$0xff]   ;;  %v4245_v26 = vld [vmem:[#allocation7 + $0x6c] ss:$16 sps:$4 sm:$0xff]   ;;  %v4249_v27 = vld [vmem:[#allocation7 + $0x24] ss:$16 sps:$4 sm:$0xff]  }
  0x60   :  { %v4251_v28 = vld [vmem:[#allocation7 + $0x68] ss:$16 sps:$4 sm:$0xff]   ;;  %v4253_v29 = vld [vmem:[#allocation7 + $0x20] ss:$16 sps:$4 sm:$0xff]   ;;  %v4255_v30 = vld [vmem:[#allocation7 + $0x4c] ss:$16 sps:$4 sm:$0xff]  }
  0x61   :  { %v4257_v31 = vld [vmem:[#allocation7 + $0x4] ss:$16 sps:$4 sm:$0xff]   ;;  %v4263_v32 = vld [vmem:[#allocation7 + $0x48] ss:$16 sps:$4 sm:$0xff]   ;;  %v4265_v33 = vld [vmem:[#allocation7] ss:$16 sps:$4 sm:$0xff]  }
  0x62   :  { %653 = vmatpush1.bf16.msra.mxu0 %v4206_v13  ;;  %v483_v34 = vld [vmem:[#allocation8] sm:$0x3]  ;;  %v4267_v35 = vld [vmem:[#allocation7 + $0x2c] ss:$16 sps:$4 sm:$0xff]   ;;  %v4273_v36 = vld [vmem:[#allocation7 + $0x28] ss:$16 sps:$4 sm:$0xff]  }
  0x63   :  { %654 = vmatprep.subr.bf16.mxu0 %v4211_v15  ;;  %v487_v37 = vpack.c.bf16 %v483_v34, %v483_v34  ;;  %v4275_v38 = vld [vmem:[#allocation7 + $0xc] ss:$16 sps:$4 sm:$0xff]   ;;  %v4280_v39 = vld [vmem:[#allocation7 + $0x8] ss:$16 sps:$4 sm:$0xff]   ;;  %v4287_v41 = vld [vmem:[#allocation11 + $0xec] ss:$16 sps:$4 sm:$0xff]  }
  0x64   :  { %3089 = vmatmul.mubr.msk.bf16.vlgmr.msra.gmra.mxu1 %vm187_vm0, %v3292_v3  ;;  %v4285_v40 = vld [vmem:[#allocation11 + $0xe4] ss:$16 sps:$4 sm:$0xff]   ;;  %v4289_v42 = vld [vmem:[#allocation11 + $0xe0] ss:$16 sps:$4 sm:$0xff]   ;;  %v4291_v43 = vld [vmem:[#allocation11 + $0xe8] ss:$16 sps:$4 sm:$0xff]  }
  0x65   :  { %690 = vmatpush1.bf16.msra.mxu1 %v4204_v12  ;;  %721 = vmatprep.mubr.bf16.mxu1 %v5799_v0  ;;  %v4297_v44 = vld [vmem:[#allocation11 + $0xc4] ss:$16 sps:$4 sm:$0xff]   ;;  %v4299_v45 = vld [vmem:[#allocation11 + $0xcc] ss:$16 sps:$4 sm:$0xff]   ;;  %v4301_v46 = vld [vmem:[#allocation11 + $0xc0] ss:$16 sps:$4 sm:$0xff]  }
  0x66   :  { %691 = vmatprep.subr.bf16.mxu1 %v4209_v14  ;;  %655 = vmatpush1.bf16.msra.mxu0 %v4218_v17  ;;  %v4303_v47 = vld [vmem:[#allocation11 + $0xc8] ss:$16 sps:$4 sm:$0xff]   ;;  %v4309_v48 = vld [vmem:[#allocation11 + $0xa4] ss:$16 sps:$4 sm:$0xff]   ;;  %v4311_v49 = vld [vmem:[#allocation11 + $0xac] ss:$16 sps:$4 sm:$0xff]  }
  0x67   :  { %656 = vmatprep.subr.bf16.mxu0 %v4224_v19  ;;  %6158 = vst [vmem:[#allocation21_spill] sm:$0xff] %v4311_v49  ;;  %v4313_v50 = vld [vmem:[#allocation11 + $0xa0] ss:$16 sps:$4 sm:$0xff]   ;;  %v4315_v51 = vld [vmem:[#allocation11 + $0xa8] ss:$16 sps:$4 sm:$0xff]   ;;  %s3071_s22 = sshll.u32 %s4081_s4, 4  ;;  %s3072_s22 = int_to_ptr.vmem [resolvable:$true] %s3071_s22 }
  0x68   :  { %6159 = vst [vmem:[#allocation22_spill] sm:$0xff] %v4313_v50  ;;  %6160 = vst [vmem:[#allocation23_spill] sm:$0xff] %v4315_v51  ;;  %v4321_v52 = vld [vmem:[#allocation11 + $0x84] ss:$16 sps:$4 sm:$0xff]   ;;  %v4323_v53 = vld [vmem:[#allocation11 + $0x8c] ss:$16 sps:$4 sm:$0xff]   ;;  %p4041_p8 = scmp.lt.s32.totalorder %s3072_s22, %s3072_s22 }
  0x69   :  { %692 = vmatpush1.bf16.msra.mxu1 %v4216_v16  ;;  %6161 = vst [vmem:[#allocation24_spill] sm:$0xff] %v4321_v52  ;;  %6162 = vst [vmem:[#allocation25_spill] sm:$0xff] %v4323_v53  ;;  %v4325_v54 = vld [vmem:[#allocation11 + $0x80] ss:$16 sps:$4 sm:$0xff]   ;;  %v4327_v55 = vld [vmem:[#allocation11 + $0x88] ss:$16 sps:$4 sm:$0xff]  }
  0x6a   :  { %693 = vmatprep.subr.bf16.mxu1 %v4222_v18  ;;  %657 = vmatpush1.bf16.msra.mxu0 %v4231_v21  ;;  %6163 = vst [vmem:[#allocation26_spill] sm:$0xff] %v4325_v54  ;;  %6164 = vst [vmem:[#allocation27_spill] sm:$0xff] %v4327_v55  ;;  %v4333_v56 = vld [vmem:[#allocation11 + $0x64] ss:$16 sps:$4 sm:$0xff]   ;;  %v4335_v57 = vld [vmem:[#allocation11 + $0x6c] ss:$16 sps:$4 sm:$0xff]  }
  0x6b   :  { %658 = vmatprep.subr.bf16.mxu0 %v4237_v23  ;;  %6165 = vst [vmem:[#allocation28_spill] sm:$0xff] %v4333_v56  ;;  %6166 = vst [vmem:[#allocation29_spill] sm:$0xff] %v4335_v57  ;;  %v4337_v58 = vld [vmem:[#allocation11 + $0x60] ss:$16 sps:$4 sm:$0xff]   ;;  %v4339_v59 = vld [vmem:[#allocation11 + $0x68] ss:$16 sps:$4 sm:$0xff]  }
  0x6c   :  { %6167 = vst [vmem:[#allocation30_spill] sm:$0xff] %v4337_v58  ;;  %6168 = vst [vmem:[#allocation31_spill] sm:$0xff] %v4339_v59  ;;  %v4345_v60 = vld [vmem:[#allocation11 + $0x44] ss:$16 sps:$4 sm:$0xff]   ;;  %v4347_v61 = vld [vmem:[#allocation11 + $0x4c] ss:$16 sps:$4 sm:$0xff]  }
  0x6d   :  { %694 = vmatpush1.bf16.msra.mxu1 %v4229_v20  ;;  %6169 = vst [vmem:[#allocation32_spill] sm:$0xff] %v4345_v60  ;;  %6170 = vst [vmem:[#allocation33_spill] sm:$0xff] %v4347_v61  ;;  %v4349_v62 = vld [vmem:[#allocation11 + $0x40] ss:$16 sps:$4 sm:$0xff]   ;;  %v4351_v63 = vld [vmem:[#allocation11 + $0x48] ss:$16 sps:$4 sm:$0xff]  }
  0x6e   :  { %695 = vmatprep.subr.bf16.mxu1 %v4235_v22  ;;  %659 = vmatpush1.bf16.msra.mxu0 %v4243_v25  ;;  %6171 = vst [vmem:[#allocation34_spill] sm:$0xff] %v4349_v62  ;;  %6172 = vst [vmem:[#allocation35_spill] sm:$0xff] %v4351_v63  ;;  %v4357_v1 = vld [vmem:[#allocation11 + $0x24] ss:$16 sps:$4 sm:$0xff]   ;;  %v4359_v2 = vld [vmem:[#allocation11 + $0x2c] ss:$16 sps:$4 sm:$0xff]  }
  0x6f   :  { %660 = vmatprep.subr.bf16.mxu0 %v4249_v27  ;;  %6173 = vst [vmem:[#allocation36_spill] sm:$0xff] %v4357_v1  ;;  %6174 = vst [vmem:[#allocation37_spill] sm:$0xff] %v4359_v2  ;;  %v4361_v3 = vld [vmem:[#allocation11 + $0x20] ss:$16 sps:$4 sm:$0xff]   ;;  %v4363_v4 = vld [vmem:[#allocation11 + $0x28] ss:$16 sps:$4 sm:$0xff]  }
  0x70   :  { %6175 = vst [vmem:[#allocation38_spill] sm:$0xff] %v4361_v3  ;;  %6176 = vst [vmem:[#allocation39_spill] sm:$0xff] %v4363_v4  ;;  %v4369_v5 = vld [vmem:[#allocation11 + $0x4] ss:$16 sps:$4 sm:$0xff]   ;;  %v4371_v34 = vld [vmem:[#allocation11 + $0xc] ss:$16 sps:$4 sm:$0xff]  }
  0x71   :  { %696 = vmatpush1.bf16.msra.mxu1 %v4241_v24  ;;  %6177 = vst [vmem:[#allocation40_spill] sm:$0xff] %v4369_v5  ;;  %6178 = vst [vmem:[#allocation41_spill] sm:$0xff] %v4371_v34  ;;  %v4375_v0 = vld [vmem:[#allocation11 + $0x8] ss:$16 sps:$4 sm:$0xff]   ;;  %s4036_s23 = scalar_lea.vmem %s3072_s22, 160 }
  0x72   :  { %697 = vmatprep.subr.bf16.mxu1 %v4245_v26  ;;  %661 = vmatpush1.bf16.msra.mxu0 %v4253_v29  ;;  %6180 = vst [vmem:[#allocation43_spill] sm:$0xff] %v4375_v0  ;;  %p4037_p7 = scmp.ne.s32.totalorder %s3072_s22, %s4036_s23  ;;  %p4042_p9 = scmp.lt.s32.totalorder %s4036_s23, %s4036_s23 }
  0x73   :  { %662 = vmatprep.subr.bf16.mxu0 %v4257_v31 }
  0x74   :  { %p4043_p10 = por %p4042_p9, %p4041_p8 }
  0x75   :  { %698 = vmatpush1.bf16.msra.mxu1 %v4251_v28 }
  0x76   :  { %699 = vmatprep.subr.bf16.mxu1 %v4255_v30  ;;  %663 = vmatpush1.bf16.msra.mxu0 %v4265_v33  ;;  %p4044_p11 = pnand %p4043_p10, %p4037_p7 }
  0x77   :  { %1106 = vmatprep.subr.bf16.mxu0 %v4285_v40 }
  0x79   :  { %700 = vmatpush1.bf16.msra.mxu1 %v4263_v32  ;;  %681 = vmatmul.mubr.bf16.vlgmr.msra.gmra.mxu0 %v487_v37 }
  0x7a   :  { %701 = vmatprep.subr.bf16.mxu1 %v4267_v35  ;;  %1107 = vmatpush1.bf16.msra.mxu0 %v4289_v42 }
  0x7b   :  { %1108 = vmatprep.subr.bf16.mxu0 %v4297_v44 }
  0x7d   :  { %702 = vmatpush1.bf16.msra.mxu1 %v4273_v36 }
  0x7e   :  { %703 = vmatprep.subr.bf16.mxu1 %v4275_v38  ;;  %1109 = vmatpush1.bf16.msra.mxu0 %v4301_v46 }
  0x7f   :  { %1110 = vmatprep.subr.bf16.mxu0 %v4309_v48 }
  0x81   :  { %704 = vmatpush1.bf16.msra.mxu1 %v4280_v39 }
  0x82   :  { %1147 = vmatprep.subr.bf16.mxu1 %v4287_v41  ;;  %1111 = vmatpush1.bf16.msra.mxu0 %v4313_v50 }
  0x83   :  { %1112 = vmatprep.subr.bf16.mxu0 %v4321_v52 }
  0x84   :  { %722 = vmatmul.mubr.bf16.vlgmr.msra.gmra.mxu1 %v487_v37  ;;  %v4373_v37 = vld [vmem:[#allocation11] ss:$16 sps:$4 sm:$0xff]  }
  0x85   :  { %1148 = vmatpush1.bf16.msra.mxu1 %v4291_v43  ;;  %6179 = vst [vmem:[#allocation42_spill] sm:$0xff] %v4373_v37 }
  0x86   :  { %1149 = vmatprep.subr.bf16.mxu1 %v4299_v45  ;;  %1113 = vmatpush1.bf16.msra.mxu0 %v4325_v54 }
  0x87   :  { %1114 = vmatprep.subr.bf16.mxu0 %v4333_v56 }
  0x89   :  { %1150 = vmatpush1.bf16.msra.mxu1 %v4303_v47 }
  0x8a   :  { %1151 = vmatprep.subr.bf16.mxu1 %v4311_v49  ;;  %1115 = vmatpush1.bf16.msra.mxu0 %v4337_v58 }
  0x8b   :  { %1116 = vmatprep.subr.bf16.mxu0 %v4345_v60 }
  0x8d   :  { %1152 = vmatpush1.bf16.msra.mxu1 %v4315_v51 }
  0x8e   :  { %1153 = vmatprep.subr.bf16.mxu1 %v4323_v53  ;;  %1117 = vmatpush1.bf16.msra.mxu0 %v4349_v62  ;;  %v4391_v62 = vld [vmem:[#allocation11 + $0x1cc] ss:$16 sps:$4 sm:$0xff]  }
  0x8f   :  { %1118 = vmatprep.subr.bf16.mxu0 %v4357_v1  ;;  %v4387_v1 = vld [vmem:[#allocation11 + $0x1e8] ss:$16 sps:$4 sm:$0xff]   ;;  %6186 = vst [vmem:[#allocation49_spill] sm:$0xff] %v4391_v62 }
  0x90   :  { %6184 = vst [vmem:[#allocation47_spill] sm:$0xff] %v4387_v1 }
  0x91   :  { %1154 = vmatpush1.bf16.msra.mxu1 %v4327_v55 }
  0x92   :  { %1155 = vmatprep.subr.bf16.mxu1 %v4335_v57  ;;  %1119 = vmatpush1.bf16.msra.mxu0 %v4361_v3  ;;  %v4383_v3 = vld [vmem:[#allocation11 + $0x1ec] ss:$16 sps:$4 sm:$0xff]  }
  0x93   :  { %1120 = vmatprep.subr.bf16.mxu0 %v4369_v5  ;;  %6182 = vst [vmem:[#allocation45_spill] sm:$0xff] %v4383_v3  ;;  %v4405_v5 = vld [vmem:[#allocation11 + $0x1ac] ss:$16 sps:$4 sm:$0xff]  }
  0x94   :  { %6190 = vst [vmem:[#allocation53_spill] sm:$0xff] %v4405_v5 }
  0x95   :  { %1156 = vmatpush1.bf16.msra.mxu1 %v4339_v59 }
  0x96   :  { %1157 = vmatprep.subr.bf16.mxu1 %v4347_v61  ;;  %1121 = vmatpush1.bf16.msra.mxu0 %v4373_v37  ;;  %v4399_v37 = vld [vmem:[#allocation11 + $0x1c8] ss:$16 sps:$4 sm:$0xff]  }
  0x97   :  { %6188 = vst [vmem:[#allocation51_spill] sm:$0xff] %v4399_v37 }
  0x99   :  { %1158 = vmatpush1.bf16.msra.mxu1 %v4351_v63  ;;  %v4389_v63 = vld [vmem:[#allocation11 + $0x1c4] ss:$16 sps:$4 sm:$0xff]  }
  0x9a   :  { %1159 = vmatprep.subr.bf16.mxu1 %v4359_v2  ;;  %v4381_v2 = vld [vmem:[#allocation11 + $0x1e4] ss:$16 sps:$4 sm:$0xff]   ;;  %6185 = vst [vmem:[#allocation48_spill] sm:$0xff] %v4389_v63 }
  0x9b   :  { %6181 = vst [vmem:[#allocation44_spill] sm:$0xff] %v4381_v2  ;;  %1122 = vmatprep.subr.bf16.mxu0 %v4381_v2 }
  0x9d   :  { %1160 = vmatpush1.bf16.msra.mxu1 %v4363_v4  ;;  %v4385_v4 = vld [vmem:[#allocation11 + $0x1e0] ss:$16 sps:$4 sm:$0xff]  }
  0x9e   :  { %1161 = vmatprep.subr.bf16.mxu1 %v4371_v34  ;;  %6183 = vst [vmem:[#allocation46_spill] sm:$0xff] %v4385_v4  ;;  %1123 = vmatpush2.bf16.msra.mxu0 %v4385_v4  ;;  %v4403_v34 = vld [vmem:[#allocation11 + $0x1a4] ss:$16 sps:$4 sm:$0xff]   ;;  %v4411_v4 = vld [vmem:[#allocation11 + $0x1a8] ss:$16 sps:$4 sm:$0xff]  }
  0x9f   :  { %1124 = vmatprep.subr.bf16.mxu0 %v4389_v63  ;;  %6189 = vst [vmem:[#allocation52_spill] sm:$0xff] %v4403_v34  ;;  %6192 = vst [vmem:[#allocation55_spill] sm:$0xff] %v4411_v4  ;;  %v4417_v63 = vld [vmem:[#allocation11 + $0x18c] ss:$16 sps:$4 sm:$0xff]  }
  0xa0   :  { %6194 = vst [vmem:[#allocation57_spill] sm:$0xff] %v4417_v63 }
  0xa1   :  { %1162 = vmatpush1.bf16.msra.mxu1 %v4375_v0  ;;  %v4397_v0 = vld [vmem:[#allocation11 + $0x1c0] ss:$16 sps:$4 sm:$0xff]  }
  0xa2   :  { %1163 = vmatprep.subr.bf16.mxu1 %v4383_v3  ;;  %6187 = vst [vmem:[#allocation50_spill] sm:$0xff] %v4397_v0  ;;  %1125 = vmatpush2.bf16.msra.mxu0 %v4397_v0  ;;  %v4409_v3 = vld [vmem:[#allocation11 + $0x1a0] ss:$16 sps:$4 sm:$0xff]   ;;  %v4426_v0 = vld [vmem:[#allocation11 + $0x188] ss:$16 sps:$4 sm:$0xff]  }
  0xa3   :  { %6191 = vst [vmem:[#allocation54_spill] sm:$0xff] %v4409_v3  ;;  %1126 = vmatprep.subr.bf16.mxu0 %v4403_v34  ;;  %6196 = vst [vmem:[#allocation59_spill] sm:$0xff] %v4426_v0  ;;  %v4432_v34 = vld [vmem:[#allocation11 + $0x16c] ss:$16 sps:$4 sm:$0xff]  }
  0xa4   :  { %6198 = vst [vmem:[#allocation61_spill] sm:$0xff] %v4432_v34 }
  0xa5   :  { %1164 = vmatpush2.bf16.msra.mxu1 %v4387_v1  ;;  %v4415_v1 = vld [vmem:[#allocation11 + $0x184] ss:$16 sps:$4 sm:$0xff]  }
  0xa6   :  { %1165 = vmatprep.subr.bf16.mxu1 %v4391_v62  ;;  %6193 = vst [vmem:[#allocation56_spill] sm:$0xff] %v4415_v1  ;;  %v484_v62 = vld [vmem:[%s5794_s8] sm:$0x3]  ;;  %1127 = vmatpush2.bf16.msra.mxu0 %v4409_v3 }
  0xa7   :  { %v785_v2 = vpack.c.bf16 %v484_v62, %v484_v62  ;;  %1128 = vmatprep.subr.bf16.mxu0 %v4415_v1  ;;  %v4436_v62 = vld [vmem:[#allocation11 + $0x160] ss:$16 sps:$4 sm:$0xff]   ;;  %v4442_v1 = vld [vmem:[#allocation11 + $0x144] ss:$16 sps:$4 sm:$0xff]  }
  0xa8   :  { %6199 = vst [vmem:[#allocation62_spill] sm:$0xff] %v4436_v62  ;;  %6201 = vst [vmem:[#allocation64_spill] sm:$0xff] %v4442_v1 }
  0xa9   :  { %1166 = vmatpush2.bf16.msra.mxu1 %v4399_v37  ;;  %v4424_v37 = vld [vmem:[#allocation11 + $0x180] ss:$16 sps:$4 sm:$0xff]   ;;  %1138 = vmatprep.mubr.bf16.mxu0 %v785_v2 }
  0xaa   :  { %1167 = vmatprep.subr.bf16.mxu1 %v4405_v5  ;;  %6195 = vst [vmem:[#allocation58_spill] sm:$0xff] %v4424_v37  ;;  %v4430_v5 = vld [vmem:[#allocation11 + $0x164] ss:$16 sps:$4 sm:$0xff]   ;;  %1179 = vmatprep.mubr.bf16.mxu1 %v785_v2  ;;  %v4448_v2 = vld [vmem:[#allocation11 + $0x140] ss:$16 sps:$4 sm:$0xff]  }
  0xab   :  { %6197 = vst [vmem:[#allocation60_spill] sm:$0xff] %v4430_v5  ;;  %1129 = vmatpush2.bf16.msra.mxu0 %v4424_v37  ;;  %6203 = vst [vmem:[#allocation66_spill] sm:$0xff] %v4448_v2  ;;  %v4450_v37 = vld [vmem:[#allocation11 + $0x148] ss:$16 sps:$4 sm:$0xff]  }
  0xac   :  { %1130 = vmatprep.subr.bf16.mxu0 %v4430_v5  ;;  %6204 = vst [vmem:[#allocation67_spill] sm:$0xff] %v4450_v37  ;;  %v4456_v5 = vld [vmem:[#allocation11 + $0x12c] ss:$16 sps:$4 sm:$0xff]  }
  0xad   :  { %1168 = vmatpush2.bf16.msra.mxu1 %v4411_v4  ;;  %v4438_v4 = vld [vmem:[#allocation11 + $0x168] ss:$16 sps:$4 sm:$0xff]   ;;  %6206 = vst [vmem:[#allocation69_spill] sm:$0xff] %v4456_v5 }
  0xae   :  { %1169 = vmatprep.subr.bf16.mxu1 %v4417_v63  ;;  %6200 = vst [vmem:[#allocation63_spill] sm:$0xff] %v4438_v4  ;;  %v4444_v63 = vld [vmem:[#allocation11 + $0x14c] ss:$16 sps:$4 sm:$0xff]  }
  0xaf   :  { %6202 = vst [vmem:[#allocation65_spill] sm:$0xff] %v4444_v63  ;;  %1131 = vmatpush2.bf16.msra.mxu0 %v4436_v62  ;;  %v4462_v62 = vld [vmem:[#allocation11 + $0x128] ss:$16 sps:$4 sm:$0xff]  }
  0xb0   :  { %1132 = vmatprep.subr.bf16.mxu0 %v4442_v1  ;;  %6208 = vst [vmem:[#allocation71_spill] sm:$0xff] %v4462_v62  ;;  %v4468_v1 = vld [vmem:[#allocation11 + $0x10c] ss:$16 sps:$4 sm:$0xff]  }
  0xb1   :  { %1170 = vmatpush2.bf16.msra.mxu1 %v4426_v0  ;;  %v4454_v0 = vld [vmem:[#allocation11 + $0x124] ss:$16 sps:$4 sm:$0xff]   ;;  %6210 = vst [vmem:[#allocation73_spill] sm:$0xff] %v4468_v1 }
  0xb2   :  { %1171 = vmatprep.subr.bf16.mxu1 %v4432_v34  ;;  %6205 = vst [vmem:[#allocation68_spill] sm:$0xff] %v4454_v0  ;;  %v4460_v34 = vld [vmem:[#allocation11 + $0x120] ss:$16 sps:$4 sm:$0xff]  }
  0xb3   :  { %1133 = vmatpush2.bf16.msra.mxu0 %v4448_v2  ;;  %6207 = vst [vmem:[#allocation70_spill] sm:$0xff] %v4460_v34  ;;  %v4474_v2 = vld [vmem:[#allocation11 + $0x108] ss:$16 sps:$4 sm:$0xff]  }
  0xb4   :  { %1134 = vmatprep.subr.bf16.mxu0 %v4454_v0  ;;  %6212 = vst [vmem:[#allocation75_spill] sm:$0xff] %v4474_v2 }
  0xb5   :  { %1172 = vmatpush2.bf16.msra.mxu1 %v4438_v4  ;;  %v4466_v4 = vld [vmem:[#allocation11 + $0x104] ss:$16 sps:$4 sm:$0xff]  }
  0xb6   :  { %1173 = vmatprep.subr.bf16.mxu1 %v4444_v63  ;;  %6209 = vst [vmem:[#allocation72_spill] sm:$0xff] %v4466_v4  ;;  %v4472_v63 = vld [vmem:[#allocation11 + $0x100] ss:$16 sps:$4 sm:$0xff]  }
  0xb7   :  { %1135 = vmatpush2.bf16.msra.mxu0 %v4460_v34  ;;  %6211 = vst [vmem:[#allocation74_spill] sm:$0xff] %v4472_v63 }
  0xb8   :  { %1136 = vmatprep.subr.bf16.mxu0 %v4466_v4  ;;  %v140_v4 = vld [vmem:[%s5789_s3] sm:$0xf] }
  0xb9   :  { %1174 = vmatpush2.bf16.msra.mxu1 %v4450_v37 }
  0xba   :  { %1175 = vmatprep.subr.bf16.mxu1 %v4456_v5  ;;  %v142_v5 = vlaneseq }
  0xbb   :  { %1137 = vmatpush2.bf16.msra.mxu0 %v4472_v63 }
  0xbc   :  { %1212 = vmatprep.subr.bf16.mxu0 %v4185_v6  ;;  %v4482_v34 = vshrl.u32 %v142_v5, 7 }
  0xbd   :  { %1176 = vmatpush2.bf16.msra.mxu1 %v4462_v62 }
  0xbe   :  { %1177 = vmatprep.subr.bf16.mxu1 %v4468_v1  ;;  %v5902_v62 = vsub.s32 0, %v4482_v34  ;;  %v5903_v0 = vsub.s32 1, %v4482_v34  ;;  %v4078_v1 = vmov 1983009808   ;;  %v5914_v61 = vsub.s32 2, %v4482_v34 }
  0xbf   :  { %v5915_v60 = vsub.s32 3, %v4482_v34 }
  0xc0   :  { %v145_v63 = vrot.slane %v140_v4, %v5902_v62  ;;  %v153_v62 = vrot.slane %v140_v4, %v5914_v61 }
  0xc1   :  { %1178 = vmatpush2.bf16.msra.mxu1 %v4474_v2  ;;  %v149_v2 = vrot.slane %v140_v4, %v5903_v0  ;;  %v157_v0 = vrot.slane %v140_v4, %v5915_v60 }
  0xc2   :  { %1253 = vmatprep.subr.bf16.mxu1 %v4196_v10  ;;  %v290_v10 = vunpack.c.l.s4 %v4078_v1 }
  0xc4   :  { %v291_v56 = vunpack.c.0.s8 %v290_v10 }
 0x11c   :  { %v225_v6 = vpop.f32.mrf.mxu1 }
 0x11d   :  { %v226_v5 = vadd.f32 %v225_v6, %v145_v63 }
 0x11e   :  { %v227_v37 = vpop.f32.mrf.mxu1 }
 0x11f   :  { %v228_v3 = vadd.f32 %v227_v37, %v149_v2  ;;  %v4500_v37 = vsub.s32 %v291_v56, %v4482_v34 }
 0x120   :  { %v229_v59 = vpop.f32.mrf.mxu1 }
 0x121   :  { %v286_v58 = vcombine.high %v226_v5, %v228_v3  ;;  %v230_v57 = vadd.f32 %v229_v59, %v145_v63  ;;  %v285_v52 = vcombine.low %v226_v5, %v228_v3 }
 0x122   :  { %v231_v55 = vpop.f32.mrf.mxu1 }
 0x123   :  { %v232_v54 = vadd.f32 %v231_v55, %v149_v2  ;;  %v4503_v2 = vrot.slane %v285_v52, %v4500_v37  ;;  %v4506_v4 = vrot.slane %v286_v58, %v4500_v37 }
 0x124   :  { %v268_v1 = vpop.f32.mrf.mxu1 }
 0x125   :  { %v321_v53 = vcombine.low %v230_v57, %v232_v54  ;;  %v322_v6 = vcombine.high %v230_v57, %v232_v54  ;;  %v269_v50 = vadd.f32 %v268_v1, %v153_v62  ;;  %6213 = vst [vmem:[#allocation76_spill] sm:$0xff] %v4506_v4  ;;  %v6268_v4 = vld [vmem:[#allocation69_spill] sm:$0xff] }
 0x126   :  { %v270_v51 = vpop.f32.mrf.mxu1 }
 0x127   :  { %v271_v49 = vadd.f32 %v270_v51, %v157_v0  ;;  %v4521_v58 = vrot.slane %v321_v53, %v4500_v37 }
 0x128   :  { %v272_v59 = vpop.f32.mrf.mxu1 }
 0x129   :  { %v287_v10 = vcombine.low %v269_v50, %v271_v49  ;;  %v288_v63 = vcombine.high %v269_v50, %v271_v49  ;;  %v273_v55 = vadd.f32 %v272_v59, %v153_v62  ;;  %6215 = vst [vmem:[#allocation78_spill] sm:$0xff] %v4521_v58  ;;  %v4524_v62 = vrot.slane %v322_v6, %v4500_v37  ;;  %v6266_v58 = vld [vmem:[#allocation67_spill] sm:$0xff] }
 0x12a   :  { %v274_v61 = vpop.f32.mrf.mxu1 }
 0x12b   :  { %v4509_v54 = vrot.slane %v287_v10, %v4500_v37  ;;  %v4512_v56 = vrot.slane %v288_v63, %v4500_v37  ;;  %v275_v57 = vadd.f32 %v274_v61, %v157_v0  ;;  %6216 = vst [vmem:[#allocation79_spill] sm:$0xff] %v4524_v62  ;;  %v6265_v62 = vld [vmem:[#allocation66_spill] sm:$0xff] }
 0x12d   :  { %6214 = vst [vmem:[#allocation77_spill] sm:$0xff] %v4512_v56  ;;  %v323_v52 = vcombine.low %v273_v55, %v275_v57  ;;  %v324_v3 = vcombine.high %v273_v55, %v275_v57  ;;  %v317_v59 = vcombine.low %v4503_v2, %v4509_v54  ;;  %v6267_v56 = vld [vmem:[#allocation68_spill] sm:$0xff] }
 0x12f   :  { %v4527_v5 = vrot.slane %v323_v52, %v4500_v37  ;;  %v4530_v0 = vrot.slane %v324_v3, %v4500_v37 }
 0x131   :  { %6217 = vst [vmem:[#allocation80_spill] sm:$0xff] %v4527_v5  ;;  %6218 = vst [vmem:[#allocation81_spill] sm:$0xff] %v4530_v0 }
 0x139   :  { %v682_v6 = vpop.f32.mrf.mxu0 }
 0x13b   :  { %v684_v10 = vpop.f32.mrf.mxu0 }
 0x13c   :  { %v734_v52 = vcombine.low %v682_v6, %v684_v10 }
 0x13d   :  { %v686_v63 = vpop.f32.mrf.mxu0 }
 0x13e   :  { %v742_v61 = vrot.slane %v734_v52, %v4500_v37 }
 0x13f   :  { %v687_v55 = vpop.f32.mrf.mxu0 }
 0x144   :  { %v723_v57 = vpop.f32.mrf.mxu1 }
 0x146   :  { %v725_v3 = vpop.f32.mrf.mxu1 }
 0x147   :  { %v735_v50 = vcombine.low %v723_v57, %v725_v3 }
 0x148   :  { %v727_v49 = vpop.f32.mrf.mxu1 }
 0x149   :  { %v749_v51 = vrot.slane %v735_v50, %v4500_v37 }
 0x14a   :  { %v728_v1 = vpop.f32.mrf.mxu1 }
 0x14b   :  { %v750_v60 = vcombine.low %v742_v61, %v749_v51  ;;  %v485_v51 = vld [vmem:[#allocation10] sm:$0x3] }
 0x14d   :  { %v752_v5 = vadd.f32 %v750_v60, %v317_v59 }
 0x14f   :  { %v3122_v53 = vmul.f32 -1.442695, %v752_v5  ;;  %v760_v0 = vrot.slane %v752_v5, 2  ;;  %v771_v55 = vrot.slane %v752_v5, 6  ;;  %v768_v57 = vrot.slane %v752_v5, 4 }
 0x151   :  { %3448 = vpow2.f32 %v3122_v53  ;;  %v3123_v63 = vmul.f32 -1.442695, %v760_v0  ;;  %v3124_v6 = vmul.f32 -1.442695, %v771_v55 }
 0x153   :  { %3450 = vpow2.f32 %v3123_v63 }
 0x154   :  { %3452 = vpow2.f32 %v3124_v6 }
 0x15e   :  { %v3449_v10 = vpop.eup %3448 }
 0x15f   :  { %v756_v49 = vadd.f32 1.0, %v3449_v10 }
 0x160   :  { %v3451_v3 = vpop.eup %3450 }
 0x161   :  { %3454 = vrcp.f32 %v756_v49  ;;  %v765_v50 = vadd.f32 1.0, %v3451_v3  ;;  %v3453_v1 = vpop.eup %3452  ;;  %v6250_v49 = vld [vmem:[#allocation51_spill] sm:$0xff]  ;;  %v6251_v3 = vld [vmem:[#allocation52_spill] sm:$0xff] }
 0x162   :  { %3456 = vtanh.f32 %v768_v57  ;;  %v776_v59 = vadd.f32 1.0, %v3453_v1  ;;  %v6219_v57 = vmov 0   ;;  %v6253_v1 = vld [vmem:[#allocation54_spill] sm:$0xff] }
 0x163   :  { %3458 = vrcp.f32 %v765_v50  ;;  %v6252_v50 = vld [vmem:[#allocation53_spill] sm:$0xff] }
 0x164   :  { %3460 = vrcp.f32 %v776_v59  ;;  %v6258_v59 = vld [vmem:[#allocation59_spill] sm:$0xff] }
 0x16e   :  { %v3455_v52 = vpop.eup %3454 }
 0x16f   :  { %v3457_v60 = vpop.eup %3456 }
 0x170   :  { %v3459_v61 = vpop.eup %3458  ;;  %v780_v0 = vmul.f32 %v3457_v60, %v3455_v52  ;;  %v6254_v52 = vld [vmem:[#allocation55_spill] sm:$0xff]  ;;  %v6256_v60 = vld [vmem:[#allocation57_spill] sm:$0xff] }
 0x171   :  { %v779_v53 = vmul.f32 %v3459_v61, %v485_v51  ;;  %v3461_v5 = vpop.eup %3460  ;;  %v6255_v51 = vld [vmem:[#allocation56_spill] sm:$0xff]  ;;  %v6257_v61 = vld [vmem:[#allocation58_spill] sm:$0xff] }
 0x173   :  { %v4544_v63 = vadd.f32 %v780_v0, %v779_v53  ;;  %v6259_v53 = vld [vmem:[#allocation60_spill] sm:$0xff]  ;;  %v6260_v0 = vld [vmem:[#allocation61_spill] sm:$0xff] }
 0x175   :  { %3462 = vtanh.f32 %v4544_v63 }
 0x182   :  { %v3463_v55 = vpop.eup %3462 }
 0x183   :  { %v783_v6 = vmul.f32 %v3463_v55, %v3461_v5  ;;  %v6261_v5 = vld [vmem:[#allocation62_spill] sm:$0xff]  ;;  %v6262_v55 = vld [vmem:[#allocation63_spill] sm:$0xff] }
 0x185   :  { %v784_v10 = vpack.c.bf16 %v783_v6, %v783_v6  ;;  %v6263_v6 = vld [vmem:[#allocation64_spill] sm:$0xff] }
 0x187   :  { %1139 = vmatmul.mubr.bf16.vlgmr.msra.gmra.mxu0 %v784_v10  ;;  %1180 = vmatmul.mubr.bf16.vlgmr.msra.gmra.mxu1 %v784_v10 }
 0x188   :  { %1213 = vmatpush1.bf16.msra.mxu0 %v4187_v7  ;;  %1254 = vmatpush1.bf16.msra.mxu1 %v4204_v12  ;;  %v6220_v7 = vld [vmem:[#allocation21_spill] sm:$0xff] }
 0x189   :  { %1214 = vmatprep.subr.bf16.mxu0 %v4189_v8  ;;  %1255 = vmatprep.subr.bf16.mxu1 %v4209_v14  ;;  %v6221_v8 = vld [vmem:[#allocation22_spill] sm:$0xff]  ;;  %v6224_v12 = vld [vmem:[#allocation25_spill] sm:$0xff]  ;;  %v6226_v14 = vld [vmem:[#allocation27_spill] sm:$0xff] }
 0x18a   :  { %1244 = vmatprep.mubr.bf16.mxu0 %v6219_v57  ;;  %1285 = vmatprep.mubr.bf16.mxu1 %v6219_v57 }
 0x18c   :  { %1215 = vmatpush1.bf16.msra.mxu0 %v4194_v9  ;;  %1256 = vmatpush1.bf16.msra.mxu1 %v4216_v16  ;;  %v6222_v9 = vld [vmem:[#allocation23_spill] sm:$0xff]  ;;  %v6228_v16 = vld [vmem:[#allocation29_spill] sm:$0xff] }
 0x18d   :  { %1216 = vmatprep.subr.bf16.mxu0 %v4200_v11  ;;  %1257 = vmatprep.subr.bf16.mxu1 %v4222_v18  ;;  %v6223_v11 = vld [vmem:[#allocation24_spill] sm:$0xff]  ;;  %v6230_v18 = vld [vmem:[#allocation31_spill] sm:$0xff] }
 0x190   :  { %1217 = vmatpush1.bf16.msra.mxu0 %v4206_v13  ;;  %1258 = vmatpush1.bf16.msra.mxu1 %v4229_v20  ;;  %v6225_v13 = vld [vmem:[#allocation26_spill] sm:$0xff]  ;;  %v6232_v20 = vld [vmem:[#allocation33_spill] sm:$0xff] }
 0x191   :  { %1218 = vmatprep.subr.bf16.mxu0 %v4211_v15  ;;  %1259 = vmatprep.subr.bf16.mxu1 %v4235_v22  ;;  %v6227_v15 = vld [vmem:[#allocation28_spill] sm:$0xff]  ;;  %v6234_v22 = vld [vmem:[#allocation35_spill] sm:$0xff] }
 0x194   :  { %1219 = vmatpush1.bf16.msra.mxu0 %v4218_v17  ;;  %1260 = vmatpush1.bf16.msra.mxu1 %v4241_v24  ;;  %v6229_v17 = vld [vmem:[#allocation30_spill] sm:$0xff]  ;;  %v6236_v24 = vld [vmem:[#allocation37_spill] sm:$0xff] }
 0x195   :  { %1220 = vmatprep.subr.bf16.mxu0 %v4224_v19  ;;  %1261 = vmatprep.subr.bf16.mxu1 %v4245_v26  ;;  %v6231_v19 = vld [vmem:[#allocation32_spill] sm:$0xff]  ;;  %v6238_v26 = vld [vmem:[#allocation39_spill] sm:$0xff] }
 0x198   :  { %1221 = vmatpush1.bf16.msra.mxu0 %v4231_v21  ;;  %1262 = vmatpush1.bf16.msra.mxu1 %v4251_v28  ;;  %v6233_v21 = vld [vmem:[#allocation34_spill] sm:$0xff]  ;;  %v6240_v28 = vld [vmem:[#allocation41_spill] sm:$0xff] }
 0x199   :  { %1222 = vmatprep.subr.bf16.mxu0 %v4237_v23  ;;  %1263 = vmatprep.subr.bf16.mxu1 %v4255_v30  ;;  %v6235_v23 = vld [vmem:[#allocation36_spill] sm:$0xff]  ;;  %v6242_v30 = vld [vmem:[#allocation43_spill] sm:$0xff] }
 0x19c   :  { %1223 = vmatpush1.bf16.msra.mxu0 %v4243_v25  ;;  %1264 = vmatpush1.bf16.msra.mxu1 %v4263_v32  ;;  %v6237_v25 = vld [vmem:[#allocation38_spill] sm:$0xff]  ;;  %v6244_v32 = vld [vmem:[#allocation45_spill] sm:$0xff] }
 0x19d   :  { %1224 = vmatprep.subr.bf16.mxu0 %v4249_v27  ;;  %1265 = vmatprep.subr.bf16.mxu1 %v4267_v35  ;;  %v6239_v27 = vld [vmem:[#allocation40_spill] sm:$0xff]  ;;  %v6246_v35 = vld [vmem:[#allocation47_spill] sm:$0xff] }
 0x1a0   :  { %1225 = vmatpush1.bf16.msra.mxu0 %v4253_v29  ;;  %1266 = vmatpush1.bf16.msra.mxu1 %v4273_v36  ;;  %v6241_v29 = vld [vmem:[#allocation42_spill] sm:$0xff]  ;;  %v6247_v36 = vld [vmem:[#allocation48_spill] sm:$0xff] }
 0x1a1   :  { %1226 = vmatprep.subr.bf16.mxu0 %v4257_v31  ;;  %1267 = vmatprep.subr.bf16.mxu1 %v4275_v38  ;;  %v6243_v31 = vld [vmem:[#allocation44_spill] sm:$0xff]  ;;  %v6248_v38 = vld [vmem:[#allocation49_spill] sm:$0xff] }
 0x1a4   :  { %1227 = vmatpush1.bf16.msra.mxu0 %v4265_v33  ;;  %1268 = vmatpush1.bf16.msra.mxu1 %v4280_v39  ;;  %v6245_v33 = vld [vmem:[#allocation46_spill] sm:$0xff] }
 0x1a5   :  { %1350 = vmatprep.subr.bf16.mxu0 %v4285_v40  ;;  %1391 = vmatprep.subr.bf16.mxu1 %v4287_v41  ;;  %v6249_v39 = vld [vmem:[#allocation50_spill] sm:$0xff] }
 0x1a7   :  { %1245 = vmatmul.mubr.bf16.vlgmr.msra.gmra.mxu0 %v784_v10  ;;  %1286 = vmatmul.mubr.bf16.vlgmr.msra.gmra.mxu1 %v784_v10  ;;  %v6264_v10 = vld [vmem:[#allocation65_spill] sm:$0xff] }
 0x1a8   :  { %1351 = vmatpush1.bf16.msra.mxu0 %v4289_v42  ;;  %1392 = vmatpush1.bf16.msra.mxu1 %v4291_v43 }
 0x1a9   :  { %1352 = vmatprep.subr.bf16.mxu0 %v4297_v44  ;;  %1393 = vmatprep.subr.bf16.mxu1 %v4299_v45 }
 0x1ac   :  { %1353 = vmatpush1.bf16.msra.mxu0 %v4301_v46  ;;  %1394 = vmatpush1.bf16.msra.mxu1 %v4303_v47 }
 0x1ad   :  { %1354 = vmatprep.subr.bf16.mxu0 %v4309_v48  ;;  %1395 = vmatprep.subr.bf16.mxu1 %v6220_v7 }
 0x1b0   :  { %1355 = vmatpush1.bf16.msra.mxu0 %v6221_v8  ;;  %1396 = vmatpush1.bf16.msra.mxu1 %v6222_v9 }
 0x1b1   :  { %1356 = vmatprep.subr.bf16.mxu0 %v6223_v11  ;;  %1397 = vmatprep.subr.bf16.mxu1 %v6224_v12 }
 0x1b4   :  { %1357 = vmatpush1.bf16.msra.mxu0 %v6225_v13  ;;  %1398 = vmatpush1.bf16.msra.mxu1 %v6226_v14 }
 0x1b5   :  { %1358 = vmatprep.subr.bf16.mxu0 %v6227_v15  ;;  %1399 = vmatprep.subr.bf16.mxu1 %v6228_v16 }
 0x1b8   :  { %1359 = vmatpush1.bf16.msra.mxu0 %v6229_v17  ;;  %1400 = vmatpush1.bf16.msra.mxu1 %v6230_v18 }
 0x1b9   :  { %1360 = vmatprep.subr.bf16.mxu0 %v6231_v19  ;;  %1401 = vmatprep.subr.bf16.mxu1 %v6232_v20 }
 0x1bc   :  { %1361 = vmatpush1.bf16.msra.mxu0 %v6233_v21  ;;  %1402 = vmatpush1.bf16.msra.mxu1 %v6234_v22 }
 0x1bd   :  { %1362 = vmatprep.subr.bf16.mxu0 %v6235_v23  ;;  %1403 = vmatprep.subr.bf16.mxu1 %v6236_v24 }
 0x1c0   :  { %1363 = vmatpush1.bf16.msra.mxu0 %v6237_v25  ;;  %1404 = vmatpush1.bf16.msra.mxu1 %v6238_v26 }
 0x1c1   :  { %1364 = vmatprep.subr.bf16.mxu0 %v6239_v27  ;;  %1405 = vmatprep.subr.bf16.mxu1 %v6240_v28 }
 0x1c4   :  { %1365 = vmatpush1.bf16.msra.mxu0 %v6241_v29  ;;  %1406 = vmatpush1.bf16.msra.mxu1 %v6242_v30 }
 0x1c5   :  { %1366 = vmatprep.subr.bf16.mxu0 %v6243_v31  ;;  %1407 = vmatprep.subr.bf16.mxu1 %v6244_v32 }
 0x1c8   :  { %1367 = vmatpush2.bf16.msra.mxu0 %v6245_v33  ;;  %1408 = vmatpush2.bf16.msra.mxu1 %v6246_v35 }
 0x1c9   :  { %1368 = vmatprep.subr.bf16.mxu0 %v6247_v36  ;;  %1409 = vmatprep.subr.bf16.mxu1 %v6248_v38 }
 0x1cc   :  { %1369 = vmatpush2.bf16.msra.mxu0 %v6249_v39  ;;  %1410 = vmatpush2.bf16.msra.mxu1 %v6250_v49 }
 0x1cd   :  { %1370 = vmatprep.subr.bf16.mxu0 %v6251_v3  ;;  %1411 = vmatprep.subr.bf16.mxu1 %v6252_v50  ;;  %v6281_v50 = vsub.s32 3, %v4482_v34 }
 0x1d0   :  { %1371 = vmatpush2.bf16.msra.mxu0 %v6253_v1  ;;  %1412 = vmatpush2.bf16.msra.mxu1 %v6254_v52 }
 0x1d1   :  { %1372 = vmatprep.subr.bf16.mxu0 %v6255_v51  ;;  %1413 = vmatprep.subr.bf16.mxu1 %v6256_v60 }
 0x1d4   :  { %1373 = vmatpush2.bf16.msra.mxu0 %v6257_v61  ;;  %1414 = vmatpush2.bf16.msra.mxu1 %v6258_v59  ;;  %v6269_v59 = vld [vmem:[#allocation70_spill] sm:$0xff] }
 0x1d5   :  { %1374 = vmatprep.subr.bf16.mxu0 %v6259_v53  ;;  %1415 = vmatprep.subr.bf16.mxu1 %v6260_v0  ;;  %v6270_v53 = vld [vmem:[#allocation71_spill] sm:$0xff]  ;;  %v6271_v0 = vld [vmem:[#allocation72_spill] sm:$0xff] }
 0x1d8   :  { %1375 = vmatpush2.bf16.msra.mxu0 %v6261_v5  ;;  %1416 = vmatpush2.bf16.msra.mxu1 %v6262_v55  ;;  %v6272_v5 = vld [vmem:[#allocation73_spill] sm:$0xff]  ;;  %v6273_v55 = vld [vmem:[#allocation74_spill] sm:$0xff] }
 0x1d9   :  { %1376 = vmatprep.subr.bf16.mxu0 %v6263_v6  ;;  %1417 = vmatprep.subr.bf16.mxu1 %v6264_v10  ;;  %v6274_v6 = vld [vmem:[#allocation75_spill] sm:$0xff] }
 0x1da   :  { %v4643_v10 = vld [vmem:[#allocation7 + $0xe4] ss:$16 sps:$4 sm:$0xff]  }
 0x1db   :  { %6275 = vst [vmem:[#allocation21_spill] sm:$0xff] %v4643_v10 }
 0x1dc   :  { %1377 = vmatpush2.bf16.msra.mxu0 %v6265_v62  ;;  %1418 = vmatpush2.bf16.msra.mxu1 %v6266_v58  ;;  %v6276_v58 = vld [vmem:[#allocation20_spill] sm:$0xff] }
 0x1dd   :  { %1378 = vmatprep.subr.bf16.mxu0 %v6267_v56  ;;  %1419 = vmatprep.subr.bf16.mxu1 %v6268_v4 }
 0x1e0   :  { %1379 = vmatpush2.bf16.msra.mxu0 %v6269_v59  ;;  %1420 = vmatpush2.bf16.msra.mxu1 %v6270_v53  ;;  %v461_v59 = vld [vmem:[%s5793_s7] sm:$0xf]  ;;  %v6277_v53 = vsub.s32 0, %v4482_v34 }
 0x1e1   :  { %1380 = vmatprep.subr.bf16.mxu0 %v6271_v0  ;;  %1421 = vmatprep.subr.bf16.mxu1 %v6272_v5  ;;  %v6279_v5 = vsub.s32 1, %v4482_v34 }
 0x1e2   :  { %v4652_v4 = vrot.slane %v461_v59, %v6277_v53 }
 0x1e3   :  { %v4656_v0 = vrot.slane %v461_v59, %v6279_v5  ;;  %v4662_v5 = vrot.slane %v461_v59, %v6281_v50 }
 0x1e4   :  { %1381 = vmatpush2.bf16.msra.mxu0 %v6273_v55  ;;  %1422 = vmatpush2.bf16.msra.mxu1 %v6274_v6  ;;  %6278 = vst [vmem:[#allocation22_spill] sm:$0xff] %v4652_v4 }
 0x1e5   :  { %1456 = vmatprep.subr.bf16.mxu0 %v4643_v10  ;;  %1497 = vmatprep.subr.bf16.mxu1 %v6276_v58  ;;  %6280 = vst [vmem:[#allocation23_spill] sm:$0xff] %v4656_v0  ;;  %6282 = vst [vmem:[#allocation24_spill] sm:$0xff] %v4662_v5 }
 0x247   :  { %v1140_v55 = vpop.f32.mrf.mxu0  ;;  %v1181_v6 = vpop.f32.mrf.mxu1 }
 0x248   :  { %v1141_v56 = vadd.f32 %v1140_v55, %v4652_v4  ;;  %v6283_v55 = vsub.s32 2, %v4482_v34  ;;  %v486_v34 = vld [vmem:[%s5795_s9] sm:$0x3] }
 0x249   :  { %v1142_v62 = vpop.f32.mrf.mxu0  ;;  %v1183_v10 = vpop.f32.mrf.mxu1 }
 0x24a   :  { %v3189_v61 = vmul.f32 -1.442695, %v1141_v56  ;;  %v1143_v58 = vadd.f32 %v1142_v62, %v4656_v0  ;;  %v1184_v3 = vadd.f32 %v1183_v10, %v4662_v5  ;;  %v4667_v4 = vrot.slane %v461_v59, %v6283_v55 }
 0x24b   :  { %v1144_v60 = vpop.f32.mrf.mxu0  ;;  %v1185_v51 = vpop.f32.mrf.mxu1 }
 0x24c   :  { %3464 = vpow2.f32 %v3189_v61  ;;  %v3190_v52 = vmul.f32 -1.442695, %v1143_v58  ;;  %6284 = vst [vmem:[#allocation25_spill] sm:$0xff] %v4667_v4  ;;  %v3191_v56 = vmul.f32 -1.442695, %v1184_v3  ;;  %v1182_v62 = vadd.f32 %v1181_v6, %v4667_v4 }
 0x24d   :  { %v1145_v1 = vpop.f32.mrf.mxu0  ;;  %v1186_v53 = vpop.f32.mrf.mxu1 }
 0x24e   :  { %3466 = vpow2.f32 %v3190_v52 }
 0x24f   :  { %3468 = vpow2.f32 %v3191_v56 }
 0x259   :  { %v3465_v49 = vpop.eup %3464 }
 0x25a   :  { %v1191_v51 = vadd.f32 1.0, %v3465_v49 }
 0x25b   :  { %v3467_v60 = vpop.eup %3466 }
 0x25c   :  { %3470 = vrcp.f32 %v1191_v51  ;;  %v1197_v1 = vadd.f32 1.0, %v3467_v60  ;;  %v3469_v61 = vpop.eup %3468 }
 0x25d   :  { %3472 = vtanh.f32 %v1182_v62  ;;  %v1204_v55 = vadd.f32 1.0, %v3469_v61 }
 0x25e   :  { %3474 = vrcp.f32 %v1197_v1 }
 0x25f   :  { %3476 = vrcp.f32 %v1204_v55 }
 0x267   :  { %v1246_v52 = vpop.f32.mrf.mxu0  ;;  %v1287_v50 = vpop.f32.mrf.mxu1 }
 0x269   :  { %v3471_v58 = vpop.eup %3470  ;;  %v1248_v59 = vpop.f32.mrf.mxu0 }
 0x26a   :  { %v1289_v3 = vpop.f32.mrf.mxu1  ;;  %v3473_v10 = vpop.eup %3472  ;;  %v1298_v53 = vcombine.low %v1246_v52, %v1248_v59  ;;  %v6285_v52 = vcombine.high %v4503_v2, %v4509_v54 }
 0x26b   :  { %v1299_v6 = vcombine.low %v1287_v50, %v1289_v3  ;;  %v3475_v49 = vpop.eup %3474  ;;  %v1250_v56 = vpop.f32.mrf.mxu0  ;;  %v1208_v60 = vmul.f32 %v3473_v10, %v3471_v58 }
 0x26c   :  { %v1291_v51 = vpop.f32.mrf.mxu1  ;;  %v1207_v62 = vmul.f32 %v3475_v49, %v486_v34  ;;  %v1306_v1 = vrot.slane %v1298_v53, %v4500_v37  ;;  %v3477_v3 = vpop.eup %3476 }
 0x26d   :  { %v1313_v4 = vrot.slane %v1299_v6, %v4500_v37  ;;  %v1251_v5 = vpop.f32.mrf.mxu0 }
 0x26e   :  { %v1292_v0 = vpop.f32.mrf.mxu1  ;;  %v4675_v38 = vadd.f32 %v1208_v60, %v1207_v62 }
 0x26f   :  { %v1314_v39 = vcombine.low %v1306_v1, %v1313_v4 }
 0x270   :  { %3478 = vtanh.f32 %v4675_v38 }
 0x271   :  { %v1316_v50 = vadd.f32 %v1314_v39, %v6285_v52 }
 0x273   :  { %v3192_v61 = vmul.f32 -1.442695, %v1316_v50  ;;  %v1324_v59 = vrot.slane %v1316_v50, 2  ;;  %v1335_v34 = vrot.slane %v1316_v50, 6  ;;  %v1332_v6 = vrot.slane %v1316_v50, 4 }
 0x275   :  { %3480 = vpow2.f32 %v3192_v61  ;;  %v3193_v58 = vmul.f32 -1.442695, %v1324_v59  ;;  %v3194_v0 = vmul.f32 -1.442695, %v1335_v34  ;;  %v4689_v34 = vld [vmem:[#allocation7 + $0xe0] ss:$16 sps:$4 sm:$0xff]  }
 0x277   :  { %3482 = vpow2.f32 %v3193_v58 }
 0x278   :  { %3484 = vpow2.f32 %v3194_v0  ;;  %v4706_v0 = vld [vmem:[#allocation7 + $0xc8] ss:$16 sps:$4 sm:$0xff]  }
 0x27d   :  { %v3479_v10 = vpop.eup %3478 }
 0x27e   :  { %v1211_v5 = vmul.f32 %v3479_v10, %v3477_v3  ;;  %v4695_v3 = vld [vmem:[#allocation7 + $0xc4] ss:$16 sps:$4 sm:$0xff]   ;;  %v4698_v10 = vld [vmem:[#allocation7 + $0xcc] ss:$16 sps:$4 sm:$0xff]  }
 0x280   :  { %v1349_v4 = vpack.c.bf16 %v1211_v5, %v1211_v5  ;;  %v4703_v5 = vld [vmem:[#allocation7 + $0xc0] ss:$16 sps:$4 sm:$0xff]  }
 0x282   :  { %v3481_v53 = vpop.eup %3480  ;;  %1382 = vmatprep.mubr.bf16.mxu0 %v1349_v4  ;;  %1423 = vmatprep.mubr.bf16.mxu1 %v1349_v4  ;;  %v4709_v4 = vld [vmem:[#allocation7 + $0xa4] ss:$16 sps:$4 sm:$0xff]  }
 0x283   :  { %v1320_v49 = vadd.f32 1.0, %v3481_v53  ;;  %v4712_v53 = vld [vmem:[#allocation7 + $0xac] ss:$16 sps:$4 sm:$0xff]  }
 0x284   :  { %v3483_v2 = vpop.eup %3482 }
 0x285   :  { %3486 = vrcp.f32 %v1320_v49  ;;  %v1329_v54 = vadd.f32 1.0, %v3483_v2  ;;  %v3485_v39 = vpop.eup %3484  ;;  %v4718_v49 = vld [vmem:[#allocation7 + $0xa8] ss:$16 sps:$4 sm:$0xff]   ;;  %v4721_v2 = vld [vmem:[#allocation7 + $0x84] ss:$16 sps:$4 sm:$0xff]  }
 0x286   :  { %3488 = vtanh.f32 %v1332_v6  ;;  %v1340_v60 = vadd.f32 1.0, %v3485_v39  ;;  %v4715_v6 = vld [vmem:[#allocation7 + $0xa0] ss:$16 sps:$4 sm:$0xff]  }
 0x287   :  { %3490 = vrcp.f32 %v1329_v54  ;;  %v4724_v54 = vld [vmem:[#allocation7 + $0x8c] ss:$16 sps:$4 sm:$0xff]   ;;  %v4727_v39 = vld [vmem:[#allocation7 + $0x80] ss:$16 sps:$4 sm:$0xff]  }
 0x288   :  { %3492 = vrcp.f32 %v1340_v60  ;;  %v4739_v60 = vld [vmem:[#allocation7 + $0x60] ss:$16 sps:$4 sm:$0xff]  }
 0x289   :  { %6286 = vst [vmem:[#allocation26_spill] sm:$0xff] %v4739_v60 }
 0x292   :  { %v3487_v55 = vpop.eup %3486 }
 0x293   :  { %v3489_v56 = vpop.eup %3488 }
 0x294   :  { %v3491_v51 = vpop.eup %3490  ;;  %v1344_v1 = vmul.f32 %v3489_v56, %v3487_v55  ;;  %v4730_v55 = vld [vmem:[#allocation7 + $0x88] ss:$16 sps:$4 sm:$0xff]   ;;  %v4733_v56 = vld [vmem:[#allocation7 + $0x64] ss:$16 sps:$4 sm:$0xff]  }
 0x295   :  { %v1343_v62 = vmul.f32 %v3491_v51, %v4544_v63  ;;  %v3493_v50 = vpop.eup %3492  ;;  %v4692_v63 = vld [vmem:[#allocation7 + $0xe8] ss:$16 sps:$4 sm:$0xff]   ;;  %v4736_v51 = vld [vmem:[#allocation7 + $0x6c] ss:$16 sps:$4 sm:$0xff]  }
 0x297   :  { %v4682_v52 = vadd.f32 %v1344_v1, %v1343_v62  ;;  %v4742_v62 = vld [vmem:[#allocation7 + $0x68] ss:$16 sps:$4 sm:$0xff]   ;;  %v4745_v1 = vld [vmem:[#allocation7 + $0x44] ss:$16 sps:$4 sm:$0xff]  }
 0x298   :  { %6287 = vst [vmem:[#allocation27_spill] sm:$0xff] %v4742_v62  ;;  %6288 = vst [vmem:[#allocation28_spill] sm:$0xff] %v4745_v1 }
 0x299   :  { %3494 = vtanh.f32 %v4682_v52 }
 0x2a6   :  { %v3495_v61 = vpop.eup %3494 }
 0x2a7   :  { %v1347_v59 = vmul.f32 %v3495_v61, %v3493_v50  ;;  %v4748_v50 = vld [vmem:[#allocation7 + $0x4c] ss:$16 sps:$4 sm:$0xff]   ;;  %v4751_v61 = vld [vmem:[#allocation7 + $0x40] ss:$16 sps:$4 sm:$0xff]  }
 0x2a8   :  { %6289 = vst [vmem:[#allocation29_spill] sm:$0xff] %v4748_v50  ;;  %6290 = vst [vmem:[#allocation30_spill] sm:$0xff] %v4751_v61 }
 0x2a9   :  { %v4685_v58 = vpack.c.bf16 %v1347_v59, %v1347_v59  ;;  %v4754_v59 = vld [vmem:[#allocation7 + $0x48] ss:$16 sps:$4 sm:$0xff]  }
 0x2aa   :  { %6291 = vst [vmem:[#allocation31_spill] sm:$0xff] %v4754_v59 }
 0x2ab   :  { %1383 = vmatmul.mubr.bf16.vlgmr.msra.gmra.mxu0 %v4685_v58  ;;  %1424 = vmatmul.mubr.bf16.vlgmr.msra.gmra.mxu1 %v4685_v58 }
 0x2ac   :  { %1457 = vmatpush1.bf16.msra.mxu0 %v4689_v34  ;;  %1498 = vmatpush1.bf16.msra.mxu1 %v4692_v63 }
 0x2ad   :  { %1458 = vmatprep.subr.bf16.mxu0 %v4695_v3  ;;  %1499 = vmatprep.subr.bf16.mxu1 %v4698_v10 }
 0x2ae   :  { %1488 = vmatprep.mubr.bf16.mxu0 %v6219_v57  ;;  %1529 = vmatprep.mubr.bf16.mxu1 %v6219_v57 }
 0x2b0   :  { %1459 = vmatpush1.bf16.msra.mxu0 %v4703_v5  ;;  %1500 = vmatpush1.bf16.msra.mxu1 %v4706_v0 }
 0x2b1   :  { %1460 = vmatprep.subr.bf16.mxu0 %v4709_v4  ;;  %1501 = vmatprep.subr.bf16.mxu1 %v4712_v53 }
 0x2b4   :  { %1461 = vmatpush1.bf16.msra.mxu0 %v4715_v6  ;;  %1502 = vmatpush1.bf16.msra.mxu1 %v4718_v49 }
 0x2b5   :  { %1462 = vmatprep.subr.bf16.mxu0 %v4721_v2  ;;  %1503 = vmatprep.subr.bf16.mxu1 %v4724_v54 }
 0x2b8   :  { %1463 = vmatpush1.bf16.msra.mxu0 %v4727_v39  ;;  %1504 = vmatpush1.bf16.msra.mxu1 %v4730_v55 }
 0x2b9   :  { %1464 = vmatprep.subr.bf16.mxu0 %v4733_v56  ;;  %1505 = vmatprep.subr.bf16.mxu1 %v4736_v51 }
 0x2bc   :  { %1465 = vmatpush1.bf16.msra.mxu0 %v4739_v60  ;;  %1506 = vmatpush1.bf16.msra.mxu1 %v4742_v62  ;;  %v4757_v60 = vld [vmem:[#allocation7 + $0x24] ss:$16 sps:$4 sm:$0xff]   ;;  %v4760_v62 = vld [vmem:[#allocation7 + $0x2c] ss:$16 sps:$4 sm:$0xff]  }
 0x2bd   :  { %1466 = vmatprep.subr.bf16.mxu0 %v4745_v1  ;;  %1507 = vmatprep.subr.bf16.mxu1 %v4748_v50  ;;  %6292 = vst [vmem:[#allocation32_spill] sm:$0xff] %v4757_v60  ;;  %6293 = vst [vmem:[#allocation33_spill] sm:$0xff] %v4760_v62  ;;  %v4763_v1 = vld [vmem:[#allocation7 + $0x20] ss:$16 sps:$4 sm:$0xff]   ;;  %v4766_v50 = vld [vmem:[#allocation7 + $0x28] ss:$16 sps:$4 sm:$0xff]  }
 0x2c0   :  { %1467 = vmatpush1.bf16.msra.mxu0 %v4751_v61  ;;  %1508 = vmatpush1.bf16.msra.mxu1 %v4754_v59  ;;  %v4769_v61 = vld [vmem:[#allocation7 + $0x4] ss:$16 sps:$4 sm:$0xff]   ;;  %v4772_v59 = vld [vmem:[#allocation7 + $0xc] ss:$16 sps:$4 sm:$0xff]  }
 0x2c1   :  { %1468 = vmatprep.subr.bf16.mxu0 %v4757_v60  ;;  %1509 = vmatprep.subr.bf16.mxu1 %v4760_v62  ;;  %v4775_v60 = vld [vmem:[#allocation7] ss:$16 sps:$4 sm:$0xff]   ;;  %v4778_v62 = vld [vmem:[#allocation7 + $0x8] ss:$16 sps:$4 sm:$0xff]  }
 0x2c4   :  { %1469 = vmatpush1.bf16.msra.mxu0 %v4763_v1  ;;  %1510 = vmatpush1.bf16.msra.mxu1 %v4766_v50 }
 0x2c5   :  { %1470 = vmatprep.subr.bf16.mxu0 %v4769_v61  ;;  %1511 = vmatprep.subr.bf16.mxu1 %v4772_v59 }
 0x2c8   :  { %1471 = vmatpush1.bf16.msra.mxu0 %v4775_v60  ;;  %1512 = vmatpush1.bf16.msra.mxu1 %v4778_v62 }
 0x2c9   :  { %1594 = vmatprep.subr.bf16.mxu0 %v4285_v40  ;;  %1635 = vmatprep.subr.bf16.mxu1 %v4287_v41  ;;  %v6294_v40 = vld [vmem:[#allocation49_spill] sm:$0xff]  ;;  %v6295_v41 = vld [vmem:[#allocation50_spill] sm:$0xff] }
 0x2cb   :  { %1489 = vmatmul.mubr.bf16.vlgmr.msra.gmra.mxu0 %v4685_v58  ;;  %1530 = vmatmul.mubr.bf16.vlgmr.msra.gmra.mxu1 %v4685_v58 }
 0x2cc   :  { %1595 = vmatpush1.bf16.msra.mxu0 %v4289_v42  ;;  %1636 = vmatpush1.bf16.msra.mxu1 %v4291_v43  ;;  %v6296_v42 = vld [vmem:[#allocation51_spill] sm:$0xff]  ;;  %v6297_v43 = vld [vmem:[#allocation52_spill] sm:$0xff] }
 0x2cd   :  { %1596 = vmatprep.subr.bf16.mxu0 %v4297_v44  ;;  %1637 = vmatprep.subr.bf16.mxu1 %v4299_v45  ;;  %v6298_v44 = vld [vmem:[#allocation53_spill] sm:$0xff]  ;;  %v6299_v45 = vld [vmem:[#allocation54_spill] sm:$0xff] }
 0x2d0   :  { %1597 = vmatpush1.bf16.msra.mxu0 %v4301_v46  ;;  %1638 = vmatpush1.bf16.msra.mxu1 %v4303_v47  ;;  %v6300_v46 = vld [vmem:[#allocation55_spill] sm:$0xff]  ;;  %v6301_v47 = vld [vmem:[#allocation56_spill] sm:$0xff] }
 0x2d1   :  { %1598 = vmatprep.subr.bf16.mxu0 %v4309_v48  ;;  %1639 = vmatprep.subr.bf16.mxu1 %v6220_v7  ;;  %v6302_v48 = vld [vmem:[#allocation57_spill] sm:$0xff]  ;;  %v6303_v7 = vld [vmem:[#allocation58_spill] sm:$0xff] }
 0x2d4   :  { %1599 = vmatpush1.bf16.msra.mxu0 %v6221_v8  ;;  %1640 = vmatpush1.bf16.msra.mxu1 %v6222_v9  ;;  %v6304_v8 = vld [vmem:[#allocation59_spill] sm:$0xff]  ;;  %v6305_v9 = vld [vmem:[#allocation60_spill] sm:$0xff] }
 0x2d5   :  { %1600 = vmatprep.subr.bf16.mxu0 %v6223_v11  ;;  %1641 = vmatprep.subr.bf16.mxu1 %v6224_v12  ;;  %v6306_v11 = vld [vmem:[#allocation61_spill] sm:$0xff]  ;;  %v6307_v12 = vld [vmem:[#allocation62_spill] sm:$0xff] }
 0x2d8   :  { %1601 = vmatpush1.bf16.msra.mxu0 %v6225_v13  ;;  %1642 = vmatpush1.bf16.msra.mxu1 %v6226_v14  ;;  %v6308_v13 = vld [vmem:[#allocation63_spill] sm:$0xff]  ;;  %v6309_v14 = vld [vmem:[#allocation64_spill] sm:$0xff] }
 0x2d9   :  { %1602 = vmatprep.subr.bf16.mxu0 %v6227_v15  ;;  %1643 = vmatprep.subr.bf16.mxu1 %v6228_v16  ;;  %v6310_v15 = vld [vmem:[#allocation65_spill] sm:$0xff]  ;;  %v6311_v16 = vld [vmem:[#allocation66_spill] sm:$0xff] }
 0x2dc   :  { %1603 = vmatpush1.bf16.msra.mxu0 %v6229_v17  ;;  %1644 = vmatpush1.bf16.msra.mxu1 %v6230_v18  ;;  %v6312_v17 = vld [vmem:[#allocation67_spill] sm:$0xff]  ;;  %v6313_v18 = vld [vmem:[#allocation68_spill] sm:$0xff] }
 0x2dd   :  { %1604 = vmatprep.subr.bf16.mxu0 %v6231_v19  ;;  %1645 = vmatprep.subr.bf16.mxu1 %v6232_v20  ;;  %v6314_v19 = vld [vmem:[#allocation69_spill] sm:$0xff]  ;;  %v6315_v20 = vld [vmem:[#allocation70_spill] sm:$0xff] }
 0x2e0   :  { %1605 = vmatpush1.bf16.msra.mxu0 %v6233_v21  ;;  %1646 = vmatpush1.bf16.msra.mxu1 %v6234_v22  ;;  %v6316_v21 = vld [vmem:[#allocation71_spill] sm:$0xff]  ;;  %v6317_v22 = vld [vmem:[#allocation72_spill] sm:$0xff] }
 0x2e1   :  { %1606 = vmatprep.subr.bf16.mxu0 %v6235_v23  ;;  %1647 = vmatprep.subr.bf16.mxu1 %v6236_v24  ;;  %v6318_v23 = vld [vmem:[#allocation73_spill] sm:$0xff]  ;;  %v6319_v24 = vld [vmem:[#allocation74_spill] sm:$0xff] }
 0x2e4   :  { %1607 = vmatpush1.bf16.msra.mxu0 %v6237_v25  ;;  %1648 = vmatpush1.bf16.msra.mxu1 %v6238_v26  ;;  %v6320_v25 = vld [vmem:[#allocation75_spill] sm:$0xff]  ;;  %v6321_v26 = vld [vmem:[#allocation21_spill] sm:$0xff] }
 0x2e5   :  { %1608 = vmatprep.subr.bf16.mxu0 %v6239_v27  ;;  %1649 = vmatprep.subr.bf16.mxu1 %v6240_v28  ;;  %v4848_v27 = vld [vmem:[#allocation7 + $0xec] ss:$16 sps:$4 sm:$0xff]  }
 0x2e6   :  { %6322 = vst [vmem:[#allocation34_spill] sm:$0xff] %v4848_v27 }
 0x2e8   :  { %1609 = vmatpush1.bf16.msra.mxu0 %v6241_v29  ;;  %1650 = vmatpush1.bf16.msra.mxu1 %v6242_v30  ;;  %v6323_v30 = vld [vmem:[#allocation22_spill] sm:$0xff] }
 0x2e9   :  { %1610 = vmatprep.subr.bf16.mxu0 %v6243_v31  ;;  %1651 = vmatprep.subr.bf16.mxu1 %v6244_v32 }
 0x2ec   :  { %1611 = vmatpush2.bf16.msra.mxu0 %v6245_v33  ;;  %1652 = vmatpush2.bf16.msra.mxu1 %v6246_v35 }
 0x2ed   :  { %1612 = vmatprep.subr.bf16.mxu0 %v6247_v36  ;;  %1653 = vmatprep.subr.bf16.mxu1 %v6294_v40  ;;  %v6324_v36 = vld [vmem:[#allocation23_spill] sm:$0xff] }
 0x2f0   :  { %1613 = vmatpush2.bf16.msra.mxu0 %v6295_v41  ;;  %1654 = vmatpush2.bf16.msra.mxu1 %v6296_v42 }
 0x2f1   :  { %1614 = vmatprep.subr.bf16.mxu0 %v6297_v43  ;;  %1655 = vmatprep.subr.bf16.mxu1 %v6298_v44 }
 0x2f4   :  { %1615 = vmatpush2.bf16.msra.mxu0 %v6299_v45  ;;  %1656 = vmatpush2.bf16.msra.mxu1 %v6300_v46  ;;  %v6325_v45 = vld [vmem:[#allocation24_spill] sm:$0xff] }
 0x2f5   :  { %1616 = vmatprep.subr.bf16.mxu0 %v6301_v47  ;;  %1657 = vmatprep.subr.bf16.mxu1 %v6302_v48 }
 0x2f8   :  { %1617 = vmatpush2.bf16.msra.mxu0 %v6303_v7  ;;  %1658 = vmatpush2.bf16.msra.mxu1 %v6304_v8  ;;  %v6326_v7 = vld [vmem:[#allocation25_spill] sm:$0xff] }
 0x2f9   :  { %1618 = vmatprep.subr.bf16.mxu0 %v6305_v9  ;;  %1659 = vmatprep.subr.bf16.mxu1 %v6306_v11 }
 0x2fc   :  { %1619 = vmatpush2.bf16.msra.mxu0 %v6307_v12  ;;  %1660 = vmatpush2.bf16.msra.mxu1 %v6308_v13 }
 0x2fd   :  { %1620 = vmatprep.subr.bf16.mxu0 %v6309_v14  ;;  %1661 = vmatprep.subr.bf16.mxu1 %v6310_v15 }
 0x300   :  { %1621 = vmatpush2.bf16.msra.mxu0 %v6311_v16  ;;  %1662 = vmatpush2.bf16.msra.mxu1 %v6312_v17 }
 0x301   :  { %1622 = vmatprep.subr.bf16.mxu0 %v6313_v18  ;;  %1663 = vmatprep.subr.bf16.mxu1 %v6314_v19 }
 0x304   :  { %1623 = vmatpush2.bf16.msra.mxu0 %v6315_v20  ;;  %1664 = vmatpush2.bf16.msra.mxu1 %v6316_v21 }
 0x305   :  { %1624 = vmatprep.subr.bf16.mxu0 %v6317_v22  ;;  %1665 = vmatprep.subr.bf16.mxu1 %v6318_v23 }
 0x308   :  { %1625 = vmatpush2.bf16.msra.mxu0 %v6319_v24  ;;  %1666 = vmatpush2.bf16.msra.mxu1 %v6320_v25 }
 0x309   :  { %1700 = vmatprep.subr.bf16.mxu0 %v6321_v26  ;;  %1741 = vmatprep.subr.bf16.mxu1 %v4848_v27 }
 0x36b   :  { %v1384_v28 = vpop.f32.mrf.mxu0  ;;  %v1425_v29 = vpop.f32.mrf.mxu1 }
 0x36c   :  { %v1385_v31 = vadd.f32 %v1384_v28, %v6323_v30  ;;  %v1426_v8 = vadd.f32 %v1425_v29, %v6326_v7 }
 0x36d   :  { %v1386_v32 = vpop.f32.mrf.mxu0  ;;  %v1427_v33 = vpop.f32.mrf.mxu1 }
 0x36e   :  { %v3195_v35 = vmul.f32 -1.442695, %v1385_v31  ;;  %v1387_v58 = vadd.f32 %v1386_v32, %v6324_v36  ;;  %v1428_v46 = vadd.f32 %v1427_v33, %v6325_v45 }
 0x36f   :  { %v1388_v40 = vpop.f32.mrf.mxu0  ;;  %v1429_v41 = vpop.f32.mrf.mxu1 }
 0x370   :  { %3496 = vpow2.f32 %v3195_v35  ;;  %v3196_v42 = vmul.f32 -1.442695, %v1387_v58  ;;  %v3197_v47 = vmul.f32 -1.442695, %v1428_v46  ;;  %v6327_v41 = vld [vmem:[#allocation76_spill] sm:$0xff] }
 0x371   :  { %v1389_v43 = vpop.f32.mrf.mxu0  ;;  %v1430_v44 = vpop.f32.mrf.mxu1 }
 0x372   :  { %3498 = vpow2.f32 %v3196_v42  ;;  %v6328_v42 = vld [vmem:[#allocation77_spill] sm:$0xff] }
 0x373   :  { %3500 = vpow2.f32 %v3197_v47  ;;  %v6329_v43 = vcombine.low %v6327_v41, %v6328_v42 }
 0x37d   :  { %v3497_v48 = vpop.eup %3496 }
 0x37e   :  { %v1435_v9 = vadd.f32 1.0, %v3497_v48 }
 0x37f   :  { %v3499_v11 = vpop.eup %3498 }
 0x380   :  { %3502 = vrcp.f32 %v1435_v9  ;;  %v1441_v12 = vadd.f32 1.0, %v3499_v11  ;;  %v3501_v15 = vpop.eup %3500 }
 0x381   :  { %3504 = vtanh.f32 %v1426_v8  ;;  %v1448_v23 = vadd.f32 1.0, %v3501_v15 }
 0x382   :  { %3506 = vrcp.f32 %v1441_v12 }
 0x383   :  { %3508 = vrcp.f32 %v1448_v23 }
 0x38b   :  { %v1490_v13 = vpop.f32.mrf.mxu0  ;;  %v1531_v14 = vpop.f32.mrf.mxu1 }
 0x38d   :  { %v3503_v16 = vpop.eup %3502  ;;  %v1492_v17 = vpop.f32.mrf.mxu0 }
 0x38e   :  { %v1533_v18 = vpop.f32.mrf.mxu1  ;;  %v3505_v19 = vpop.eup %3504  ;;  %v1542_v20 = vcombine.low %v1490_v13, %v1492_v17 }
 0x38f   :  { %v1543_v21 = vcombine.low %v1531_v14, %v1533_v18  ;;  %v3507_v22 = vpop.eup %3506  ;;  %v1494_v24 = vpop.f32.mrf.mxu0  ;;  %v1452_v28 = vmul.f32 %v3505_v19, %v3503_v16 }
 0x390   :  { %v1535_v25 = vpop.f32.mrf.mxu1  ;;  %v1451_v29 = vmul.f32 %v3507_v22, %v4675_v38  ;;  %v1550_v31 = vrot.slane %v1542_v20, %v4500_v37  ;;  %v3509_v8 = vpop.eup %3508 }
 0x391   :  { %v1557_v32 = vrot.slane %v1543_v21, %v4500_v37  ;;  %v1495_v33 = vpop.f32.mrf.mxu0 }
 0x392   :  { %v1536_v35 = vpop.f32.mrf.mxu1  ;;  %v4858_v40 = vadd.f32 %v1452_v28, %v1451_v29 }
 0x393   :  { %v1558_v58 = vcombine.low %v1550_v31, %v1557_v32  ;;  %v6331_v35 = vld [vmem:[#allocation27_spill] sm:$0xff] }
 0x394   :  { %3510 = vtanh.f32 %v4858_v40 }
 0x395   :  { %v1560_v44 = vadd.f32 %v1558_v58, %v6329_v43  ;;  %v6332_v58 = vld [vmem:[#allocation28_spill] sm:$0xff]  ;;  %v6333_v43 = vld [vmem:[#allocation29_spill] sm:$0xff] }
 0x397   :  { %v3198_v46 = vmul.f32 -1.442695, %v1560_v44  ;;  %v1568_v47 = vrot.slane %v1560_v44, 2  ;;  %v1579_v48 = vrot.slane %v1560_v44, 6  ;;  %v1576_v15 = vrot.slane %v1560_v44, 4  ;;  %v6334_v44 = vld [vmem:[#allocation30_spill] sm:$0xff] }
 0x399   :  { %3512 = vpow2.f32 %v3198_v46  ;;  %v3199_v38 = vmul.f32 -1.442695, %v1568_v47  ;;  %v3200_v12 = vmul.f32 -1.442695, %v1579_v48  ;;  %v6335_v46 = vld [vmem:[#allocation31_spill] sm:$0xff]  ;;  %v6336_v47 = vld [vmem:[#allocation32_spill] sm:$0xff] }
 0x39a   :  { %v4900_v48 = vld [vmem:[#allocation11 + $0xe4] ss:$16 sps:$4 sm:$0xff]  }
 0x39b   :  { %3514 = vpow2.f32 %v3199_v38  ;;  %v6337_v38 = vld [vmem:[#allocation33_spill] sm:$0xff] }
 0x39c   :  { %3516 = vpow2.f32 %v3200_v12  ;;  %v4912_v12 = vld [vmem:[#allocation11 + $0xc4] ss:$16 sps:$4 sm:$0xff]  }
 0x3a1   :  { %v3511_v9 = vpop.eup %3510 }
 0x3a2   :  { %v1455_v11 = vmul.f32 %v3511_v9, %v3509_v8  ;;  %v4903_v8 = vld [vmem:[#allocation11 + $0xec] ss:$16 sps:$4 sm:$0xff]   ;;  %v4906_v9 = vld [vmem:[#allocation11 + $0xe0] ss:$16 sps:$4 sm:$0xff]  }
 0x3a4   :  { %v1593_v13 = vpack.c.bf16 %v1455_v11, %v1455_v11  ;;  %v4909_v11 = vld [vmem:[#allocation11 + $0xe8] ss:$16 sps:$4 sm:$0xff]  }
 0x3a6   :  { %v3513_v14 = vpop.eup %3512  ;;  %1626 = vmatprep.mubr.bf16.mxu0 %v1593_v13  ;;  %1667 = vmatprep.mubr.bf16.mxu1 %v1593_v13  ;;  %v4915_v13 = vld [vmem:[#allocation11 + $0xcc] ss:$16 sps:$4 sm:$0xff]  }
 0x3a7   :  { %v1564_v16 = vadd.f32 1.0, %v3513_v14  ;;  %v4918_v14 = vld [vmem:[#allocation11 + $0xc0] ss:$16 sps:$4 sm:$0xff]  }
 0x3a8   :  { %v3515_v17 = vpop.eup %3514 }
 0x3a9   :  { %3518 = vrcp.f32 %v1564_v16  ;;  %v1573_v18 = vadd.f32 1.0, %v3515_v17  ;;  %v3517_v19 = vpop.eup %3516  ;;  %v4924_v16 = vld [vmem:[#allocation11 + $0xa4] ss:$16 sps:$4 sm:$0xff]   ;;  %v4927_v17 = vld [vmem:[#allocation11 + $0xac] ss:$16 sps:$4 sm:$0xff]  }
 0x3aa   :  { %3520 = vtanh.f32 %v1576_v15  ;;  %v1584_v23 = vadd.f32 1.0, %v3517_v19  ;;  %v4921_v15 = vld [vmem:[#allocation11 + $0xc8] ss:$16 sps:$4 sm:$0xff]   ;;  %6339 = vst [vmem:[#allocation36_spill] sm:$0xff] %v4924_v16  ;;  %6340 = vst [vmem:[#allocation37_spill] sm:$0xff] %v4927_v17 }
 0x3ab   :  { %3522 = vrcp.f32 %v1573_v18  ;;  %6338 = vst [vmem:[#allocation35_spill] sm:$0xff] %v4921_v15  ;;  %v4930_v18 = vld [vmem:[#allocation11 + $0xa0] ss:$16 sps:$4 sm:$0xff]   ;;  %v4933_v19 = vld [vmem:[#allocation11 + $0xa8] ss:$16 sps:$4 sm:$0xff]  }
 0x3ac   :  { %3524 = vrcp.f32 %v1584_v23  ;;  %6341 = vst [vmem:[#allocation38_spill] sm:$0xff] %v4930_v18  ;;  %6342 = vst [vmem:[#allocation39_spill] sm:$0xff] %v4933_v19  ;;  %v4945_v23 = vld [vmem:[#allocation11 + $0x88] ss:$16 sps:$4 sm:$0xff]  }
 0x3ad   :  { %6346 = vst [vmem:[#allocation43_spill] sm:$0xff] %v4945_v23 }
 0x3b6   :  { %v3519_v20 = vpop.eup %3518 }
 0x3b7   :  { %v3521_v21 = vpop.eup %3520 }
 0x3b8   :  { %v3523_v22 = vpop.eup %3522  ;;  %v1588_v25 = vmul.f32 %v3521_v21, %v3519_v20  ;;  %v4936_v20 = vld [vmem:[#allocation11 + $0x84] ss:$16 sps:$4 sm:$0xff]   ;;  %v4939_v21 = vld [vmem:[#allocation11 + $0x8c] ss:$16 sps:$4 sm:$0xff]  }
 0x3b9   :  { %v1587_v24 = vmul.f32 %v3523_v22, %v4682_v52  ;;  %v3525_v29 = vpop.eup %3524  ;;  %v6330_v52 = vld [vmem:[#allocation26_spill] sm:$0xff]  ;;  %6343 = vst [vmem:[#allocation40_spill] sm:$0xff] %v4936_v20  ;;  %6344 = vst [vmem:[#allocation41_spill] sm:$0xff] %v4939_v21 }
 0x3ba   :  { %v4942_v22 = vld [vmem:[#allocation11 + $0x80] ss:$16 sps:$4 sm:$0xff]  }
 0x3bb   :  { %v4865_v28 = vadd.f32 %v1588_v25, %v1587_v24  ;;  %6345 = vst [vmem:[#allocation42_spill] sm:$0xff] %v4942_v22  ;;  %v4948_v24 = vld [vmem:[#allocation11 + $0x64] ss:$16 sps:$4 sm:$0xff]   ;;  %v4951_v25 = vld [vmem:[#allocation11 + $0x6c] ss:$16 sps:$4 sm:$0xff]  }
 0x3bc   :  { %6347 = vst [vmem:[#allocation44_spill] sm:$0xff] %v4948_v24  ;;  %6348 = vst [vmem:[#allocation45_spill] sm:$0xff] %v4951_v25 }
 0x3bd   :  { %3526 = vtanh.f32 %v4865_v28 }
 0x3ca   :  { %v3527_v31 = vpop.eup %3526 }
 0x3cb   :  { %v1591_v32 = vmul.f32 %v3527_v31, %v3525_v29  ;;  %v4954_v29 = vld [vmem:[#allocation11 + $0x60] ss:$16 sps:$4 sm:$0xff]   ;;  %v4957_v31 = vld [vmem:[#allocation11 + $0x68] ss:$16 sps:$4 sm:$0xff]  }
 0x3cc   :  { %6349 = vst [vmem:[#allocation46_spill] sm:$0xff] %v4954_v29  ;;  %6350 = vst [vmem:[#allocation47_spill] sm:$0xff] %v4957_v31 }
 0x3cd   :  { %v1592_v33 = vpack.c.bf16 %v1591_v32, %v1591_v32  ;;  %v4960_v32 = vld [vmem:[#allocation11 + $0x44] ss:$16 sps:$4 sm:$0xff]  }
 0x3ce   :  { %6351 = vst [vmem:[#allocation48_spill] sm:$0xff] %v4960_v32 }
 0x3cf   :  { %1627 = vmatmul.mubr.bf16.vlgmr.msra.gmra.mxu0 %v1592_v33  ;;  %1668 = vmatmul.mubr.bf16.vlgmr.msra.gmra.mxu1 %v1592_v33 }
 0x3d0   :  { %1701 = vmatpush1.bf16.msra.mxu0 %v4689_v34  ;;  %1742 = vmatpush1.bf16.msra.mxu1 %v4692_v63 }
 0x3d1   :  { %1702 = vmatprep.subr.bf16.mxu0 %v4695_v3  ;;  %1743 = vmatprep.subr.bf16.mxu1 %v4698_v10 }
 0x3d2   :  { %1732 = vmatprep.mubr.bf16.mxu0 %v6219_v57  ;;  %1773 = vmatprep.mubr.bf16.mxu1 %v6219_v57 }
 0x3d4   :  { %1703 = vmatpush1.bf16.msra.mxu0 %v4703_v5  ;;  %1744 = vmatpush1.bf16.msra.mxu1 %v4706_v0 }
 0x3d5   :  { %1704 = vmatprep.subr.bf16.mxu0 %v4709_v4  ;;  %1745 = vmatprep.subr.bf16.mxu1 %v4712_v53 }
 0x3d8   :  { %1705 = vmatpush1.bf16.msra.mxu0 %v4715_v6  ;;  %1746 = vmatpush1.bf16.msra.mxu1 %v4718_v49 }
 0x3d9   :  { %1706 = vmatprep.subr.bf16.mxu0 %v4721_v2  ;;  %1747 = vmatprep.subr.bf16.mxu1 %v4724_v54 }
 0x3dc   :  { %1707 = vmatpush1.bf16.msra.mxu0 %v4727_v39  ;;  %1748 = vmatpush1.bf16.msra.mxu1 %v4730_v55 }
 0x3dd   :  { %1708 = vmatprep.subr.bf16.mxu0 %v4733_v56  ;;  %1749 = vmatprep.subr.bf16.mxu1 %v4736_v51 }
 0x3e0   :  { %1709 = vmatpush1.bf16.msra.mxu0 %v6330_v52  ;;  %1750 = vmatpush1.bf16.msra.mxu1 %v6331_v35 }
 0x3e1   :  { %1710 = vmatprep.subr.bf16.mxu0 %v6332_v58  ;;  %1751 = vmatprep.subr.bf16.mxu1 %v6333_v43 }
 0x3e4   :  { %1711 = vmatpush1.bf16.msra.mxu0 %v6334_v44  ;;  %1752 = vmatpush1.bf16.msra.mxu1 %v6335_v46 }
 0x3e5   :  { %1712 = vmatprep.subr.bf16.mxu0 %v6336_v47  ;;  %1753 = vmatprep.subr.bf16.mxu1 %v6337_v38 }
 0x3e8   :  { %1713 = vmatpush1.bf16.msra.mxu0 %v4763_v1  ;;  %1754 = vmatpush1.bf16.msra.mxu1 %v4766_v50 }
 0x3e9   :  { %1714 = vmatprep.subr.bf16.mxu0 %v4769_v61  ;;  %1755 = vmatprep.subr.bf16.mxu1 %v4772_v59 }
 0x3ec   :  { %1715 = vmatpush1.bf16.msra.mxu0 %v4775_v60  ;;  %1756 = vmatpush1.bf16.msra.mxu1 %v4778_v62 }
 0x3ed   :  { %1838 = vmatprep.subr.bf16.mxu0 %v4900_v48  ;;  %1879 = vmatprep.subr.bf16.mxu1 %v4903_v8 }
 0x3ef   :  { %1733 = vmatmul.mubr.bf16.vlgmr.msra.gmra.mxu0 %v1592_v33  ;;  %1774 = vmatmul.mubr.bf16.vlgmr.msra.gmra.mxu1 %v1592_v33  ;;  %v4963_v33 = vld [vmem:[#allocation11 + $0x4c] ss:$16 sps:$4 sm:$0xff]  }
 0x3f0   :  { %1839 = vmatpush1.bf16.msra.mxu0 %v4906_v9  ;;  %1880 = vmatpush1.bf16.msra.mxu1 %v4909_v11  ;;  %6352 = vst [vmem:[#allocation20_spill] sm:$0xff] %v4963_v33 }
 0x3f1   :  { %1840 = vmatprep.subr.bf16.mxu0 %v4912_v12  ;;  %1881 = vmatprep.subr.bf16.mxu1 %v4915_v13 }
 0x3f4   :  { %1841 = vmatpush1.bf16.msra.mxu0 %v4918_v14  ;;  %1882 = vmatpush1.bf16.msra.mxu1 %v4921_v15 }
 0x3f5   :  { %1842 = vmatprep.subr.bf16.mxu0 %v4924_v16  ;;  %1883 = vmatprep.subr.bf16.mxu1 %v4927_v17 }
 0x3f8   :  { %1843 = vmatpush1.bf16.msra.mxu0 %v4930_v18  ;;  %1884 = vmatpush1.bf16.msra.mxu1 %v4933_v19 }
 0x3f9   :  { %1844 = vmatprep.subr.bf16.mxu0 %v4936_v20  ;;  %1885 = vmatprep.subr.bf16.mxu1 %v4939_v21 }
 0x3fc   :  { %1845 = vmatpush1.bf16.msra.mxu0 %v4942_v22  ;;  %1886 = vmatpush1.bf16.msra.mxu1 %v4945_v23 }
 0x3fd   :  { %1846 = vmatprep.subr.bf16.mxu0 %v4948_v24  ;;  %1887 = vmatprep.subr.bf16.mxu1 %v4951_v25  ;;  %v4966_v24 = vld [vmem:[#allocation11 + $0x40] ss:$16 sps:$4 sm:$0xff]   ;;  %v4969_v25 = vld [vmem:[#allocation11 + $0x48] ss:$16 sps:$4 sm:$0xff]  }
 0x3fe   :  { %6353 = vst [vmem:[#allocation49_spill] sm:$0xff] %v4966_v24  ;;  %6354 = vst [vmem:[#allocation50_spill] sm:$0xff] %v4969_v25 }
 0x400   :  { %1847 = vmatpush1.bf16.msra.mxu0 %v4954_v29  ;;  %1888 = vmatpush1.bf16.msra.mxu1 %v4957_v31  ;;  %v4972_v29 = vld [vmem:[#allocation11 + $0x24] ss:$16 sps:$4 sm:$0xff]   ;;  %v4975_v31 = vld [vmem:[#allocation11 + $0x2c] ss:$16 sps:$4 sm:$0xff]  }
 0x401   :  { %1848 = vmatprep.subr.bf16.mxu0 %v4960_v32  ;;  %1889 = vmatprep.subr.bf16.mxu1 %v4963_v33  ;;  %6355 = vst [vmem:[#allocation51_spill] sm:$0xff] %v4972_v29  ;;  %6356 = vst [vmem:[#allocation52_spill] sm:$0xff] %v4975_v31  ;;  %v4978_v32 = vld [vmem:[#allocation11 + $0x20] ss:$16 sps:$4 sm:$0xff]   ;;  %v4981_v33 = vld [vmem:[#allocation11 + $0x28] ss:$16 sps:$4 sm:$0xff]  }
 0x402   :  { %6357 = vst [vmem:[#allocation53_spill] sm:$0xff] %v4978_v32  ;;  %6358 = vst [vmem:[#allocation54_spill] sm:$0xff] %v4981_v33 }
 0x404   :  { %1849 = vmatpush1.bf16.msra.mxu0 %v4966_v24  ;;  %1890 = vmatpush1.bf16.msra.mxu1 %v4969_v25  ;;  %v4984_v24 = vld [vmem:[#allocation11 + $0x4] ss:$16 sps:$4 sm:$0xff]   ;;  %v4987_v25 = vld [vmem:[#allocation11 + $0xc] ss:$16 sps:$4 sm:$0xff]  }
 0x405   :  { %1850 = vmatprep.subr.bf16.mxu0 %v4972_v29  ;;  %1891 = vmatprep.subr.bf16.mxu1 %v4975_v31  ;;  %6359 = vst [vmem:[#allocation55_spill] sm:$0xff] %v4984_v24  ;;  %6360 = vst [vmem:[#allocation56_spill] sm:$0xff] %v4987_v25  ;;  %v4990_v29 = vld [vmem:[#allocation11] ss:$16 sps:$4 sm:$0xff]   ;;  %v4993_v31 = vld [vmem:[#allocation11 + $0x8] ss:$16 sps:$4 sm:$0xff]  }
 0x406   :  { %6361 = vst [vmem:[#allocation57_spill] sm:$0xff] %v4990_v29  ;;  %6362 = vst [vmem:[#allocation58_spill] sm:$0xff] %v4993_v31 }
 0x408   :  { %1851 = vmatpush1.bf16.msra.mxu0 %v4978_v32  ;;  %1892 = vmatpush1.bf16.msra.mxu1 %v4981_v33  ;;  %v4996_v32 = vld [vmem:[#allocation11 + $0x1e4] ss:$16 sps:$4 sm:$0xff]   ;;  %v4999_v33 = vld [vmem:[#allocation11 + $0x1ec] ss:$16 sps:$4 sm:$0xff]  }
 0x409   :  { %1852 = vmatprep.subr.bf16.mxu0 %v4984_v24  ;;  %1893 = vmatprep.subr.bf16.mxu1 %v4987_v25  ;;  %6363 = vst [vmem:[#allocation59_spill] sm:$0xff] %v4996_v32  ;;  %6364 = vst [vmem:[#allocation60_spill] sm:$0xff] %v4999_v33  ;;  %v5002_v24 = vld [vmem:[#allocation11 + $0x1e0] ss:$16 sps:$4 sm:$0xff]   ;;  %v5005_v25 = vld [vmem:[#allocation11 + $0x1e8] ss:$16 sps:$4 sm:$0xff]  }
 0x40a   :  { %6365 = vst [vmem:[#allocation61_spill] sm:$0xff] %v5002_v24  ;;  %6366 = vst [vmem:[#allocation62_spill] sm:$0xff] %v5005_v25 }
 0x40c   :  { %1853 = vmatpush1.bf16.msra.mxu0 %v4990_v29  ;;  %1894 = vmatpush1.bf16.msra.mxu1 %v4993_v31  ;;  %v5008_v29 = vld [vmem:[#allocation11 + $0x1c4] ss:$16 sps:$4 sm:$0xff]   ;;  %v5011_v31 = vld [vmem:[#allocation11 + $0x1cc] ss:$16 sps:$4 sm:$0xff]  }
 0x40d   :  { %1854 = vmatprep.subr.bf16.mxu0 %v4996_v32  ;;  %1895 = vmatprep.subr.bf16.mxu1 %v4999_v33  ;;  %6367 = vst [vmem:[#allocation63_spill] sm:$0xff] %v5008_v29  ;;  %6368 = vst [vmem:[#allocation64_spill] sm:$0xff] %v5011_v31  ;;  %v5014_v32 = vld [vmem:[#allocation11 + $0x1c0] ss:$16 sps:$4 sm:$0xff]   ;;  %v5017_v33 = vld [vmem:[#allocation11 + $0x1c8] ss:$16 sps:$4 sm:$0xff]  }
 0x40e   :  { %6369 = vst [vmem:[#allocation65_spill] sm:$0xff] %v5014_v32  ;;  %6370 = vst [vmem:[#allocation66_spill] sm:$0xff] %v5017_v33 }
 0x410   :  { %1855 = vmatpush2.bf16.msra.mxu0 %v5002_v24  ;;  %1896 = vmatpush2.bf16.msra.mxu1 %v5005_v25  ;;  %v5020_v24 = vld [vmem:[#allocation11 + $0x1a4] ss:$16 sps:$4 sm:$0xff]   ;;  %v5023_v25 = vld [vmem:[#allocation11 + $0x1ac] ss:$16 sps:$4 sm:$0xff]  }
 0x411   :  { %1856 = vmatprep.subr.bf16.mxu0 %v5008_v29  ;;  %1897 = vmatprep.subr.bf16.mxu1 %v5011_v31  ;;  %6371 = vst [vmem:[#allocation67_spill] sm:$0xff] %v5020_v24  ;;  %6372 = vst [vmem:[#allocation68_spill] sm:$0xff] %v5023_v25  ;;  %v5026_v29 = vld [vmem:[#allocation11 + $0x1a0] ss:$16 sps:$4 sm:$0xff]   ;;  %v5029_v31 = vld [vmem:[#allocation11 + $0x1a8] ss:$16 sps:$4 sm:$0xff]  }
 0x412   :  { %6373 = vst [vmem:[#allocation69_spill] sm:$0xff] %v5026_v29  ;;  %6374 = vst [vmem:[#allocation70_spill] sm:$0xff] %v5029_v31 }
 0x414   :  { %1857 = vmatpush2.bf16.msra.mxu0 %v5014_v32  ;;  %1898 = vmatpush2.bf16.msra.mxu1 %v5017_v33  ;;  %v5032_v32 = vld [vmem:[#allocation11 + $0x184] ss:$16 sps:$4 sm:$0xff]   ;;  %v5035_v33 = vld [vmem:[#allocation11 + $0x18c] ss:$16 sps:$4 sm:$0xff]  }
 0x415   :  { %1858 = vmatprep.subr.bf16.mxu0 %v5020_v24  ;;  %1899 = vmatprep.subr.bf16.mxu1 %v5023_v25  ;;  %6375 = vst [vmem:[#allocation71_spill] sm:$0xff] %v5032_v32  ;;  %6376 = vst [vmem:[#allocation72_spill] sm:$0xff] %v5035_v33  ;;  %v5038_v24 = vld [vmem:[#allocation11 + $0x180] ss:$16 sps:$4 sm:$0xff]   ;;  %v5041_v25 = vld [vmem:[#allocation11 + $0x188] ss:$16 sps:$4 sm:$0xff]  }
 0x416   :  { %6377 = vst [vmem:[#allocation73_spill] sm:$0xff] %v5038_v24  ;;  %6378 = vst [vmem:[#allocation74_spill] sm:$0xff] %v5041_v25 }
 0x418   :  { %1859 = vmatpush2.bf16.msra.mxu0 %v5026_v29  ;;  %1900 = vmatpush2.bf16.msra.mxu1 %v5029_v31  ;;  %v5044_v29 = vld [vmem:[#allocation11 + $0x164] ss:$16 sps:$4 sm:$0xff]   ;;  %v5047_v31 = vld [vmem:[#allocation11 + $0x16c] ss:$16 sps:$4 sm:$0xff]  }
 0x419   :  { %1860 = vmatprep.subr.bf16.mxu0 %v5032_v32  ;;  %1901 = vmatprep.subr.bf16.mxu1 %v5035_v33  ;;  %6379 = vst [vmem:[#allocation75_spill] sm:$0xff] %v5044_v29  ;;  %6380 = vst [vmem:[#allocation21_spill] sm:$0xff] %v5047_v31  ;;  %v5050_v32 = vld [vmem:[#allocation11 + $0x160] ss:$16 sps:$4 sm:$0xff]   ;;  %v5053_v33 = vld [vmem:[#allocation11 + $0x168] ss:$16 sps:$4 sm:$0xff]  }
 0x41a   :  { %6381 = vst [vmem:[#allocation76_spill] sm:$0xff] %v5050_v32  ;;  %6382 = vst [vmem:[#allocation77_spill] sm:$0xff] %v5053_v33 }
 0x41c   :  { %1861 = vmatpush2.bf16.msra.mxu0 %v5038_v24  ;;  %1902 = vmatpush2.bf16.msra.mxu1 %v5041_v25  ;;  %v5056_v24 = vld [vmem:[#allocation11 + $0x144] ss:$16 sps:$4 sm:$0xff]   ;;  %v5059_v25 = vld [vmem:[#allocation11 + $0x14c] ss:$16 sps:$4 sm:$0xff]  }
 0x41d   :  { %1862 = vmatprep.subr.bf16.mxu0 %v5044_v29  ;;  %1903 = vmatprep.subr.bf16.mxu1 %v5047_v31  ;;  %6383 = vst [vmem:[#allocation26_spill] sm:$0xff] %v5056_v24  ;;  %6384 = vst [vmem:[#allocation27_spill] sm:$0xff] %v5059_v25  ;;  %v5062_v29 = vld [vmem:[#allocation11 + $0x140] ss:$16 sps:$4 sm:$0xff]   ;;  %v5065_v31 = vld [vmem:[#allocation11 + $0x148] ss:$16 sps:$4 sm:$0xff]  }
 0x41e   :  { %6385 = vst [vmem:[#allocation28_spill] sm:$0xff] %v5062_v29  ;;  %6386 = vst [vmem:[#allocation29_spill] sm:$0xff] %v5065_v31 }
 0x420   :  { %1863 = vmatpush2.bf16.msra.mxu0 %v5050_v32  ;;  %1904 = vmatpush2.bf16.msra.mxu1 %v5053_v33  ;;  %v5068_v32 = vld [vmem:[#allocation11 + $0x124] ss:$16 sps:$4 sm:$0xff]   ;;  %v5071_v33 = vld [vmem:[#allocation11 + $0x12c] ss:$16 sps:$4 sm:$0xff]  }
 0x421   :  { %1864 = vmatprep.subr.bf16.mxu0 %v5056_v24  ;;  %1905 = vmatprep.subr.bf16.mxu1 %v5059_v25  ;;  %6387 = vst [vmem:[#allocation30_spill] sm:$0xff] %v5068_v32  ;;  %6388 = vst [vmem:[#allocation31_spill] sm:$0xff] %v5071_v33  ;;  %v5074_v24 = vld [vmem:[#allocation11 + $0x120] ss:$16 sps:$4 sm:$0xff]   ;;  %v5077_v25 = vld [vmem:[#allocation11 + $0x128] ss:$16 sps:$4 sm:$0xff]  }
 0x422   :  { %6389 = vst [vmem:[#allocation32_spill] sm:$0xff] %v5074_v24  ;;  %6390 = vst [vmem:[#allocation33_spill] sm:$0xff] %v5077_v25 }
 0x424   :  { %1865 = vmatpush2.bf16.msra.mxu0 %v5062_v29  ;;  %1906 = vmatpush2.bf16.msra.mxu1 %v5065_v31  ;;  %v5080_v29 = vld [vmem:[#allocation11 + $0x104] ss:$16 sps:$4 sm:$0xff]   ;;  %v5083_v31 = vld [vmem:[#allocation11 + $0x10c] ss:$16 sps:$4 sm:$0xff]  }
 0x425   :  { %1866 = vmatprep.subr.bf16.mxu0 %v5068_v32  ;;  %1907 = vmatprep.subr.bf16.mxu1 %v5071_v33  ;;  %6391 = vst [vmem:[#allocation82_spill] sm:$0xff] %v5080_v29  ;;  %6392 = vst [vmem:[#allocation83_spill] sm:$0xff] %v5083_v31  ;;  %v5086_v32 = vld [vmem:[#allocation11 + $0x100] ss:$16 sps:$4 sm:$0xff]   ;;  %v5089_v33 = vld [vmem:[#allocation11 + $0x108] ss:$16 sps:$4 sm:$0xff]  }
 0x426   :  { %6393 = vst [vmem:[#allocation84_spill] sm:$0xff] %v5086_v32  ;;  %6394 = vst [vmem:[#allocation85_spill] sm:$0xff] %v5089_v33 }
 0x428   :  { %1867 = vmatpush2.bf16.msra.mxu0 %v5074_v24  ;;  %1908 = vmatpush2.bf16.msra.mxu1 %v5077_v25 }
 0x429   :  { %1868 = vmatprep.subr.bf16.mxu0 %v5080_v29  ;;  %1909 = vmatprep.subr.bf16.mxu1 %v5083_v31 }
 0x42c   :  { %1869 = vmatpush2.bf16.msra.mxu0 %v5086_v32  ;;  %1910 = vmatpush2.bf16.msra.mxu1 %v5089_v33 }
 0x42d   :  { %1944 = vmatprep.subr.bf16.mxu0 %v6321_v26  ;;  %1985 = vmatprep.subr.bf16.mxu1 %v4848_v27 }
 0x48f   :  { %v1628_v25 = vpop.f32.mrf.mxu0  ;;  %v1669_v24 = vpop.f32.mrf.mxu1 }
 0x490   :  { %v1629_v29 = vadd.f32 %v1628_v25, %v6323_v30  ;;  %v1670_v16 = vadd.f32 %v1669_v24, %v6326_v7 }
 0x491   :  { %v1630_v23 = vpop.f32.mrf.mxu0  ;;  %v1671_v22 = vpop.f32.mrf.mxu1 }
 0x492   :  { %v3201_v21 = vmul.f32 -1.442695, %v1629_v29  ;;  %v1631_v31 = vadd.f32 %v1630_v23, %v6324_v36  ;;  %v1672_v26 = vadd.f32 %v1671_v22, %v6325_v45 }
 0x493   :  { %v1632_v20 = vpop.f32.mrf.mxu0  ;;  %v1673_v19 = vpop.f32.mrf.mxu1 }
 0x494   :  { %3528 = vpow2.f32 %v3201_v21  ;;  %v3202_v32 = vmul.f32 -1.442695, %v1631_v31  ;;  %v3203_v33 = vmul.f32 -1.442695, %v1672_v26 }
 0x495   :  { %v1633_v18 = vpop.f32.mrf.mxu0  ;;  %v1674_v17 = vpop.f32.mrf.mxu1 }
 0x496   :  { %3530 = vpow2.f32 %v3202_v32 }
 0x497   :  { %3532 = vpow2.f32 %v3203_v33 }
 0x4a1   :  { %v3529_v27 = vpop.eup %3528 }
 0x4a2   :  { %v1679_v15 = vadd.f32 1.0, %v3529_v27 }
 0x4a3   :  { %v3531_v25 = vpop.eup %3530 }
 0x4a4   :  { %3534 = vrcp.f32 %v1679_v15  ;;  %v1685_v29 = vadd.f32 1.0, %v3531_v25  ;;  %v3533_v21 = vpop.eup %3532 }
 0x4a5   :  { %3536 = vtanh.f32 %v1670_v16  ;;  %v1692_v45 = vadd.f32 1.0, %v3533_v21 }
 0x4a6   :  { %3538 = vrcp.f32 %v1685_v29 }
 0x4a7   :  { %3540 = vrcp.f32 %v1692_v45 }
 0x4af   :  { %v1734_v20 = vpop.f32.mrf.mxu0  ;;  %v1775_v19 = vpop.f32.mrf.mxu1 }
 0x4b1   :  { %v3535_v23 = vpop.eup %3534  ;;  %v1736_v18 = vpop.f32.mrf.mxu0 }
 0x4b2   :  { %v1777_v17 = vpop.f32.mrf.mxu1  ;;  %v3537_v31 = vpop.eup %3536  ;;  %v1786_v32 = vcombine.low %v1734_v20, %v1736_v18  ;;  %v6395_v20 = vcombine.high %v6327_v41, %v6328_v42 }
 0x4b3   :  { %v1787_v22 = vcombine.low %v1775_v19, %v1777_v17  ;;  %v3539_v26 = vpop.eup %3538  ;;  %v1738_v36 = vpop.f32.mrf.mxu0  ;;  %v1696_v27 = vmul.f32 %v3537_v31, %v3535_v23 }
 0x4b4   :  { %v1779_v24 = vpop.f32.mrf.mxu1  ;;  %v1695_v33 = vmul.f32 %v3539_v26, %v4858_v40  ;;  %v1794_v15 = vrot.slane %v1786_v32, %v4500_v37  ;;  %v3541_v18 = vpop.eup %3540 }
 0x4b5   :  { %v1801_v16 = vrot.slane %v1787_v22, %v4500_v37  ;;  %v1739_v25 = vpop.f32.mrf.mxu0 }
 0x4b6   :  { %v1780_v29 = vpop.f32.mrf.mxu1  ;;  %v5101_v30 = vadd.f32 %v1696_v27, %v1695_v33 }
 0x4b7   :  { %v1802_v7 = vcombine.low %v1794_v15, %v1801_v16 }
 0x4b8   :  { %3542 = vtanh.f32 %v5101_v30 }
 0x4b9   :  { %v1804_v19 = vadd.f32 %v1802_v7, %v6395_v20 }
 0x4bb   :  { %v3204_v36 = vmul.f32 -1.442695, %v1804_v19  ;;  %v1812_v21 = vrot.slane %v1804_v19, 2  ;;  %v1823_v23 = vrot.slane %v1804_v19, 6  ;;  %v1820_v24 = vrot.slane %v1804_v19, 4 }
 0x4bd   :  { %3544 = vpow2.f32 %v3204_v36  ;;  %v3205_v40 = vmul.f32 -1.442695, %v1812_v21  ;;  %v3206_v32 = vmul.f32 -1.442695, %v1823_v23  ;;  %v6427_v23 = vld [vmem:[#allocation65_spill] sm:$0xff] }
 0x4bf   :  { %3546 = vpow2.f32 %v3205_v40 }
 0x4c0   :  { %3548 = vpow2.f32 %v3206_v32  ;;  %v6431_v32 = vld [vmem:[#allocation69_spill] sm:$0xff] }
 0x4c5   :  { %v3543_v17 = vpop.eup %3542 }
 0x4c6   :  { %v1699_v31 = vmul.f32 %v3543_v17, %v3541_v18  ;;  %v6428_v18 = vld [vmem:[#allocation66_spill] sm:$0xff]  ;;  %v6429_v17 = vld [vmem:[#allocation67_spill] sm:$0xff] }
 0x4c8   :  { %v1837_v22 = vpack.c.bf16 %v1699_v31, %v1699_v31  ;;  %v6430_v31 = vld [vmem:[#allocation68_spill] sm:$0xff] }
 0x4ca   :  { %v3545_v26 = vpop.eup %3544  ;;  %1870 = vmatprep.mubr.bf16.mxu0 %v1837_v22  ;;  %1911 = vmatprep.mubr.bf16.mxu1 %v1837_v22  ;;  %v6432_v22 = vld [vmem:[#allocation70_spill] sm:$0xff] }
 0x4cb   :  { %v1808_v45 = vadd.f32 1.0, %v3545_v26  ;;  %v6433_v26 = vld [vmem:[#allocation71_spill] sm:$0xff] }
 0x4cc   :  { %v3547_v41 = vpop.eup %3546 }
 0x4cd   :  { %3550 = vrcp.f32 %v1808_v45  ;;  %v1817_v7 = vadd.f32 1.0, %v3547_v41  ;;  %v3549_v42 = vpop.eup %3548  ;;  %v6435_v45 = vld [vmem:[#allocation73_spill] sm:$0xff]  ;;  %v6436_v41 = vld [vmem:[#allocation74_spill] sm:$0xff] }
 0x4ce   :  { %3552 = vtanh.f32 %v1820_v24  ;;  %v1828_v16 = vadd.f32 1.0, %v3549_v42  ;;  %v6434_v24 = vld [vmem:[#allocation72_spill] sm:$0xff]  ;;  %v6438_v42 = vld [vmem:[#allocation21_spill] sm:$0xff] }
 0x4cf   :  { %3554 = vrcp.f32 %v1817_v7  ;;  %v6437_v7 = vld [vmem:[#allocation75_spill] sm:$0xff] }
 0x4d0   :  { %3556 = vrcp.f32 %v1828_v16  ;;  %v6442_v16 = vld [vmem:[#allocation27_spill] sm:$0xff] }
 0x4da   :  { %v3551_v27 = vpop.eup %3550 }
 0x4db   :  { %v3553_v33 = vpop.eup %3552 }
 0x4dc   :  { %v3555_v15 = vpop.eup %3554  ;;  %v1832_v29 = vmul.f32 %v3553_v33, %v3551_v27  ;;  %v6439_v27 = vld [vmem:[#allocation76_spill] sm:$0xff]  ;;  %v6440_v33 = vld [vmem:[#allocation77_spill] sm:$0xff] }
 0x4dd   :  { %v1831_v25 = vmul.f32 %v3555_v15, %v4865_v28  ;;  %v3557_v19 = vpop.eup %3556  ;;  %v6418_v28 = vld [vmem:[#allocation56_spill] sm:$0xff]  ;;  %v6441_v15 = vld [vmem:[#allocation26_spill] sm:$0xff] }
 0x4df   :  { %v5108_v20 = vadd.f32 %v1832_v29, %v1831_v25  ;;  %v6443_v25 = vld [vmem:[#allocation28_spill] sm:$0xff]  ;;  %v6444_v29 = vld [vmem:[#allocation29_spill] sm:$0xff] }
 0x4e1   :  { %3558 = vtanh.f32 %v5108_v20 }
 0x4ee   :  { %v3559_v36 = vpop.eup %3558 }
 0x4ef   :  { %v1835_v21 = vmul.f32 %v3559_v36, %v3557_v19  ;;  %v6445_v19 = vld [vmem:[#allocation30_spill] sm:$0xff]  ;;  %v6446_v36 = vld [vmem:[#allocation31_spill] sm:$0xff] }
 0x4f1   :  { %v1836_v40 = vpack.c.bf16 %v1835_v21, %v1835_v21  ;;  %v6447_v21 = vld [vmem:[#allocation32_spill] sm:$0xff] }
 0x4f3   :  { %1871 = vmatmul.mubr.bf16.vlgmr.msra.gmra.mxu0 %v1836_v40  ;;  %1912 = vmatmul.mubr.bf16.vlgmr.msra.gmra.mxu1 %v1836_v40 }
 0x4f4   :  { %1945 = vmatpush1.bf16.msra.mxu0 %v4689_v34  ;;  %1986 = vmatpush1.bf16.msra.mxu1 %v4692_v63  ;;  %v6396_v34 = vld [vmem:[#allocation35_spill] sm:$0xff]  ;;  %v6397_v63 = vld [vmem:[#allocation36_spill] sm:$0xff] }
 0x4f5   :  { %1946 = vmatprep.subr.bf16.mxu0 %v4695_v3  ;;  %1987 = vmatprep.subr.bf16.mxu1 %v4698_v10  ;;  %v6398_v3 = vld [vmem:[#allocation37_spill] sm:$0xff]  ;;  %v6399_v10 = vld [vmem:[#allocation38_spill] sm:$0xff] }
 0x4f6   :  { %1976 = vmatprep.mubr.bf16.mxu0 %v6219_v57  ;;  %2017 = vmatprep.mubr.bf16.mxu1 %v6219_v57 }
 0x4f8   :  { %1947 = vmatpush1.bf16.msra.mxu0 %v4703_v5  ;;  %1988 = vmatpush1.bf16.msra.mxu1 %v4706_v0  ;;  %v6400_v5 = vld [vmem:[#allocation39_spill] sm:$0xff]  ;;  %v6401_v0 = vld [vmem:[#allocation40_spill] sm:$0xff] }
 0x4f9   :  { %1948 = vmatprep.subr.bf16.mxu0 %v4709_v4  ;;  %1989 = vmatprep.subr.bf16.mxu1 %v4712_v53  ;;  %v6402_v4 = vld [vmem:[#allocation41_spill] sm:$0xff]  ;;  %v6403_v53 = vld [vmem:[#allocation42_spill] sm:$0xff] }
 0x4fc   :  { %1949 = vmatpush1.bf16.msra.mxu0 %v4715_v6  ;;  %1990 = vmatpush1.bf16.msra.mxu1 %v4718_v49  ;;  %v6404_v6 = vld [vmem:[#allocation43_spill] sm:$0xff]  ;;  %v6405_v49 = vld [vmem:[#allocation44_spill] sm:$0xff] }
 0x4fd   :  { %1950 = vmatprep.subr.bf16.mxu0 %v4721_v2  ;;  %1991 = vmatprep.subr.bf16.mxu1 %v4724_v54  ;;  %v6406_v2 = vld [vmem:[#allocation45_spill] sm:$0xff]  ;;  %v6407_v54 = vld [vmem:[#allocation46_spill] sm:$0xff] }
 0x500   :  { %1951 = vmatpush1.bf16.msra.mxu0 %v4727_v39  ;;  %1992 = vmatpush1.bf16.msra.mxu1 %v4730_v55  ;;  %v6408_v39 = vld [vmem:[#allocation47_spill] sm:$0xff]  ;;  %v6409_v55 = vld [vmem:[#allocation48_spill] sm:$0xff] }
 0x501   :  { %1952 = vmatprep.subr.bf16.mxu0 %v4733_v56  ;;  %1993 = vmatprep.subr.bf16.mxu1 %v4736_v51  ;;  %v6410_v56 = vld [vmem:[#allocation20_spill] sm:$0xff]  ;;  %v6411_v51 = vld [vmem:[#allocation49_spill] sm:$0xff] }
 0x504   :  { %1953 = vmatpush1.bf16.msra.mxu0 %v6330_v52  ;;  %1994 = vmatpush1.bf16.msra.mxu1 %v6331_v35  ;;  %v6419_v52 = vld [vmem:[#allocation57_spill] sm:$0xff]  ;;  %v6420_v35 = vld [vmem:[#allocation58_spill] sm:$0xff] }
 0x505   :  { %1954 = vmatprep.subr.bf16.mxu0 %v6332_v58  ;;  %1995 = vmatprep.subr.bf16.mxu1 %v6333_v43  ;;  %v6421_v58 = vld [vmem:[#allocation59_spill] sm:$0xff]  ;;  %v6422_v43 = vld [vmem:[#allocation60_spill] sm:$0xff] }
 0x508   :  { %1955 = vmatpush1.bf16.msra.mxu0 %v6334_v44  ;;  %1996 = vmatpush1.bf16.msra.mxu1 %v6335_v46  ;;  %v6423_v44 = vld [vmem:[#allocation61_spill] sm:$0xff]  ;;  %v6424_v46 = vld [vmem:[#allocation62_spill] sm:$0xff] }
 0x509   :  { %1956 = vmatprep.subr.bf16.mxu0 %v6336_v47  ;;  %1997 = vmatprep.subr.bf16.mxu1 %v6337_v38  ;;  %v6425_v47 = vld [vmem:[#allocation63_spill] sm:$0xff]  ;;  %v6426_v38 = vld [vmem:[#allocation64_spill] sm:$0xff] }
 0x50c   :  { %1957 = vmatpush1.bf16.msra.mxu0 %v4763_v1  ;;  %1998 = vmatpush1.bf16.msra.mxu1 %v4766_v50  ;;  %v6414_v1 = vld [vmem:[#allocation52_spill] sm:$0xff]  ;;  %v6415_v50 = vld [vmem:[#allocation53_spill] sm:$0xff] }
 0x50d   :  { %1958 = vmatprep.subr.bf16.mxu0 %v4769_v61  ;;  %1999 = vmatprep.subr.bf16.mxu1 %v4772_v59  ;;  %v6416_v61 = vld [vmem:[#allocation54_spill] sm:$0xff]  ;;  %v6417_v59 = vld [vmem:[#allocation55_spill] sm:$0xff] }
 0x510   :  { %1959 = vmatpush1.bf16.msra.mxu0 %v4775_v60  ;;  %2000 = vmatpush1.bf16.msra.mxu1 %v4778_v62  ;;  %v6412_v60 = vld [vmem:[#allocation50_spill] sm:$0xff]  ;;  %v6413_v62 = vld [vmem:[#allocation51_spill] sm:$0xff] }
 0x511   :  { %2082 = vmatprep.subr.bf16.mxu0 %v4900_v48  ;;  %2123 = vmatprep.subr.bf16.mxu1 %v4903_v8 }
 0x513   :  { %1977 = vmatmul.mubr.bf16.vlgmr.msra.gmra.mxu0 %v1836_v40  ;;  %2018 = vmatmul.mubr.bf16.vlgmr.msra.gmra.mxu1 %v1836_v40  ;;  %v6448_v40 = vld [vmem:[#allocation33_spill] sm:$0xff] }
 0x514   :  { %2083 = vmatpush1.bf16.msra.mxu0 %v4906_v9  ;;  %2124 = vmatpush1.bf16.msra.mxu1 %v4909_v11 }
 0x515   :  { %2084 = vmatprep.subr.bf16.mxu0 %v4912_v12  ;;  %2125 = vmatprep.subr.bf16.mxu1 %v4915_v13 }
 0x518   :  { %2085 = vmatpush1.bf16.msra.mxu0 %v4918_v14  ;;  %2126 = vmatpush1.bf16.msra.mxu1 %v6396_v34 }
 0x519   :  { %2086 = vmatprep.subr.bf16.mxu0 %v6397_v63  ;;  %2127 = vmatprep.subr.bf16.mxu1 %v6398_v3 }
 0x51c   :  { %2087 = vmatpush1.bf16.msra.mxu0 %v6399_v10  ;;  %2128 = vmatpush1.bf16.msra.mxu1 %v6400_v5 }
 0x51d   :  { %2088 = vmatprep.subr.bf16.mxu0 %v6401_v0  ;;  %2129 = vmatprep.subr.bf16.mxu1 %v6402_v4 }
 0x520   :  { %2089 = vmatpush1.bf16.msra.mxu0 %v6403_v53  ;;  %2130 = vmatpush1.bf16.msra.mxu1 %v6404_v6 }
 0x521   :  { %2090 = vmatprep.subr.bf16.mxu0 %v6405_v49  ;;  %2131 = vmatprep.subr.bf16.mxu1 %v6406_v2 }
 0x524   :  { %2091 = vmatpush1.bf16.msra.mxu0 %v6407_v54  ;;  %2132 = vmatpush1.bf16.msra.mxu1 %v6408_v39 }
 0x525   :  { %2092 = vmatprep.subr.bf16.mxu0 %v6409_v55  ;;  %2133 = vmatprep.subr.bf16.mxu1 %v6410_v56 }
 0x528   :  { %2093 = vmatpush1.bf16.msra.mxu0 %v6411_v51  ;;  %2134 = vmatpush1.bf16.msra.mxu1 %v6412_v60 }
 0x529   :  { %2094 = vmatprep.subr.bf16.mxu0 %v6413_v62  ;;  %2135 = vmatprep.subr.bf16.mxu1 %v6414_v1 }
 0x52c   :  { %2095 = vmatpush1.bf16.msra.mxu0 %v6415_v50  ;;  %2136 = vmatpush1.bf16.msra.mxu1 %v6416_v61 }
 0x52d   :  { %2096 = vmatprep.subr.bf16.mxu0 %v6417_v59  ;;  %2137 = vmatprep.subr.bf16.mxu1 %v6418_v28 }
 0x530   :  { %2097 = vmatpush1.bf16.msra.mxu0 %v6419_v52  ;;  %2138 = vmatpush1.bf16.msra.mxu1 %v6420_v35 }
 0x531   :  { %2098 = vmatprep.subr.bf16.mxu0 %v6421_v58  ;;  %2139 = vmatprep.subr.bf16.mxu1 %v6422_v43 }
 0x534   :  { %2099 = vmatpush2.bf16.msra.mxu0 %v6423_v44  ;;  %2140 = vmatpush2.bf16.msra.mxu1 %v6424_v46 }
 0x535   :  { %2100 = vmatprep.subr.bf16.mxu0 %v6425_v47  ;;  %2141 = vmatprep.subr.bf16.mxu1 %v6426_v38 }
 0x538   :  { %2101 = vmatpush2.bf16.msra.mxu0 %v6427_v23  ;;  %2142 = vmatpush2.bf16.msra.mxu1 %v6428_v18  ;;  %v6459_v23 = vld [vmem:[#allocation78_spill] sm:$0xff] }
 0x539   :  { %2102 = vmatprep.subr.bf16.mxu0 %v6429_v17  ;;  %2143 = vmatprep.subr.bf16.mxu1 %v6430_v31  ;;  %v6458_v31 = vld [vmem:[#allocation25_spill] sm:$0xff] }
 0x53c   :  { %2103 = vmatpush2.bf16.msra.mxu0 %v6431_v32  ;;  %2144 = vmatpush2.bf16.msra.mxu1 %v6432_v22  ;;  %v6457_v22 = vld [vmem:[#allocation24_spill] sm:$0xff] }
 0x53d   :  { %2104 = vmatprep.subr.bf16.mxu0 %v6433_v26  ;;  %2145 = vmatprep.subr.bf16.mxu1 %v6434_v24 }
 0x540   :  { %2105 = vmatpush2.bf16.msra.mxu0 %v6435_v45  ;;  %2146 = vmatpush2.bf16.msra.mxu1 %v6436_v41 }
 0x541   :  { %2106 = vmatprep.subr.bf16.mxu0 %v6437_v7  ;;  %2147 = vmatprep.subr.bf16.mxu1 %v6438_v42  ;;  %v6449_v42 = vld [vmem:[#allocation82_spill] sm:$0xff] }
 0x544   :  { %2107 = vmatpush2.bf16.msra.mxu0 %v6439_v27  ;;  %2148 = vmatpush2.bf16.msra.mxu1 %v6440_v33  ;;  %v6450_v27 = vld [vmem:[#allocation83_spill] sm:$0xff]  ;;  %v6451_v33 = vld [vmem:[#allocation84_spill] sm:$0xff] }
 0x545   :  { %2108 = vmatprep.subr.bf16.mxu0 %v6441_v15  ;;  %2149 = vmatprep.subr.bf16.mxu1 %v6442_v16  ;;  %v6452_v15 = vld [vmem:[#allocation85_spill] sm:$0xff] }
 0x546   :  { %v5207_v16 = vld [vmem:[#allocation7 + $0xe4] ss:$16 sps:$4 sm:$0xff]  }
 0x547   :  { %6453 = vst [vmem:[#allocation35_spill] sm:$0xff] %v5207_v16 }
 0x548   :  { %2109 = vmatpush2.bf16.msra.mxu0 %v6443_v25  ;;  %2150 = vmatpush2.bf16.msra.mxu1 %v6444_v29  ;;  %v6454_v29 = vld [vmem:[#allocation34_spill] sm:$0xff] }
 0x549   :  { %2110 = vmatprep.subr.bf16.mxu0 %v6445_v19  ;;  %2151 = vmatprep.subr.bf16.mxu1 %v6446_v36  ;;  %v6455_v25 = vld [vmem:[#allocation22_spill] sm:$0xff] }
 0x54c   :  { %2111 = vmatpush2.bf16.msra.mxu0 %v6447_v21  ;;  %2152 = vmatpush2.bf16.msra.mxu1 %v6448_v40 }
 0x54d   :  { %2112 = vmatprep.subr.bf16.mxu0 %v6449_v42  ;;  %2153 = vmatprep.subr.bf16.mxu1 %v6450_v27  ;;  %v6456_v42 = vld [vmem:[#allocation23_spill] sm:$0xff] }
 0x550   :  { %2113 = vmatpush2.bf16.msra.mxu0 %v6451_v33  ;;  %2154 = vmatpush2.bf16.msra.mxu1 %v6452_v15 }
 0x551   :  { %2188 = vmatprep.subr.bf16.mxu0 %v5207_v16  ;;  %2229 = vmatprep.subr.bf16.mxu1 %v6454_v29 }
 0x5b3   :  { %v1872_v19 = vpop.f32.mrf.mxu0  ;;  %v1913_v36 = vpop.f32.mrf.mxu1 }
 0x5b4   :  { %v1873_v21 = vadd.f32 %v1872_v19, %v6455_v25  ;;  %v1914_v17 = vadd.f32 %v1913_v36, %v6458_v31 }
 0x5b5   :  { %v1874_v7 = vpop.f32.mrf.mxu0  ;;  %v1915_v40 = vpop.f32.mrf.mxu1 }
 0x5b6   :  { %v3207_v41 = vmul.f32 -1.442695, %v1873_v21  ;;  %v1875_v45 = vadd.f32 %v1874_v7, %v6456_v42  ;;  %v1916_v16 = vadd.f32 %v1915_v40, %v6457_v22 }
 0x5b7   :  { %v1876_v27 = vpop.f32.mrf.mxu0  ;;  %v1917_v24 = vpop.f32.mrf.mxu1 }
 0x5b8   :  { %3560 = vpow2.f32 %v3207_v41  ;;  %v3208_v33 = vmul.f32 -1.442695, %v1875_v45  ;;  %v3209_v32 = vmul.f32 -1.442695, %v1916_v16 }
 0x5b9   :  { %v1877_v15 = vpop.f32.mrf.mxu0  ;;  %v1918_v26 = vpop.f32.mrf.mxu1 }
 0x5ba   :  { %3562 = vpow2.f32 %v3208_v33 }
 0x5bb   :  { %3564 = vpow2.f32 %v3209_v32 }
 0x5c5   :  { %v3561_v29 = vpop.eup %3560 }
 0x5c6   :  { %v1923_v18 = vadd.f32 1.0, %v3561_v29 }
 0x5c7   :  { %v3563_v19 = vpop.eup %3562 }
 0x5c8   :  { %3566 = vrcp.f32 %v1923_v18  ;;  %v1929_v21 = vadd.f32 1.0, %v3563_v19  ;;  %v3565_v41 = vpop.eup %3564 }
 0x5c9   :  { %3568 = vtanh.f32 %v1914_v17  ;;  %v1936_v22 = vadd.f32 1.0, %v3565_v41 }
 0x5ca   :  { %3570 = vrcp.f32 %v1929_v21 }
 0x5cb   :  { %3572 = vrcp.f32 %v1936_v22 }
 0x5d3   :  { %v1978_v7 = vpop.f32.mrf.mxu0  ;;  %v2019_v24 = vpop.f32.mrf.mxu1 }
 0x5d5   :  { %v3567_v45 = vpop.eup %3566  ;;  %v1980_v27 = vpop.f32.mrf.mxu0 }
 0x5d6   :  { %v2021_v26 = vpop.f32.mrf.mxu1  ;;  %v3569_v33 = vpop.eup %3568  ;;  %v2030_v15 = vcombine.low %v1978_v7, %v1980_v27  ;;  %v6460_v7 = vld [vmem:[#allocation80_spill] sm:$0xff] }
 0x5d7   :  { %v2031_v40 = vcombine.low %v2019_v24, %v2021_v26  ;;  %v3571_v16 = vpop.eup %3570  ;;  %v1982_v42 = vpop.f32.mrf.mxu0  ;;  %v1940_v29 = vmul.f32 %v3569_v33, %v3567_v45  ;;  %v6461_v24 = vcombine.low %v6459_v23, %v6460_v7 }
 0x5d8   :  { %v2023_v36 = vpop.f32.mrf.mxu1  ;;  %v1939_v32 = vmul.f32 %v3571_v16, %v5101_v30  ;;  %v2038_v18 = vrot.slane %v2030_v15, %v4500_v37  ;;  %v3573_v26 = vpop.eup %3572 }
 0x5d9   :  { %v2045_v17 = vrot.slane %v2031_v40, %v4500_v37  ;;  %v1983_v19 = vpop.f32.mrf.mxu0 }
 0x5da   :  { %v2024_v21 = vpop.f32.mrf.mxu1  ;;  %v5218_v25 = vadd.f32 %v1940_v29, %v1939_v32 }
 0x5db   :  { %v2046_v31 = vcombine.low %v2038_v18, %v2045_v17 }
 0x5dc   :  { %3574 = vtanh.f32 %v5218_v25 }
 0x5dd   :  { %v2048_v27 = vadd.f32 %v2046_v31, %v6461_v24 }
 0x5df   :  { %v3210_v42 = vmul.f32 -1.442695, %v2048_v27  ;;  %v2056_v41 = vrot.slane %v2048_v27, 2  ;;  %v2067_v45 = vrot.slane %v2048_v27, 6  ;;  %v2064_v29 = vrot.slane %v2048_v27, 4 }
 0x5e1   :  { %3576 = vpow2.f32 %v3210_v42  ;;  %v3211_v30 = vmul.f32 -1.442695, %v2056_v41  ;;  %v3212_v40 = vmul.f32 -1.442695, %v2067_v45 }
 0x5e3   :  { %3578 = vpow2.f32 %v3211_v30 }
 0x5e4   :  { %3580 = vpow2.f32 %v3212_v40  ;;  %v5238_v40 = vld [vmem:[#allocation7 + $0xc4] ss:$16 sps:$4 sm:$0xff]  }
 0x5e9   :  { %v3575_v33 = vpop.eup %3574 }
 0x5ea   :  { %v1943_v15 = vmul.f32 %v3575_v33, %v3573_v26 }
 0x5ec   :  { %v2081_v16 = vpack.c.bf16 %v1943_v15, %v1943_v15  ;;  %v5232_v15 = vld [vmem:[#allocation7 + $0xe0] ss:$16 sps:$4 sm:$0xff]  }
 0x5ee   :  { %v3577_v36 = vpop.eup %3576  ;;  %2114 = vmatprep.mubr.bf16.mxu0 %v2081_v16  ;;  %2155 = vmatprep.mubr.bf16.mxu1 %v2081_v16  ;;  %v5241_v16 = vld [vmem:[#allocation7 + $0xcc] ss:$16 sps:$4 sm:$0xff]  }
 0x5ef   :  { %v2052_v22 = vadd.f32 1.0, %v3577_v36  ;;  %v5246_v36 = vld [vmem:[#allocation7 + $0xc0] ss:$16 sps:$4 sm:$0xff]  }
 0x5f0   :  { %v3579_v32 = vpop.eup %3578 }
 0x5f1   :  { %3582 = vrcp.f32 %v2052_v22  ;;  %v2061_v31 = vadd.f32 1.0, %v3579_v32  ;;  %v3581_v18 = vpop.eup %3580  ;;  %v5252_v22 = vld [vmem:[#allocation7 + $0xa4] ss:$16 sps:$4 sm:$0xff]   ;;  %v5255_v32 = vld [vmem:[#allocation7 + $0xac] ss:$16 sps:$4 sm:$0xff]  }
 0x5f2   :  { %3584 = vtanh.f32 %v2064_v29  ;;  %v2072_v24 = vadd.f32 1.0, %v3581_v18  ;;  %v5249_v29 = vld [vmem:[#allocation7 + $0xc8] ss:$16 sps:$4 sm:$0xff]  }
 0x5f3   :  { %3586 = vrcp.f32 %v2061_v31  ;;  %v5258_v31 = vld [vmem:[#allocation7 + $0xa0] ss:$16 sps:$4 sm:$0xff]   ;;  %v5261_v18 = vld [vmem:[#allocation7 + $0xa8] ss:$16 sps:$4 sm:$0xff]  }
 0x5f4   :  { %3588 = vrcp.f32 %v2072_v24  ;;  %v5273_v24 = vld [vmem:[#allocation7 + $0x88] ss:$16 sps:$4 sm:$0xff]  }
 0x5f5   :  { %6462 = vst [vmem:[#allocation36_spill] sm:$0xff] %v5273_v24 }
 0x5fe   :  { %v3583_v17 = vpop.eup %3582 }
 0x5ff   :  { %v3585_v19 = vpop.eup %3584 }
 0x600   :  { %v3587_v21 = vpop.eup %3586  ;;  %v2076_v41 = vmul.f32 %v3585_v19, %v3583_v17  ;;  %v5264_v17 = vld [vmem:[#allocation7 + $0x84] ss:$16 sps:$4 sm:$0xff]   ;;  %v5267_v19 = vld [vmem:[#allocation7 + $0x8c] ss:$16 sps:$4 sm:$0xff]  }
 0x601   :  { %v2075_v42 = vmul.f32 %v3587_v21, %v5108_v20  ;;  %v3589_v27 = vpop.eup %3588  ;;  %v5235_v20 = vld [vmem:[#allocation7 + $0xe8] ss:$16 sps:$4 sm:$0xff]   ;;  %v5270_v21 = vld [vmem:[#allocation7 + $0x80] ss:$16 sps:$4 sm:$0xff]  }
 0x603   :  { %v5225_v30 = vadd.f32 %v2076_v41, %v2075_v42  ;;  %v5276_v42 = vld [vmem:[#allocation7 + $0x64] ss:$16 sps:$4 sm:$0xff]   ;;  %v5279_v41 = vld [vmem:[#allocation7 + $0x6c] ss:$16 sps:$4 sm:$0xff]  }
 0x604   :  { %6463 = vst [vmem:[#allocation37_spill] sm:$0xff] %v5276_v42  ;;  %6464 = vst [vmem:[#allocation38_spill] sm:$0xff] %v5279_v41 }
 0x605   :  { %3590 = vtanh.f32 %v5225_v30 }
 0x612   :  { %v3591_v45 = vpop.eup %3590 }
 0x613   :  { %v2079_v26 = vmul.f32 %v3591_v45, %v3589_v27  ;;  %v5282_v27 = vld [vmem:[#allocation7 + $0x60] ss:$16 sps:$4 sm:$0xff]   ;;  %v5285_v45 = vld [vmem:[#allocation7 + $0x68] ss:$16 sps:$4 sm:$0xff]  }
 0x614   :  { %6465 = vst [vmem:[#allocation39_spill] sm:$0xff] %v5282_v27  ;;  %6466 = vst [vmem:[#allocation40_spill] sm:$0xff] %v5285_v45 }
 0x615   :  { %v5228_v33 = vpack.c.bf16 %v2079_v26, %v2079_v26  ;;  %v5288_v26 = vld [vmem:[#allocation7 + $0x44] ss:$16 sps:$4 sm:$0xff]  }
 0x616   :  { %6467 = vst [vmem:[#allocation41_spill] sm:$0xff] %v5288_v26 }
 0x617   :  { %2115 = vmatmul.mubr.bf16.vlgmr.msra.gmra.mxu0 %v5228_v33  ;;  %2156 = vmatmul.mubr.bf16.vlgmr.msra.gmra.mxu1 %v5228_v33 }
 0x618   :  { %2189 = vmatpush1.bf16.msra.mxu0 %v5232_v15  ;;  %2230 = vmatpush1.bf16.msra.mxu1 %v5235_v20 }
 0x619   :  { %2190 = vmatprep.subr.bf16.mxu0 %v5238_v40  ;;  %2231 = vmatprep.subr.bf16.mxu1 %v5241_v16 }
 0x61a   :  { %2220 = vmatprep.mubr.bf16.mxu0 %v6219_v57  ;;  %2261 = vmatprep.mubr.bf16.mxu1 %v6219_v57 }
 0x61c   :  { %2191 = vmatpush1.bf16.msra.mxu0 %v5246_v36  ;;  %2232 = vmatpush1.bf16.msra.mxu1 %v5249_v29 }
 0x61d   :  { %2192 = vmatprep.subr.bf16.mxu0 %v5252_v22  ;;  %2233 = vmatprep.subr.bf16.mxu1 %v5255_v32 }
 0x620   :  { %2193 = vmatpush1.bf16.msra.mxu0 %v5258_v31  ;;  %2234 = vmatpush1.bf16.msra.mxu1 %v5261_v18 }
 0x621   :  { %2194 = vmatprep.subr.bf16.mxu0 %v5264_v17  ;;  %2235 = vmatprep.subr.bf16.mxu1 %v5267_v19 }
 0x624   :  { %2195 = vmatpush1.bf16.msra.mxu0 %v5270_v21  ;;  %2236 = vmatpush1.bf16.msra.mxu1 %v5273_v24  ;;  %v5291_v24 = vld [vmem:[#allocation7 + $0x4c] ss:$16 sps:$4 sm:$0xff]  }
 0x625   :  { %2196 = vmatprep.subr.bf16.mxu0 %v5276_v42  ;;  %2237 = vmatprep.subr.bf16.mxu1 %v5279_v41  ;;  %6468 = vst [vmem:[#allocation42_spill] sm:$0xff] %v5291_v24  ;;  %v5294_v42 = vld [vmem:[#allocation7 + $0x40] ss:$16 sps:$4 sm:$0xff]   ;;  %v5297_v41 = vld [vmem:[#allocation7 + $0x48] ss:$16 sps:$4 sm:$0xff]  }
 0x626   :  { %6469 = vst [vmem:[#allocation43_spill] sm:$0xff] %v5294_v42  ;;  %6470 = vst [vmem:[#allocation44_spill] sm:$0xff] %v5297_v41 }
 0x628   :  { %2197 = vmatpush1.bf16.msra.mxu0 %v5282_v27  ;;  %2238 = vmatpush1.bf16.msra.mxu1 %v5285_v45  ;;  %v5300_v27 = vld [vmem:[#allocation7 + $0x24] ss:$16 sps:$4 sm:$0xff]   ;;  %v5303_v45 = vld [vmem:[#allocation7 + $0x2c] ss:$16 sps:$4 sm:$0xff]  }
 0x629   :  { %2198 = vmatprep.subr.bf16.mxu0 %v5288_v26  ;;  %2239 = vmatprep.subr.bf16.mxu1 %v5291_v24  ;;  %6471 = vst [vmem:[#allocation45_spill] sm:$0xff] %v5300_v27  ;;  %6472 = vst [vmem:[#allocation46_spill] sm:$0xff] %v5303_v45  ;;  %v5306_v26 = vld [vmem:[#allocation7 + $0x20] ss:$16 sps:$4 sm:$0xff]   ;;  %v5309_v24 = vld [vmem:[#allocation7 + $0x28] ss:$16 sps:$4 sm:$0xff]  }
 0x62c   :  { %2199 = vmatpush1.bf16.msra.mxu0 %v5294_v42  ;;  %2240 = vmatpush1.bf16.msra.mxu1 %v5297_v41  ;;  %v5312_v42 = vld [vmem:[#allocation7 + $0x4] ss:$16 sps:$4 sm:$0xff]   ;;  %v5315_v41 = vld [vmem:[#allocation7 + $0xc] ss:$16 sps:$4 sm:$0xff]  }
 0x62d   :  { %2200 = vmatprep.subr.bf16.mxu0 %v5300_v27  ;;  %2241 = vmatprep.subr.bf16.mxu1 %v5303_v45  ;;  %v5318_v27 = vld [vmem:[#allocation7] ss:$16 sps:$4 sm:$0xff]   ;;  %v5321_v45 = vld [vmem:[#allocation7 + $0x8] ss:$16 sps:$4 sm:$0xff]  }
 0x630   :  { %2201 = vmatpush1.bf16.msra.mxu0 %v5306_v26  ;;  %2242 = vmatpush1.bf16.msra.mxu1 %v5309_v24 }
 0x631   :  { %2202 = vmatprep.subr.bf16.mxu0 %v5312_v42  ;;  %2243 = vmatprep.subr.bf16.mxu1 %v5315_v41 }
 0x634   :  { %2203 = vmatpush1.bf16.msra.mxu0 %v5318_v27  ;;  %2244 = vmatpush1.bf16.msra.mxu1 %v5321_v45 }
 0x635   :  { %2326 = vmatprep.subr.bf16.mxu0 %v4900_v48  ;;  %2367 = vmatprep.subr.bf16.mxu1 %v4903_v8  ;;  %v6473_v48 = vld [vmem:[#allocation65_spill] sm:$0xff]  ;;  %v6474_v8 = vld [vmem:[#allocation66_spill] sm:$0xff] }
 0x637   :  { %2221 = vmatmul.mubr.bf16.vlgmr.msra.gmra.mxu0 %v5228_v33  ;;  %2262 = vmatmul.mubr.bf16.vlgmr.msra.gmra.mxu1 %v5228_v33 }
 0x638   :  { %2327 = vmatpush1.bf16.msra.mxu0 %v4906_v9  ;;  %2368 = vmatpush1.bf16.msra.mxu1 %v4909_v11  ;;  %v6475_v9 = vld [vmem:[#allocation67_spill] sm:$0xff]  ;;  %v6476_v11 = vld [vmem:[#allocation68_spill] sm:$0xff] }
 0x639   :  { %2328 = vmatprep.subr.bf16.mxu0 %v4912_v12  ;;  %2369 = vmatprep.subr.bf16.mxu1 %v4915_v13  ;;  %v6477_v12 = vld [vmem:[#allocation69_spill] sm:$0xff]  ;;  %v6478_v13 = vld [vmem:[#allocation70_spill] sm:$0xff] }
 0x63c   :  { %2329 = vmatpush1.bf16.msra.mxu0 %v4918_v14  ;;  %2370 = vmatpush1.bf16.msra.mxu1 %v6396_v34  ;;  %v6479_v14 = vld [vmem:[#allocation71_spill] sm:$0xff]  ;;  %v6480_v34 = vld [vmem:[#allocation72_spill] sm:$0xff] }
 0x63d   :  { %2330 = vmatprep.subr.bf16.mxu0 %v6397_v63  ;;  %2371 = vmatprep.subr.bf16.mxu1 %v6398_v3  ;;  %v6481_v63 = vld [vmem:[#allocation73_spill] sm:$0xff]  ;;  %v6482_v3 = vld [vmem:[#allocation74_spill] sm:$0xff] }
 0x640   :  { %2331 = vmatpush1.bf16.msra.mxu0 %v6399_v10  ;;  %2372 = vmatpush1.bf16.msra.mxu1 %v6400_v5  ;;  %v6483_v10 = vld [vmem:[#allocation75_spill] sm:$0xff]  ;;  %v6484_v5 = vld [vmem:[#allocation21_spill] sm:$0xff] }
 0x641   :  { %2332 = vmatprep.subr.bf16.mxu0 %v6401_v0  ;;  %2373 = vmatprep.subr.bf16.mxu1 %v6402_v4  ;;  %v6485_v0 = vld [vmem:[#allocation76_spill] sm:$0xff]  ;;  %v6486_v4 = vld [vmem:[#allocation77_spill] sm:$0xff] }
 0x644   :  { %2333 = vmatpush1.bf16.msra.mxu0 %v6403_v53  ;;  %2374 = vmatpush1.bf16.msra.mxu1 %v6404_v6  ;;  %v6487_v53 = vld [vmem:[#allocation26_spill] sm:$0xff]  ;;  %v6488_v6 = vld [vmem:[#allocation27_spill] sm:$0xff] }
 0x645   :  { %2334 = vmatprep.subr.bf16.mxu0 %v6405_v49  ;;  %2375 = vmatprep.subr.bf16.mxu1 %v6406_v2  ;;  %v6489_v49 = vld [vmem:[#allocation28_spill] sm:$0xff]  ;;  %v6490_v2 = vld [vmem:[#allocation29_spill] sm:$0xff] }
 0x648   :  { %2335 = vmatpush1.bf16.msra.mxu0 %v6407_v54  ;;  %2376 = vmatpush1.bf16.msra.mxu1 %v6408_v39  ;;  %v6491_v54 = vld [vmem:[#allocation30_spill] sm:$0xff]  ;;  %v6492_v39 = vld [vmem:[#allocation31_spill] sm:$0xff] }
 0x649   :  { %2336 = vmatprep.subr.bf16.mxu0 %v6409_v55  ;;  %2377 = vmatprep.subr.bf16.mxu1 %v6410_v56  ;;  %v6493_v55 = vld [vmem:[#allocation32_spill] sm:$0xff]  ;;  %v6494_v56 = vld [vmem:[#allocation33_spill] sm:$0xff] }
 0x64c   :  { %2337 = vmatpush1.bf16.msra.mxu0 %v6411_v51  ;;  %2378 = vmatpush1.bf16.msra.mxu1 %v6412_v60  ;;  %v6495_v51 = vld [vmem:[#allocation82_spill] sm:$0xff]  ;;  %v6496_v60 = vld [vmem:[#allocation83_spill] sm:$0xff] }
 0x64d   :  { %2338 = vmatprep.subr.bf16.mxu0 %v6413_v62  ;;  %2379 = vmatprep.subr.bf16.mxu1 %v6414_v1  ;;  %v6497_v62 = vld [vmem:[#allocation84_spill] sm:$0xff]  ;;  %v6498_v1 = vld [vmem:[#allocation85_spill] sm:$0xff] }
 0x650   :  { %2339 = vmatpush1.bf16.msra.mxu0 %v6415_v50  ;;  %2380 = vmatpush1.bf16.msra.mxu1 %v6416_v61  ;;  %v6499_v50 = vld [vmem:[#allocation35_spill] sm:$0xff] }
 0x651   :  { %2340 = vmatprep.subr.bf16.mxu0 %v6417_v59  ;;  %2381 = vmatprep.subr.bf16.mxu1 %v6418_v28  ;;  %v5391_v61 = vld [vmem:[#allocation7 + $0xec] ss:$16 sps:$4 sm:$0xff]  }
 0x654   :  { %2341 = vmatpush1.bf16.msra.mxu0 %v6419_v52  ;;  %2382 = vmatpush1.bf16.msra.mxu1 %v6420_v35  ;;  %v6500_v52 = vld [vmem:[#allocation22_spill] sm:$0xff] }
 0x655   :  { %2342 = vmatprep.subr.bf16.mxu0 %v6421_v58  ;;  %2383 = vmatprep.subr.bf16.mxu1 %v6422_v43 }
 0x658   :  { %2343 = vmatpush2.bf16.msra.mxu0 %v6423_v44  ;;  %2384 = vmatpush2.bf16.msra.mxu1 %v6424_v46  ;;  %v6501_v46 = vld [vmem:[#allocation23_spill] sm:$0xff] }
 0x659   :  { %2344 = vmatprep.subr.bf16.mxu0 %v6425_v47  ;;  %2385 = vmatprep.subr.bf16.mxu1 %v6426_v38 }
 0x65c   :  { %2345 = vmatpush2.bf16.msra.mxu0 %v6473_v48  ;;  %2386 = vmatpush2.bf16.msra.mxu1 %v6474_v8 }
 0x65d   :  { %2346 = vmatprep.subr.bf16.mxu0 %v6475_v9  ;;  %2387 = vmatprep.subr.bf16.mxu1 %v6476_v11  ;;  %v6502_v11 = vld [vmem:[#allocation24_spill] sm:$0xff] }
 0x660   :  { %2347 = vmatpush2.bf16.msra.mxu0 %v6477_v12  ;;  %2388 = vmatpush2.bf16.msra.mxu1 %v6478_v13 }
 0x661   :  { %2348 = vmatprep.subr.bf16.mxu0 %v6479_v14  ;;  %2389 = vmatprep.subr.bf16.mxu1 %v6480_v34  ;;  %v6503_v34 = vld [vmem:[#allocation25_spill] sm:$0xff] }
 0x664   :  { %2349 = vmatpush2.bf16.msra.mxu0 %v6481_v63  ;;  %2390 = vmatpush2.bf16.msra.mxu1 %v6482_v3 }
 0x665   :  { %2350 = vmatprep.subr.bf16.mxu0 %v6483_v10  ;;  %2391 = vmatprep.subr.bf16.mxu1 %v6484_v5 }
 0x668   :  { %2351 = vmatpush2.bf16.msra.mxu0 %v6485_v0  ;;  %2392 = vmatpush2.bf16.msra.mxu1 %v6486_v4 }
 0x669   :  { %2352 = vmatprep.subr.bf16.mxu0 %v6487_v53  ;;  %2393 = vmatprep.subr.bf16.mxu1 %v6488_v6 }
 0x66c   :  { %2353 = vmatpush2.bf16.msra.mxu0 %v6489_v49  ;;  %2394 = vmatpush2.bf16.msra.mxu1 %v6490_v2 }
 0x66d   :  { %2354 = vmatprep.subr.bf16.mxu0 %v6491_v54  ;;  %2395 = vmatprep.subr.bf16.mxu1 %v6492_v39 }
 0x670   :  { %2355 = vmatpush2.bf16.msra.mxu0 %v6493_v55  ;;  %2396 = vmatpush2.bf16.msra.mxu1 %v6494_v56 }
 0x671   :  { %2356 = vmatprep.subr.bf16.mxu0 %v6495_v51  ;;  %2397 = vmatprep.subr.bf16.mxu1 %v6496_v60 }
 0x674   :  { %2357 = vmatpush2.bf16.msra.mxu0 %v6497_v62  ;;  %2398 = vmatpush2.bf16.msra.mxu1 %v6498_v1 }
 0x675   :  { %2432 = vmatprep.subr.bf16.mxu0 %v6499_v50  ;;  %2473 = vmatprep.subr.bf16.mxu1 %v5391_v61 }
 0x6d7   :  { %v2116_v59 = vpop.f32.mrf.mxu0  ;;  %v2157_v28 = vpop.f32.mrf.mxu1 }
 0x6d8   :  { %v2117_v35 = vadd.f32 %v2116_v59, %v6500_v52  ;;  %v2158_v63 = vadd.f32 %v2157_v28, %v6503_v34 }
 0x6d9   :  { %v2118_v58 = vpop.f32.mrf.mxu0  ;;  %v2159_v43 = vpop.f32.mrf.mxu1 }
 0x6da   :  { %v3213_v44 = vmul.f32 -1.442695, %v2117_v35  ;;  %v2119_v47 = vadd.f32 %v2118_v58, %v6501_v46  ;;  %v2160_v12 = vadd.f32 %v2159_v43, %v6502_v11 }
 0x6db   :  { %v2120_v38 = vpop.f32.mrf.mxu0  ;;  %v2161_v33 = vpop.f32.mrf.mxu1 }
 0x6dc   :  { %3592 = vpow2.f32 %v3213_v44  ;;  %v3214_v48 = vmul.f32 -1.442695, %v2119_v47  ;;  %v3215_v13 = vmul.f32 -1.442695, %v2160_v12  ;;  %v6504_v38 = vcombine.high %v6459_v23, %v6460_v7 }
 0x6dd   :  { %v2121_v8 = vpop.f32.mrf.mxu0  ;;  %v2162_v9 = vpop.f32.mrf.mxu1 }
 0x6de   :  { %3594 = vpow2.f32 %v3214_v48 }
 0x6df   :  { %3596 = vpow2.f32 %v3215_v13 }
 0x6e9   :  { %v3593_v14 = vpop.eup %3592 }
 0x6ea   :  { %v2167_v3 = vadd.f32 1.0, %v3593_v14 }
 0x6eb   :  { %v3595_v10 = vpop.eup %3594 }
 0x6ec   :  { %3598 = vrcp.f32 %v2167_v3  ;;  %v2173_v5 = vadd.f32 1.0, %v3595_v10  ;;  %v3597_v53 = vpop.eup %3596 }
 0x6ed   :  { %3600 = vtanh.f32 %v2158_v63  ;;  %v2180_v51 = vadd.f32 1.0, %v3597_v53 }
 0x6ee   :  { %3602 = vrcp.f32 %v2173_v5 }
 0x6ef   :  { %3604 = vrcp.f32 %v2180_v51 }
 0x6f7   :  { %v2222_v0 = vpop.f32.mrf.mxu0  ;;  %v2263_v4 = vpop.f32.mrf.mxu1 }
 0x6f9   :  { %v3599_v6 = vpop.eup %3598  ;;  %v2224_v49 = vpop.f32.mrf.mxu0 }
 0x6fa   :  { %v2265_v2 = vpop.f32.mrf.mxu1  ;;  %v3601_v54 = vpop.eup %3600  ;;  %v2274_v39 = vcombine.low %v2222_v0, %v2224_v49 }
 0x6fb   :  { %v2275_v55 = vcombine.low %v2263_v4, %v2265_v2  ;;  %v3603_v56 = vpop.eup %3602  ;;  %v2226_v60 = vpop.f32.mrf.mxu0  ;;  %v2184_v1 = vmul.f32 %v3601_v54, %v3599_v6 }
 0x6fc   :  { %v2267_v62 = vpop.f32.mrf.mxu1  ;;  %v2183_v59 = vmul.f32 %v3603_v56, %v5218_v25  ;;  %v2282_v28 = vrot.slane %v2274_v39, %v4500_v37  ;;  %v3605_v12 = vpop.eup %3604 }
 0x6fd   :  { %v2289_v35 = vrot.slane %v2275_v55, %v4500_v37  ;;  %v2227_v58 = vpop.f32.mrf.mxu0 }
 0x6fe   :  { %v2268_v43 = vpop.f32.mrf.mxu1  ;;  %v5401_v47 = vadd.f32 %v2184_v1, %v2183_v59  ;;  %v6506_v1 = vld [vmem:[#allocation37_spill] sm:$0xff]  ;;  %v6507_v59 = vld [vmem:[#allocation38_spill] sm:$0xff] }
 0x6ff   :  { %v2290_v44 = vcombine.low %v2282_v28, %v2289_v35  ;;  %v6508_v28 = vld [vmem:[#allocation39_spill] sm:$0xff]  ;;  %v6509_v35 = vld [vmem:[#allocation40_spill] sm:$0xff]  ;;  %v6510_v58 = vld [vmem:[#allocation41_spill] sm:$0xff] }
 0x700   :  { %3606 = vtanh.f32 %v5401_v47  ;;  %v6511_v43 = vld [vmem:[#allocation42_spill] sm:$0xff] }
 0x701   :  { %v2292_v33 = vadd.f32 %v2290_v44, %v6504_v38  ;;  %v6512_v44 = vld [vmem:[#allocation43_spill] sm:$0xff]  ;;  %v6513_v38 = vld [vmem:[#allocation44_spill] sm:$0xff] }
 0x703   :  { %v3216_v48 = vmul.f32 -1.442695, %v2292_v33  ;;  %v2300_v8 = vrot.slane %v2292_v33, 2  ;;  %v2311_v9 = vrot.slane %v2292_v33, 6  ;;  %v2308_v5 = vrot.slane %v2292_v33, 4  ;;  %v6514_v33 = vld [vmem:[#allocation45_spill] sm:$0xff] }
 0x705   :  { %3608 = vpow2.f32 %v3216_v48  ;;  %v3217_v25 = vmul.f32 -1.442695, %v2300_v8  ;;  %v3218_v63 = vmul.f32 -1.442695, %v2311_v9  ;;  %v6515_v48 = vld [vmem:[#allocation46_spill] sm:$0xff] }
 0x706   :  { %v5443_v8 = vld [vmem:[#allocation11 + $0xe4] ss:$16 sps:$4 sm:$0xff]   ;;  %v5449_v9 = vld [vmem:[#allocation11 + $0xe0] ss:$16 sps:$4 sm:$0xff]  }
 0x707   :  { %3610 = vpow2.f32 %v3217_v25  ;;  %v5446_v25 = vld [vmem:[#allocation11 + $0xec] ss:$16 sps:$4 sm:$0xff]  }
 0x708   :  { %3612 = vpow2.f32 %v3218_v63  ;;  %v5461_v63 = vld [vmem:[#allocation11 + $0xc0] ss:$16 sps:$4 sm:$0xff]  }
 0x70d   :  { %v3607_v13 = vpop.eup %3606 }
 0x70e   :  { %v2187_v14 = vmul.f32 %v3607_v13, %v3605_v12  ;;  %v5452_v12 = vld [vmem:[#allocation11 + $0xe8] ss:$16 sps:$4 sm:$0xff]   ;;  %v5455_v13 = vld [vmem:[#allocation11 + $0xc4] ss:$16 sps:$4 sm:$0xff]  }
 0x710   :  { %v2325_v3 = vpack.c.bf16 %v2187_v14, %v2187_v14  ;;  %v5458_v14 = vld [vmem:[#allocation11 + $0xcc] ss:$16 sps:$4 sm:$0xff]  }
 0x712   :  { %v3609_v10 = vpop.eup %3608  ;;  %2358 = vmatprep.mubr.bf16.mxu0 %v2325_v3  ;;  %2399 = vmatprep.mubr.bf16.mxu1 %v2325_v3  ;;  %v5464_v3 = vld [vmem:[#allocation11 + $0xc8] ss:$16 sps:$4 sm:$0xff]  }
 0x713   :  { %v2296_v0 = vadd.f32 1.0, %v3609_v10  ;;  %v5467_v10 = vld [vmem:[#allocation11 + $0xa4] ss:$16 sps:$4 sm:$0xff]  }
 0x714   :  { %v3611_v23 = vpop.eup %3610  ;;  %6516 = vst [vmem:[#allocation47_spill] sm:$0xff] %v5467_v10 }
 0x715   :  { %3614 = vrcp.f32 %v2296_v0  ;;  %v2305_v7 = vadd.f32 1.0, %v3611_v23  ;;  %v3613_v4 = vpop.eup %3612  ;;  %v5473_v0 = vld [vmem:[#allocation11 + $0xa0] ss:$16 sps:$4 sm:$0xff]   ;;  %v5476_v23 = vld [vmem:[#allocation11 + $0xa8] ss:$16 sps:$4 sm:$0xff]  }
 0x716   :  { %3616 = vtanh.f32 %v2308_v5  ;;  %v2316_v2 = vadd.f32 1.0, %v3613_v4  ;;  %v5470_v5 = vld [vmem:[#allocation11 + $0xac] ss:$16 sps:$4 sm:$0xff]   ;;  %6518 = vst [vmem:[#allocation20_spill] sm:$0xff] %v5473_v0  ;;  %6519 = vst [vmem:[#allocation49_spill] sm:$0xff] %v5476_v23 }
 0x717   :  { %3618 = vrcp.f32 %v2305_v7  ;;  %6517 = vst [vmem:[#allocation48_spill] sm:$0xff] %v5470_v5  ;;  %v5479_v7 = vld [vmem:[#allocation11 + $0x84] ss:$16 sps:$4 sm:$0xff]   ;;  %v5482_v4 = vld [vmem:[#allocation11 + $0x8c] ss:$16 sps:$4 sm:$0xff]  }
 0x718   :  { %3620 = vrcp.f32 %v2316_v2  ;;  %6520 = vst [vmem:[#allocation50_spill] sm:$0xff] %v5479_v7  ;;  %6521 = vst [vmem:[#allocation51_spill] sm:$0xff] %v5482_v4  ;;  %v5494_v2 = vld [vmem:[#allocation11 + $0x6c] ss:$16 sps:$4 sm:$0xff]  }
 0x719   :  { %6525 = vst [vmem:[#allocation55_spill] sm:$0xff] %v5494_v2 }
 0x722   :  { %v3615_v53 = vpop.eup %3614 }
 0x723   :  { %v3617_v6 = vpop.eup %3616 }
 0x724   :  { %v3619_v49 = vpop.eup %3618  ;;  %v2320_v39 = vmul.f32 %v3617_v6, %v3615_v53  ;;  %v5485_v53 = vld [vmem:[#allocation11 + $0x80] ss:$16 sps:$4 sm:$0xff]   ;;  %v5488_v6 = vld [vmem:[#allocation11 + $0x88] ss:$16 sps:$4 sm:$0xff]  }
 0x725   :  { %v2319_v54 = vmul.f32 %v3619_v49, %v5225_v30  ;;  %v3621_v56 = vpop.eup %3620  ;;  %v6505_v30 = vld [vmem:[#allocation36_spill] sm:$0xff]  ;;  %6522 = vst [vmem:[#allocation52_spill] sm:$0xff] %v5485_v53  ;;  %6523 = vst [vmem:[#allocation53_spill] sm:$0xff] %v5488_v6  ;;  %v5491_v49 = vld [vmem:[#allocation11 + $0x64] ss:$16 sps:$4 sm:$0xff]  }
 0x726   :  { %6524 = vst [vmem:[#allocation54_spill] sm:$0xff] %v5491_v49 }
 0x727   :  { %v5408_v55 = vadd.f32 %v2320_v39, %v2319_v54  ;;  %v5497_v54 = vld [vmem:[#allocation11 + $0x60] ss:$16 sps:$4 sm:$0xff]   ;;  %v5500_v39 = vld [vmem:[#allocation11 + $0x68] ss:$16 sps:$4 sm:$0xff]  }
 0x728   :  { %6526 = vst [vmem:[#allocation56_spill] sm:$0xff] %v5497_v54  ;;  %6527 = vst [vmem:[#allocation57_spill] sm:$0xff] %v5500_v39 }
 0x729   :  { %3622 = vtanh.f32 %v5408_v55 }
 0x736   :  { %v3623_v51 = vpop.eup %3622 }
 0x737   :  { %v2323_v60 = vmul.f32 %v3623_v51, %v3621_v56  ;;  %v5503_v56 = vld [vmem:[#allocation11 + $0x44] ss:$16 sps:$4 sm:$0xff]   ;;  %v5506_v51 = vld [vmem:[#allocation11 + $0x4c] ss:$16 sps:$4 sm:$0xff]  }
 0x738   :  { %6528 = vst [vmem:[#allocation58_spill] sm:$0xff] %v5503_v56  ;;  %6529 = vst [vmem:[#allocation59_spill] sm:$0xff] %v5506_v51 }
 0x739   :  { %v2324_v62 = vpack.c.bf16 %v2323_v60, %v2323_v60  ;;  %v5509_v60 = vld [vmem:[#allocation11 + $0x40] ss:$16 sps:$4 sm:$0xff]  }
 0x73a   :  { %6530 = vst [vmem:[#allocation60_spill] sm:$0xff] %v5509_v60 }
 0x73b   :  { %2359 = vmatmul.mubr.bf16.vlgmr.msra.gmra.mxu0 %v2324_v62  ;;  %2400 = vmatmul.mubr.bf16.vlgmr.msra.gmra.mxu1 %v2324_v62 }
 0x73c   :  { %2433 = vmatpush1.bf16.msra.mxu0 %v5232_v15  ;;  %2474 = vmatpush1.bf16.msra.mxu1 %v5235_v20 }
 0x73d   :  { %2434 = vmatprep.subr.bf16.mxu0 %v5238_v40  ;;  %2475 = vmatprep.subr.bf16.mxu1 %v5241_v16 }
 0x73e   :  { %2464 = vmatprep.mubr.bf16.mxu0 %v6219_v57  ;;  %2505 = vmatprep.mubr.bf16.mxu1 %v6219_v57 }
 0x740   :  { %2435 = vmatpush1.bf16.msra.mxu0 %v5246_v36  ;;  %2476 = vmatpush1.bf16.msra.mxu1 %v5249_v29 }
 0x741   :  { %2436 = vmatprep.subr.bf16.mxu0 %v5252_v22  ;;  %2477 = vmatprep.subr.bf16.mxu1 %v5255_v32 }
 0x744   :  { %2437 = vmatpush1.bf16.msra.mxu0 %v5258_v31  ;;  %2478 = vmatpush1.bf16.msra.mxu1 %v5261_v18 }
 0x745   :  { %2438 = vmatprep.subr.bf16.mxu0 %v5264_v17  ;;  %2479 = vmatprep.subr.bf16.mxu1 %v5267_v19 }
 0x748   :  { %2439 = vmatpush1.bf16.msra.mxu0 %v5270_v21  ;;  %2480 = vmatpush1.bf16.msra.mxu1 %v6505_v30 }
 0x749   :  { %2440 = vmatprep.subr.bf16.mxu0 %v6506_v1  ;;  %2481 = vmatprep.subr.bf16.mxu1 %v6507_v59 }
 0x74c   :  { %2441 = vmatpush1.bf16.msra.mxu0 %v6508_v28  ;;  %2482 = vmatpush1.bf16.msra.mxu1 %v6509_v35 }
 0x74d   :  { %2442 = vmatprep.subr.bf16.mxu0 %v6510_v58  ;;  %2483 = vmatprep.subr.bf16.mxu1 %v6511_v43 }
 0x750   :  { %2443 = vmatpush1.bf16.msra.mxu0 %v6512_v44  ;;  %2484 = vmatpush1.bf16.msra.mxu1 %v6513_v38 }
 0x751   :  { %2444 = vmatprep.subr.bf16.mxu0 %v6514_v33  ;;  %2485 = vmatprep.subr.bf16.mxu1 %v6515_v48 }
 0x754   :  { %2445 = vmatpush1.bf16.msra.mxu0 %v5306_v26  ;;  %2486 = vmatpush1.bf16.msra.mxu1 %v5309_v24 }
 0x755   :  { %2446 = vmatprep.subr.bf16.mxu0 %v5312_v42  ;;  %2487 = vmatprep.subr.bf16.mxu1 %v5315_v41 }
 0x758   :  { %2447 = vmatpush1.bf16.msra.mxu0 %v5318_v27  ;;  %2488 = vmatpush1.bf16.msra.mxu1 %v5321_v45 }
 0x759   :  { %2570 = vmatprep.subr.bf16.mxu0 %v5443_v8  ;;  %2611 = vmatprep.subr.bf16.mxu1 %v5446_v25 }
 0x75b   :  { %2465 = vmatmul.mubr.bf16.vlgmr.msra.gmra.mxu0 %v2324_v62  ;;  %2506 = vmatmul.mubr.bf16.vlgmr.msra.gmra.mxu1 %v2324_v62  ;;  %v5512_v62 = vld [vmem:[#allocation11 + $0x48] ss:$16 sps:$4 sm:$0xff]  }
 0x75c   :  { %2571 = vmatpush1.bf16.msra.mxu0 %v5449_v9  ;;  %2612 = vmatpush1.bf16.msra.mxu1 %v5452_v12  ;;  %6531 = vst [vmem:[#allocation61_spill] sm:$0xff] %v5512_v62 }
 0x75d   :  { %2572 = vmatprep.subr.bf16.mxu0 %v5455_v13  ;;  %2613 = vmatprep.subr.bf16.mxu1 %v5458_v14 }
 0x760   :  { %2573 = vmatpush1.bf16.msra.mxu0 %v5461_v63  ;;  %2614 = vmatpush1.bf16.msra.mxu1 %v5464_v3 }
 0x761   :  { %2574 = vmatprep.subr.bf16.mxu0 %v5467_v10  ;;  %2615 = vmatprep.subr.bf16.mxu1 %v5470_v5  ;;  %v6572_v10 = vld [vmem:[#allocation79_spill] sm:$0xff] }
 0x764   :  { %2575 = vmatpush1.bf16.msra.mxu0 %v5473_v0  ;;  %2616 = vmatpush1.bf16.msra.mxu1 %v5476_v23 }
 0x765   :  { %2576 = vmatprep.subr.bf16.mxu0 %v5479_v7  ;;  %2617 = vmatprep.subr.bf16.mxu1 %v5482_v4 }
 0x768   :  { %2577 = vmatpush1.bf16.msra.mxu0 %v5485_v53  ;;  %2618 = vmatpush1.bf16.msra.mxu1 %v5488_v6 }
 0x769   :  { %2578 = vmatprep.subr.bf16.mxu0 %v5491_v49  ;;  %2619 = vmatprep.subr.bf16.mxu1 %v5494_v2 }
 0x76c   :  { %2579 = vmatpush1.bf16.msra.mxu0 %v5497_v54  ;;  %2620 = vmatpush1.bf16.msra.mxu1 %v5500_v39  ;;  %v5515_v54 = vld [vmem:[#allocation11 + $0x24] ss:$16 sps:$4 sm:$0xff]   ;;  %v5518_v39 = vld [vmem:[#allocation11 + $0x2c] ss:$16 sps:$4 sm:$0xff]  }
 0x76d   :  { %2580 = vmatprep.subr.bf16.mxu0 %v5503_v56  ;;  %2621 = vmatprep.subr.bf16.mxu1 %v5506_v51  ;;  %6532 = vst [vmem:[#allocation62_spill] sm:$0xff] %v5515_v54  ;;  %6533 = vst [vmem:[#allocation63_spill] sm:$0xff] %v5518_v39  ;;  %v5521_v56 = vld [vmem:[#allocation11 + $0x20] ss:$16 sps:$4 sm:$0xff]   ;;  %v5524_v51 = vld [vmem:[#allocation11 + $0x28] ss:$16 sps:$4 sm:$0xff]  }
 0x76e   :  { %6534 = vst [vmem:[#allocation64_spill] sm:$0xff] %v5521_v56  ;;  %6535 = vst [vmem:[#allocation34_spill] sm:$0xff] %v5524_v51 }
 0x770   :  { %2581 = vmatpush1.bf16.msra.mxu0 %v5509_v60  ;;  %2622 = vmatpush1.bf16.msra.mxu1 %v5512_v62  ;;  %v5527_v60 = vld [vmem:[#allocation11 + $0x4] ss:$16 sps:$4 sm:$0xff]   ;;  %v5530_v62 = vld [vmem:[#allocation11 + $0xc] ss:$16 sps:$4 sm:$0xff]  }
 0x771   :  { %2582 = vmatprep.subr.bf16.mxu0 %v5515_v54  ;;  %2623 = vmatprep.subr.bf16.mxu1 %v5518_v39  ;;  %6536 = vst [vmem:[#allocation78_spill] sm:$0xff] %v5527_v60  ;;  %6537 = vst [vmem:[#allocation80_spill] sm:$0xff] %v5530_v62  ;;  %v5533_v54 = vld [vmem:[#allocation11] ss:$16 sps:$4 sm:$0xff]   ;;  %v5536_v39 = vld [vmem:[#allocation11 + $0x8] ss:$16 sps:$4 sm:$0xff]  }
 0x772   :  { %6538 = vst [vmem:[#allocation65_spill] sm:$0xff] %v5533_v54  ;;  %6539 = vst [vmem:[#allocation66_spill] sm:$0xff] %v5536_v39 }
 0x774   :  { %2583 = vmatpush1.bf16.msra.mxu0 %v5521_v56  ;;  %2624 = vmatpush1.bf16.msra.mxu1 %v5524_v51  ;;  %v5539_v56 = vld [vmem:[#allocation11 + $0x1e4] ss:$16 sps:$4 sm:$0xff]   ;;  %v5542_v51 = vld [vmem:[#allocation11 + $0x1ec] ss:$16 sps:$4 sm:$0xff]  }
 0x775   :  { %2584 = vmatprep.subr.bf16.mxu0 %v5527_v60  ;;  %2625 = vmatprep.subr.bf16.mxu1 %v5530_v62  ;;  %6540 = vst [vmem:[#allocation67_spill] sm:$0xff] %v5539_v56  ;;  %6541 = vst [vmem:[#allocation68_spill] sm:$0xff] %v5542_v51  ;;  %v5545_v60 = vld [vmem:[#allocation11 + $0x1e0] ss:$16 sps:$4 sm:$0xff]   ;;  %v5548_v62 = vld [vmem:[#allocation11 + $0x1e8] ss:$16 sps:$4 sm:$0xff]  }
 0x776   :  { %6542 = vst [vmem:[#allocation69_spill] sm:$0xff] %v5545_v60  ;;  %6543 = vst [vmem:[#allocation70_spill] sm:$0xff] %v5548_v62 }
 0x778   :  { %2585 = vmatpush1.bf16.msra.mxu0 %v5533_v54  ;;  %2626 = vmatpush1.bf16.msra.mxu1 %v5536_v39  ;;  %v5551_v54 = vld [vmem:[#allocation11 + $0x1c4] ss:$16 sps:$4 sm:$0xff]   ;;  %v5554_v39 = vld [vmem:[#allocation11 + $0x1cc] ss:$16 sps:$4 sm:$0xff]  }
 0x779   :  { %2586 = vmatprep.subr.bf16.mxu0 %v5539_v56  ;;  %2627 = vmatprep.subr.bf16.mxu1 %v5542_v51  ;;  %6544 = vst [vmem:[#allocation71_spill] sm:$0xff] %v5551_v54  ;;  %6545 = vst [vmem:[#allocation72_spill] sm:$0xff] %v5554_v39  ;;  %v5557_v56 = vld [vmem:[#allocation11 + $0x1c0] ss:$16 sps:$4 sm:$0xff]   ;;  %v5560_v51 = vld [vmem:[#allocation11 + $0x1c8] ss:$16 sps:$4 sm:$0xff]  }
 0x77a   :  { %6546 = vst [vmem:[#allocation73_spill] sm:$0xff] %v5557_v56  ;;  %6547 = vst [vmem:[#allocation74_spill] sm:$0xff] %v5560_v51 }
 0x77c   :  { %2587 = vmatpush2.bf16.msra.mxu0 %v5545_v60  ;;  %2628 = vmatpush2.bf16.msra.mxu1 %v5548_v62  ;;  %v5563_v60 = vld [vmem:[#allocation11 + $0x1a4] ss:$16 sps:$4 sm:$0xff]   ;;  %v5566_v62 = vld [vmem:[#allocation11 + $0x1ac] ss:$16 sps:$4 sm:$0xff]  }
 0x77d   :  { %2588 = vmatprep.subr.bf16.mxu0 %v5551_v54  ;;  %2629 = vmatprep.subr.bf16.mxu1 %v5554_v39  ;;  %6548 = vst [vmem:[#allocation75_spill] sm:$0xff] %v5563_v60  ;;  %6549 = vst [vmem:[#allocation21_spill] sm:$0xff] %v5566_v62  ;;  %v5569_v54 = vld [vmem:[#allocation11 + $0x1a0] ss:$16 sps:$4 sm:$0xff]   ;;  %v5572_v39 = vld [vmem:[#allocation11 + $0x1a8] ss:$16 sps:$4 sm:$0xff]  }
 0x77e   :  { %6550 = vst [vmem:[#allocation76_spill] sm:$0xff] %v5569_v54  ;;  %6551 = vst [vmem:[#allocation77_spill] sm:$0xff] %v5572_v39 }
 0x780   :  { %2589 = vmatpush2.bf16.msra.mxu0 %v5557_v56  ;;  %2630 = vmatpush2.bf16.msra.mxu1 %v5560_v51  ;;  %v5575_v56 = vld [vmem:[#allocation11 + $0x184] ss:$16 sps:$4 sm:$0xff]   ;;  %v5578_v51 = vld [vmem:[#allocation11 + $0x18c] ss:$16 sps:$4 sm:$0xff]  }
 0x781   :  { %2590 = vmatprep.subr.bf16.mxu0 %v5563_v60  ;;  %2631 = vmatprep.subr.bf16.mxu1 %v5566_v62  ;;  %6552 = vst [vmem:[#allocation26_spill] sm:$0xff] %v5575_v56  ;;  %6553 = vst [vmem:[#allocation27_spill] sm:$0xff] %v5578_v51  ;;  %v5581_v60 = vld [vmem:[#allocation11 + $0x180] ss:$16 sps:$4 sm:$0xff]   ;;  %v5584_v62 = vld [vmem:[#allocation11 + $0x188] ss:$16 sps:$4 sm:$0xff]  }
 0x782   :  { %6554 = vst [vmem:[#allocation28_spill] sm:$0xff] %v5581_v60  ;;  %6555 = vst [vmem:[#allocation29_spill] sm:$0xff] %v5584_v62 }
 0x784   :  { %2591 = vmatpush2.bf16.msra.mxu0 %v5569_v54  ;;  %2632 = vmatpush2.bf16.msra.mxu1 %v5572_v39  ;;  %v5587_v54 = vld [vmem:[#allocation11 + $0x164] ss:$16 sps:$4 sm:$0xff]   ;;  %v5590_v39 = vld [vmem:[#allocation11 + $0x16c] ss:$16 sps:$4 sm:$0xff]  }
 0x785   :  { %2592 = vmatprep.subr.bf16.mxu0 %v5575_v56  ;;  %2633 = vmatprep.subr.bf16.mxu1 %v5578_v51  ;;  %6556 = vst [vmem:[#allocation30_spill] sm:$0xff] %v5587_v54  ;;  %6557 = vst [vmem:[#allocation31_spill] sm:$0xff] %v5590_v39  ;;  %v5593_v56 = vld [vmem:[#allocation11 + $0x160] ss:$16 sps:$4 sm:$0xff]   ;;  %v5596_v51 = vld [vmem:[#allocation11 + $0x168] ss:$16 sps:$4 sm:$0xff]  }
 0x786   :  { %6558 = vst [vmem:[#allocation32_spill] sm:$0xff] %v5593_v56  ;;  %6559 = vst [vmem:[#allocation33_spill] sm:$0xff] %v5596_v51 }
 0x788   :  { %2593 = vmatpush2.bf16.msra.mxu0 %v5581_v60  ;;  %2634 = vmatpush2.bf16.msra.mxu1 %v5584_v62  ;;  %v5599_v60 = vld [vmem:[#allocation11 + $0x144] ss:$16 sps:$4 sm:$0xff]   ;;  %v5602_v62 = vld [vmem:[#allocation11 + $0x14c] ss:$16 sps:$4 sm:$0xff]  }
 0x789   :  { %2594 = vmatprep.subr.bf16.mxu0 %v5587_v54  ;;  %2635 = vmatprep.subr.bf16.mxu1 %v5590_v39  ;;  %6560 = vst [vmem:[#allocation82_spill] sm:$0xff] %v5599_v60  ;;  %6561 = vst [vmem:[#allocation83_spill] sm:$0xff] %v5602_v62  ;;  %v5605_v54 = vld [vmem:[#allocation11 + $0x140] ss:$16 sps:$4 sm:$0xff]   ;;  %v5608_v39 = vld [vmem:[#allocation11 + $0x148] ss:$16 sps:$4 sm:$0xff]  }
 0x78a   :  { %6562 = vst [vmem:[#allocation84_spill] sm:$0xff] %v5605_v54  ;;  %6563 = vst [vmem:[#allocation85_spill] sm:$0xff] %v5608_v39 }
 0x78c   :  { %2595 = vmatpush2.bf16.msra.mxu0 %v5593_v56  ;;  %2636 = vmatpush2.bf16.msra.mxu1 %v5596_v51  ;;  %v5611_v56 = vld [vmem:[#allocation11 + $0x124] ss:$16 sps:$4 sm:$0xff]   ;;  %v5614_v51 = vld [vmem:[#allocation11 + $0x12c] ss:$16 sps:$4 sm:$0xff]  }
 0x78d   :  { %2596 = vmatprep.subr.bf16.mxu0 %v5599_v60  ;;  %2637 = vmatprep.subr.bf16.mxu1 %v5602_v62  ;;  %6564 = vst [vmem:[#allocation35_spill] sm:$0xff] %v5611_v56  ;;  %6565 = vst [vmem:[#allocation36_spill] sm:$0xff] %v5614_v51  ;;  %v5617_v60 = vld [vmem:[#allocation11 + $0x120] ss:$16 sps:$4 sm:$0xff]   ;;  %v5620_v62 = vld [vmem:[#allocation11 + $0x128] ss:$16 sps:$4 sm:$0xff]  }
 0x78e   :  { %6566 = vst [vmem:[#allocation37_spill] sm:$0xff] %v5617_v60  ;;  %6567 = vst [vmem:[#allocation38_spill] sm:$0xff] %v5620_v62 }
 0x790   :  { %2597 = vmatpush2.bf16.msra.mxu0 %v5605_v54  ;;  %2638 = vmatpush2.bf16.msra.mxu1 %v5608_v39  ;;  %v5623_v54 = vld [vmem:[#allocation11 + $0x104] ss:$16 sps:$4 sm:$0xff]   ;;  %v5626_v39 = vld [vmem:[#allocation11 + $0x10c] ss:$16 sps:$4 sm:$0xff]  }
 0x791   :  { %2598 = vmatprep.subr.bf16.mxu0 %v5611_v56  ;;  %2639 = vmatprep.subr.bf16.mxu1 %v5614_v51  ;;  %6568 = vst [vmem:[#allocation39_spill] sm:$0xff] %v5623_v54  ;;  %6569 = vst [vmem:[#allocation40_spill] sm:$0xff] %v5626_v39  ;;  %v5629_v56 = vld [vmem:[#allocation11 + $0x100] ss:$16 sps:$4 sm:$0xff]   ;;  %v5632_v51 = vld [vmem:[#allocation11 + $0x108] ss:$16 sps:$4 sm:$0xff]  }
 0x792   :  { %6570 = vst [vmem:[#allocation41_spill] sm:$0xff] %v5629_v56  ;;  %6571 = vst [vmem:[#allocation42_spill] sm:$0xff] %v5632_v51 }
 0x794   :  { %2599 = vmatpush2.bf16.msra.mxu0 %v5617_v60  ;;  %2640 = vmatpush2.bf16.msra.mxu1 %v5620_v62 }
 0x795   :  { %2600 = vmatprep.subr.bf16.mxu0 %v5623_v54  ;;  %2641 = vmatprep.subr.bf16.mxu1 %v5626_v39 }
 0x798   :  { %2601 = vmatpush2.bf16.msra.mxu0 %v5629_v56  ;;  %2642 = vmatpush2.bf16.msra.mxu1 %v5632_v51 }
 0x799   :  { %2676 = vmatprep.subr.bf16.mxu0 %v6499_v50  ;;  %2717 = vmatprep.subr.bf16.mxu1 %v5391_v61 }
 0x7fb   :  { %v2360_v62 = vpop.f32.mrf.mxu0  ;;  %v2401_v60 = vpop.f32.mrf.mxu1 }
 0x7fc   :  { %v2361_v54 = vadd.f32 %v2360_v62, %v6500_v52  ;;  %v2402_v0 = vadd.f32 %v2401_v60, %v6503_v34 }
 0x7fd   :  { %v2362_v2 = vpop.f32.mrf.mxu0  ;;  %v2403_v49 = vpop.f32.mrf.mxu1 }
 0x7fe   :  { %v3219_v6 = vmul.f32 -1.442695, %v2361_v54  ;;  %v2363_v39 = vadd.f32 %v2362_v2, %v6501_v46  ;;  %v2404_v50 = vadd.f32 %v2403_v49, %v6502_v11 }
 0x7ff   :  { %v2364_v53 = vpop.f32.mrf.mxu0  ;;  %v2405_v4 = vpop.f32.mrf.mxu1 }
 0x800   :  { %3624 = vpow2.f32 %v3219_v6  ;;  %v3220_v56 = vmul.f32 -1.442695, %v2363_v39  ;;  %v3221_v51 = vmul.f32 -1.442695, %v2404_v50 }
 0x801   :  { %v2365_v7 = vpop.f32.mrf.mxu0  ;;  %v2406_v23 = vpop.f32.mrf.mxu1 }
 0x802   :  { %3626 = vpow2.f32 %v3220_v56 }
 0x803   :  { %3628 = vpow2.f32 %v3221_v51 }
 0x80d   :  { %v3625_v61 = vpop.eup %3624 }
 0x80e   :  { %v2411_v5 = vadd.f32 1.0, %v3625_v61 }
 0x80f   :  { %v3627_v62 = vpop.eup %3626 }
 0x810   :  { %3630 = vrcp.f32 %v2411_v5  ;;  %v2417_v54 = vadd.f32 1.0, %v3627_v62  ;;  %v3629_v6 = vpop.eup %3628 }
 0x811   :  { %3632 = vtanh.f32 %v2402_v0  ;;  %v2424_v11 = vadd.f32 1.0, %v3629_v6 }
 0x812   :  { %3634 = vrcp.f32 %v2417_v54 }
 0x813   :  { %3636 = vrcp.f32 %v2424_v11 }
 0x81b   :  { %v2466_v53 = vpop.f32.mrf.mxu0  ;;  %v2507_v4 = vpop.f32.mrf.mxu1 }
 0x81d   :  { %v3631_v2 = vpop.eup %3630  ;;  %v2468_v7 = vpop.f32.mrf.mxu0 }
 0x81e   :  { %v2509_v23 = vpop.f32.mrf.mxu1  ;;  %v3633_v39 = vpop.eup %3632  ;;  %v2518_v56 = vcombine.low %v2466_v53, %v2468_v7  ;;  %v6573_v53 = vld [vmem:[#allocation81_spill] sm:$0xff] }
 0x81f   :  { %v2519_v49 = vcombine.low %v2507_v4, %v2509_v23  ;;  %v3635_v50 = vpop.eup %3634  ;;  %v2470_v46 = vpop.f32.mrf.mxu0  ;;  %v2428_v61 = vmul.f32 %v3633_v39, %v3631_v2  ;;  %v6574_v4 = vcombine.low %v6572_v10, %v6573_v53 }
 0x820   :  { %v2511_v60 = vpop.f32.mrf.mxu1  ;;  %v2427_v51 = vmul.f32 %v3635_v50, %v5401_v47  ;;  %v2526_v5 = vrot.slane %v2518_v56, %v4500_v37  ;;  %v3637_v23 = vpop.eup %3636 }
 0x821   :  { %v2533_v0 = vrot.slane %v2519_v49, %v4500_v37  ;;  %v2471_v62 = vpop.f32.mrf.mxu0 }
 0x822   :  { %v2512_v54 = vpop.f32.mrf.mxu1  ;;  %v5644_v52 = vadd.f32 %v2428_v61, %v2427_v51 }
 0x823   :  { %v2534_v34 = vcombine.low %v2526_v5, %v2533_v0 }
 0x824   :  { %3638 = vtanh.f32 %v5644_v52 }
 0x825   :  { %v2536_v7 = vadd.f32 %v2534_v34, %v6574_v4 }
 0x827   :  { %v3222_v46 = vmul.f32 -1.442695, %v2536_v7  ;;  %v2544_v6 = vrot.slane %v2536_v7, 2  ;;  %v2555_v2 = vrot.slane %v2536_v7, 6  ;;  %v2552_v61 = vrot.slane %v2536_v7, 4 }
 0x829   :  { %3640 = vpow2.f32 %v3222_v46  ;;  %v3223_v47 = vmul.f32 -1.442695, %v2544_v6  ;;  %v3224_v49 = vmul.f32 -1.442695, %v2555_v2 }
 0x82b   :  { %3642 = vpow2.f32 %v3223_v47 }
 0x82c   :  { %3644 = vpow2.f32 %v3224_v49  ;;  %v6616_v49 = vld [vmem:[#allocation31_spill] sm:$0xff] }
 0x831   :  { %v3639_v39 = vpop.eup %3638 }
 0x832   :  { %v2431_v56 = vmul.f32 %v3639_v39, %v3637_v23 }
 0x834   :  { %v2569_v50 = vpack.c.bf16 %v2431_v56, %v2431_v56  ;;  %v6615_v56 = vld [vmem:[#allocation30_spill] sm:$0xff] }
 0x836   :  { %v3641_v60 = vpop.eup %3640  ;;  %2602 = vmatprep.mubr.bf16.mxu0 %v2569_v50  ;;  %2643 = vmatprep.mubr.bf16.mxu1 %v2569_v50  ;;  %v6617_v50 = vld [vmem:[#allocation32_spill] sm:$0xff] }
 0x837   :  { %v2540_v11 = vadd.f32 1.0, %v3641_v60  ;;  %v6618_v60 = vld [vmem:[#allocation33_spill] sm:$0xff] }
 0x838   :  { %v3643_v51 = vpop.eup %3642 }
 0x839   :  { %3646 = vrcp.f32 %v2540_v11  ;;  %v2549_v34 = vadd.f32 1.0, %v3643_v51  ;;  %v3645_v5 = vpop.eup %3644  ;;  %v6620_v11 = vld [vmem:[#allocation83_spill] sm:$0xff]  ;;  %v6621_v51 = vld [vmem:[#allocation84_spill] sm:$0xff] }
 0x83a   :  { %3648 = vtanh.f32 %v2552_v61  ;;  %v2560_v4 = vadd.f32 1.0, %v3645_v5  ;;  %v6619_v61 = vld [vmem:[#allocation82_spill] sm:$0xff]  ;;  %v6623_v5 = vld [vmem:[#allocation35_spill] sm:$0xff] }
 0x83b   :  { %3650 = vrcp.f32 %v2549_v34  ;;  %v6622_v34 = vld [vmem:[#allocation85_spill] sm:$0xff] }
 0x83c   :  { %3652 = vrcp.f32 %v2560_v4  ;;  %v6627_v4 = vld [vmem:[#allocation39_spill] sm:$0xff] }
 0x846   :  { %v3647_v0 = vpop.eup %3646 }
 0x847   :  { %v3649_v62 = vpop.eup %3648 }
 0x848   :  { %v3651_v54 = vpop.eup %3650  ;;  %v2564_v6 = vmul.f32 %v3649_v62, %v3647_v0  ;;  %v6624_v0 = vld [vmem:[#allocation36_spill] sm:$0xff]  ;;  %v6625_v62 = vld [vmem:[#allocation37_spill] sm:$0xff] }
 0x849   :  { %v2563_v46 = vmul.f32 %v3651_v54, %v5408_v55  ;;  %v3653_v7 = vpop.eup %3652  ;;  %v6595_v55 = vld [vmem:[#allocation78_spill] sm:$0xff] }
 0x84a   :  { %v6626_v54 = vld [vmem:[#allocation38_spill] sm:$0xff] }
 0x84b   :  { %v5651_v47 = vadd.f32 %v2564_v6, %v2563_v46  ;;  %v6628_v46 = vld [vmem:[#allocation40_spill] sm:$0xff]  ;;  %v6629_v6 = vld [vmem:[#allocation41_spill] sm:$0xff] }
 0x84d   :  { %3654 = vtanh.f32 %v5651_v47 }
 0x85a   :  { %v3655_v2 = vpop.eup %3654 }
 0x85b   :  { %v2567_v23 = vmul.f32 %v3655_v2, %v3653_v7  ;;  %v6630_v7 = vld [vmem:[#allocation42_spill] sm:$0xff] }
 0x85d   :  { %v2568_v39 = vpack.c.bf16 %v2567_v23, %v2567_v23 }
 0x85f   :  { %2603 = vmatmul.mubr.bf16.vlgmr.msra.gmra.mxu0 %v2568_v39  ;;  %2644 = vmatmul.mubr.bf16.vlgmr.msra.gmra.mxu1 %v2568_v39 }
 0x860   :  { %2677 = vmatpush1.bf16.msra.mxu0 %v5232_v15  ;;  %2718 = vmatpush1.bf16.msra.mxu1 %v5235_v20  ;;  %v6576_v15 = vld [vmem:[#allocation48_spill] sm:$0xff] }
 0x861   :  { %2678 = vmatprep.subr.bf16.mxu0 %v5238_v40  ;;  %2719 = vmatprep.subr.bf16.mxu1 %v5241_v16  ;;  %v6577_v20 = vld [vmem:[#allocation20_spill] sm:$0xff]  ;;  %v6578_v40 = vld [vmem:[#allocation49_spill] sm:$0xff]  ;;  %v6579_v16 = vld [vmem:[#allocation50_spill] sm:$0xff] }
 0x862   :  { %2708 = vmatprep.mubr.bf16.mxu0 %v6219_v57  ;;  %2749 = vmatprep.mubr.bf16.mxu1 %v6219_v57  ;;  %v6575_v57 = vld [vmem:[#allocation47_spill] sm:$0xff] }
 0x864   :  { %2679 = vmatpush1.bf16.msra.mxu0 %v5246_v36  ;;  %2720 = vmatpush1.bf16.msra.mxu1 %v5249_v29  ;;  %v6580_v36 = vld [vmem:[#allocation51_spill] sm:$0xff]  ;;  %v6581_v29 = vld [vmem:[#allocation52_spill] sm:$0xff] }
 0x865   :  { %2680 = vmatprep.subr.bf16.mxu0 %v5252_v22  ;;  %2721 = vmatprep.subr.bf16.mxu1 %v5255_v32  ;;  %v6582_v22 = vld [vmem:[#allocation53_spill] sm:$0xff]  ;;  %v6583_v32 = vld [vmem:[#allocation54_spill] sm:$0xff] }
 0x868   :  { %2681 = vmatpush1.bf16.msra.mxu0 %v5258_v31  ;;  %2722 = vmatpush1.bf16.msra.mxu1 %v5261_v18  ;;  %v6584_v31 = vld [vmem:[#allocation55_spill] sm:$0xff]  ;;  %v6585_v18 = vld [vmem:[#allocation56_spill] sm:$0xff] }
 0x869   :  { %2682 = vmatprep.subr.bf16.mxu0 %v5264_v17  ;;  %2723 = vmatprep.subr.bf16.mxu1 %v5267_v19  ;;  %v6586_v17 = vld [vmem:[#allocation57_spill] sm:$0xff]  ;;  %v6587_v19 = vld [vmem:[#allocation58_spill] sm:$0xff] }
 0x86c   :  { %2683 = vmatpush1.bf16.msra.mxu0 %v5270_v21  ;;  %2724 = vmatpush1.bf16.msra.mxu1 %v6505_v30  ;;  %v6588_v21 = vld [vmem:[#allocation59_spill] sm:$0xff]  ;;  %v6596_v30 = vld [vmem:[#allocation80_spill] sm:$0xff] }
 0x86d   :  { %2684 = vmatprep.subr.bf16.mxu0 %v6506_v1  ;;  %2725 = vmatprep.subr.bf16.mxu1 %v6507_v59  ;;  %v6597_v1 = vld [vmem:[#allocation65_spill] sm:$0xff]  ;;  %v6598_v59 = vld [vmem:[#allocation66_spill] sm:$0xff] }
 0x870   :  { %2685 = vmatpush1.bf16.msra.mxu0 %v6508_v28  ;;  %2726 = vmatpush1.bf16.msra.mxu1 %v6509_v35  ;;  %v6599_v28 = vld [vmem:[#allocation67_spill] sm:$0xff]  ;;  %v6600_v35 = vld [vmem:[#allocation68_spill] sm:$0xff] }
 0x871   :  { %2686 = vmatprep.subr.bf16.mxu0 %v6510_v58  ;;  %2727 = vmatprep.subr.bf16.mxu1 %v6511_v43  ;;  %v6601_v58 = vld [vmem:[#allocation69_spill] sm:$0xff]  ;;  %v6602_v43 = vld [vmem:[#allocation70_spill] sm:$0xff] }
 0x874   :  { %2687 = vmatpush1.bf16.msra.mxu0 %v6512_v44  ;;  %2728 = vmatpush1.bf16.msra.mxu1 %v6513_v38  ;;  %v6603_v44 = vld [vmem:[#allocation71_spill] sm:$0xff]  ;;  %v6604_v38 = vld [vmem:[#allocation72_spill] sm:$0xff] }
 0x875   :  { %2688 = vmatprep.subr.bf16.mxu0 %v6514_v33  ;;  %2729 = vmatprep.subr.bf16.mxu1 %v6515_v48  ;;  %v6605_v33 = vld [vmem:[#allocation73_spill] sm:$0xff]  ;;  %v6606_v48 = vld [vmem:[#allocation74_spill] sm:$0xff] }
 0x878   :  { %2689 = vmatpush1.bf16.msra.mxu0 %v5306_v26  ;;  %2730 = vmatpush1.bf16.msra.mxu1 %v5309_v24  ;;  %v6589_v24 = vld [vmem:[#allocation60_spill] sm:$0xff]  ;;  %v6594_v26 = vld [vmem:[#allocation34_spill] sm:$0xff] }
 0x879   :  { %2690 = vmatprep.subr.bf16.mxu0 %v5312_v42  ;;  %2731 = vmatprep.subr.bf16.mxu1 %v5315_v41  ;;  %v6590_v42 = vld [vmem:[#allocation61_spill] sm:$0xff]  ;;  %v6591_v41 = vld [vmem:[#allocation62_spill] sm:$0xff] }
 0x87c   :  { %2691 = vmatpush1.bf16.msra.mxu0 %v5318_v27  ;;  %2732 = vmatpush1.bf16.msra.mxu1 %v5321_v45  ;;  %v6592_v27 = vld [vmem:[#allocation63_spill] sm:$0xff]  ;;  %v6593_v45 = vld [vmem:[#allocation64_spill] sm:$0xff] }
 0x87d   :  { %2814 = vmatprep.subr.bf16.mxu0 %v5443_v8  ;;  %2855 = vmatprep.subr.bf16.mxu1 %v5446_v25  ;;  %v6607_v8 = vld [vmem:[#allocation75_spill] sm:$0xff]  ;;  %v6608_v25 = vld [vmem:[#allocation21_spill] sm:$0xff] }
 0x87f   :  { %2709 = vmatmul.mubr.bf16.vlgmr.msra.gmra.mxu0 %v2568_v39  ;;  %2750 = vmatmul.mubr.bf16.vlgmr.msra.gmra.mxu1 %v2568_v39  ;;  %v6631_v39 = vld [vmem:[#allocation22_spill] sm:$0xff] }
 0x880   :  { %2815 = vmatpush1.bf16.msra.mxu0 %v5449_v9  ;;  %2856 = vmatpush1.bf16.msra.mxu1 %v5452_v12  ;;  %v6609_v9 = vld [vmem:[#allocation76_spill] sm:$0xff]  ;;  %v6610_v12 = vld [vmem:[#allocation77_spill] sm:$0xff] }
 0x881   :  { %2816 = vmatprep.subr.bf16.mxu0 %v5455_v13  ;;  %2857 = vmatprep.subr.bf16.mxu1 %v5458_v14  ;;  %v6611_v13 = vld [vmem:[#allocation26_spill] sm:$0xff]  ;;  %v6612_v14 = vld [vmem:[#allocation27_spill] sm:$0xff] }
 0x884   :  { %2817 = vmatpush1.bf16.msra.mxu0 %v5461_v63  ;;  %2858 = vmatpush1.bf16.msra.mxu1 %v5464_v3  ;;  %v6613_v63 = vld [vmem:[#allocation28_spill] sm:$0xff]  ;;  %v6614_v3 = vld [vmem:[#allocation29_spill] sm:$0xff] }
 0x885   :  { %2818 = vmatprep.subr.bf16.mxu0 %v6575_v57  ;;  %2859 = vmatprep.subr.bf16.mxu1 %v6576_v15 }
 0x888   :  { %2819 = vmatpush1.bf16.msra.mxu0 %v6577_v20  ;;  %2860 = vmatpush1.bf16.msra.mxu1 %v6578_v40 }
 0x889   :  { %2820 = vmatprep.subr.bf16.mxu0 %v6579_v16  ;;  %2861 = vmatprep.subr.bf16.mxu1 %v6580_v36  ;;  %v6632_v16 = vld [vmem:[#allocation23_spill] sm:$0xff] }
 0x88c   :  { %2821 = vmatpush1.bf16.msra.mxu0 %v6581_v29  ;;  %2862 = vmatpush1.bf16.msra.mxu1 %v6582_v22 }
 0x88d   :  { %2822 = vmatprep.subr.bf16.mxu0 %v6583_v32  ;;  %2863 = vmatprep.subr.bf16.mxu1 %v6584_v31 }
 0x890   :  { %2823 = vmatpush1.bf16.msra.mxu0 %v6585_v18  ;;  %2864 = vmatpush1.bf16.msra.mxu1 %v6586_v17  ;;  %v6633_v17 = vld [vmem:[#allocation24_spill] sm:$0xff] }
 0x891   :  { %2824 = vmatprep.subr.bf16.mxu0 %v6587_v19  ;;  %2865 = vmatprep.subr.bf16.mxu1 %v6588_v21 }
 0x894   :  { %2825 = vmatpush1.bf16.msra.mxu0 %v6589_v24  ;;  %2866 = vmatpush1.bf16.msra.mxu1 %v6590_v42  ;;  %v6634_v42 = vld [vmem:[#allocation25_spill] sm:$0xff] }
 0x895   :  { %2826 = vmatprep.subr.bf16.mxu0 %v6591_v41  ;;  %2867 = vmatprep.subr.bf16.mxu1 %v6592_v27 }
 0x898   :  { %2827 = vmatpush1.bf16.msra.mxu0 %v6593_v45  ;;  %2868 = vmatpush1.bf16.msra.mxu1 %v6594_v26 }
 0x899   :  { %2828 = vmatprep.subr.bf16.mxu0 %v6595_v55  ;;  %2869 = vmatprep.subr.bf16.mxu1 %v6596_v30 }
 0x89c   :  { %2829 = vmatpush1.bf16.msra.mxu0 %v6597_v1  ;;  %2870 = vmatpush1.bf16.msra.mxu1 %v6598_v59 }
 0x89d   :  { %2830 = vmatprep.subr.bf16.mxu0 %v6599_v28  ;;  %2871 = vmatprep.subr.bf16.mxu1 %v6600_v35 }
 0x8a0   :  { %2831 = vmatpush2.bf16.msra.mxu0 %v6601_v58  ;;  %2872 = vmatpush2.bf16.msra.mxu1 %v6602_v43 }
 0x8a1   :  { %2832 = vmatprep.subr.bf16.mxu0 %v6603_v44  ;;  %2873 = vmatprep.subr.bf16.mxu1 %v6604_v38 }
 0x8a4   :  { %2833 = vmatpush2.bf16.msra.mxu0 %v6605_v33  ;;  %2874 = vmatpush2.bf16.msra.mxu1 %v6606_v48 }
 0x8a5   :  { %2834 = vmatprep.subr.bf16.mxu0 %v6607_v8  ;;  %2875 = vmatprep.subr.bf16.mxu1 %v6608_v25 }
 0x8a8   :  { %2835 = vmatpush2.bf16.msra.mxu0 %v6609_v9  ;;  %2876 = vmatpush2.bf16.msra.mxu1 %v6610_v12 }
 0x8a9   :  { %2836 = vmatprep.subr.bf16.mxu0 %v6611_v13  ;;  %2877 = vmatprep.subr.bf16.mxu1 %v6612_v14 }
 0x8ac   :  { %2837 = vmatpush2.bf16.msra.mxu0 %v6613_v63  ;;  %2878 = vmatpush2.bf16.msra.mxu1 %v6614_v3 }
 0x8ad   :  { %2838 = vmatprep.subr.bf16.mxu0 %v6615_v56  ;;  %2879 = vmatprep.subr.bf16.mxu1 %v6616_v49  ;;  %v6635_v49 = vcombine.high %v6572_v10, %v6573_v53 }
 0x8b0   :  { %2839 = vmatpush2.bf16.msra.mxu0 %v6617_v50  ;;  %2880 = vmatpush2.bf16.msra.mxu1 %v6618_v60 }
 0x8b1   :  { %2840 = vmatprep.subr.bf16.mxu0 %v6619_v61  ;;  %2881 = vmatprep.subr.bf16.mxu1 %v6620_v11 }
 0x8b4   :  { %2841 = vmatpush2.bf16.msra.mxu0 %v6621_v51  ;;  %2882 = vmatpush2.bf16.msra.mxu1 %v6622_v34 }
 0x8b5   :  { %2842 = vmatprep.subr.bf16.mxu0 %v6623_v5  ;;  %2883 = vmatprep.subr.bf16.mxu1 %v6624_v0 }
 0x8b8   :  { %2843 = vmatpush2.bf16.msra.mxu0 %v6625_v62  ;;  %2884 = vmatpush2.bf16.msra.mxu1 %v6626_v54 }
 0x8b9   :  { %2844 = vmatprep.subr.bf16.mxu0 %v6627_v4  ;;  %2885 = vmatprep.subr.bf16.mxu1 %v6628_v46 }
 0x8bc   :  { %2845 = vmatpush2.bf16.msra.mxu0 %v6629_v6  ;;  %2886 = vmatpush2.bf16.msra.mxu1 %v6630_v7 }
 0x91f   :  { %v2604_v2 = vpop.f32.mrf.mxu0  ;;  %v2645_v23 = vpop.f32.mrf.mxu1 }
 0x920   :  { %v2605_v57 = vadd.f32 %v2604_v2, %v6631_v39  ;;  %v2646_v41 = vadd.f32 %v2645_v23, %v6634_v42 }
 0x921   :  { %v2606_v15 = vpop.f32.mrf.mxu0  ;;  %v2647_v20 = vpop.f32.mrf.mxu1 }
 0x922   :  { %v3225_v40 = vmul.f32 -1.442695, %v2605_v57  ;;  %v2607_v36 = vadd.f32 %v2606_v15, %v6632_v16  ;;  %v2648_v19 = vadd.f32 %v2647_v20, %v6633_v17 }
 0x923   :  { %v2608_v29 = vpop.f32.mrf.mxu0  ;;  %v2649_v22 = vpop.f32.mrf.mxu1 }
 0x924   :  { %3656 = vpow2.f32 %v3225_v40  ;;  %v3226_v32 = vmul.f32 -1.442695, %v2607_v36  ;;  %v3227_v21 = vmul.f32 -1.442695, %v2648_v19  ;;  %v3442_v19 = vld [vmem:[#allocation13 + $0x28] sm:$0xff]  }
 0x925   :  { %v2609_v31 = vpop.f32.mrf.mxu0  ;;  %v2650_v18 = vpop.f32.mrf.mxu1 }
 0x926   :  { %3658 = vpow2.f32 %v3226_v32  ;;  %v3440_v31 = vld [vmem:[#allocation13 + $0x38] sm:$0xff]   ;;  %v4079_v18 = vmov 0.0  }
 0x927   :  { %3660 = vpow2.f32 %v3227_v21  ;;  %3253 = vmatprep.subr.bf16.mxu0 %v4079_v18  ;;  %v3443_v21 = vld [vmem:[#allocation13 + $0x20] sm:$0xff]  }
 0x931   :  { %v3657_v24 = vpop.eup %3656 }
 0x932   :  { %v2655_v27 = vadd.f32 1.0, %v3657_v24  ;;  %v3444_v24 = vld [vmem:[#allocation13 + $0x18] sm:$0xff]  }
 0x933   :  { %v3659_v45 = vpop.eup %3658 }
 0x934   :  { %3662 = vrcp.f32 %v2655_v27  ;;  %v2661_v26 = vadd.f32 1.0, %v3659_v45  ;;  %v3661_v1 = vpop.eup %3660  ;;  %v3446_v27 = vld [vmem:[#allocation13 + $0x8] sm:$0xff]   ;;  %v3447_v45 = vld [vmem:[#allocation13] sm:$0xff]  }
 0x935   :  { %3664 = vtanh.f32 %v2646_v41  ;;  %v2668_v33 = vadd.f32 1.0, %v3661_v1  ;;  %v3445_v41 = vld [vmem:[#allocation13 + $0x10] sm:$0xff]  }
 0x936   :  { %3666 = vrcp.f32 %v2661_v26 }
 0x937   :  { %3668 = vrcp.f32 %v2668_v33 }
 0x93f   :  { %v2710_v55 = vpop.f32.mrf.mxu0  ;;  %v2751_v30 = vpop.f32.mrf.mxu1 }
 0x941   :  { %v3663_v59 = vpop.eup %3662  ;;  %v2712_v28 = vpop.f32.mrf.mxu0 }
 0x942   :  { %v2753_v35 = vpop.f32.mrf.mxu1  ;;  %v3665_v58 = vpop.eup %3664  ;;  %v2762_v43 = vcombine.low %v2710_v55, %v2712_v28 }
 0x943   :  { %v2763_v44 = vcombine.low %v2751_v30, %v2753_v35  ;;  %v3667_v38 = vpop.eup %3666  ;;  %v2714_v48 = vpop.f32.mrf.mxu0  ;;  %v2672_v25 = vmul.f32 %v3665_v58, %v3663_v59 }
 0x944   :  { %v2755_v8 = vpop.f32.mrf.mxu1  ;;  %v2671_v9 = vmul.f32 %v3667_v38, %v5644_v52  ;;  %v2770_v12 = vrot.slane %v2762_v43, %v4500_v37  ;;  %v3669_v51 = vpop.eup %3668 }
 0x945   :  { %v2777_v13 = vrot.slane %v2763_v44, %v4500_v37  ;;  %v2715_v14 = vpop.f32.mrf.mxu0 }
 0x946   :  { %v2756_v63 = vpop.f32.mrf.mxu1  ;;  %v5757_v56 = vadd.f32 %v2672_v25, %v2671_v9 }
 0x947   :  { %v2778_v3 = vcombine.low %v2770_v12, %v2777_v13 }
 0x948   :  { %3670 = vtanh.f32 %v5757_v56 }
 0x949   :  { %v2780_v50 = vadd.f32 %v2778_v3, %v6635_v49 }
 0x94b   :  { %v3228_v60 = vmul.f32 -1.442695, %v2780_v50  ;;  %v2788_v61 = vrot.slane %v2780_v50, 2  ;;  %v2799_v11 = vrot.slane %v2780_v50, 6  ;;  %v2796_v4 = vrot.slane %v2780_v50, 4 }
 0x94d   :  { %3672 = vpow2.f32 %v3228_v60  ;;  %v3229_v52 = vmul.f32 -1.442695, %v2788_v61  ;;  %v3230_v0 = vmul.f32 -1.442695, %v2799_v11 }
 0x94f   :  { %3674 = vpow2.f32 %v3229_v52 }
 0x950   :  { %3676 = vpow2.f32 %v3230_v0 }
 0x955   :  { %v3671_v34 = vpop.eup %3670 }
 0x956   :  { %v2675_v5 = vmul.f32 %v3671_v34, %v3669_v51  ;;  %v3234_v51 = vld [vmem:[%s5797_s11] ss:$0 sm:$0xff] }
 0x958   :  { %v2813_v62 = vpack.c.bf16 %v2675_v5, %v2675_v5 }
 0x95a   :  { %v3673_v54 = vpop.eup %3672  ;;  %2846 = vmatprep.mubr.bf16.mxu0 %v2813_v62  ;;  %2887 = vmatprep.mubr.bf16.mxu1 %v2813_v62 }
 0x95b   :  { %v2784_v46 = vadd.f32 1.0, %v3673_v54 }
 0x95c   :  { %v3675_v10 = vpop.eup %3674 }
 0x95d   :  { %3678 = vrcp.f32 %v2784_v46  ;;  %v2793_v53 = vadd.f32 1.0, %v3675_v10  ;;  %v3677_v6 = vpop.eup %3676 }
 0x95e   :  { %3680 = vtanh.f32 %v2796_v4  ;;  %v2804_v57 = vadd.f32 1.0, %v3677_v6 }
 0x95f   :  { %3682 = vrcp.f32 %v2793_v53 }
 0x960   :  { %3684 = vrcp.f32 %v2804_v57 }
 0x96a   :  { %v3679_v7 = vpop.eup %3678 }
 0x96b   :  { %v3681_v2 = vpop.eup %3680 }
 0x96c   :  { %v3683_v23 = vpop.eup %3682  ;;  %v2808_v20 = vmul.f32 %v3681_v2, %v3679_v7 }
 0x96d   :  { %v2807_v15 = vmul.f32 %v3683_v23, %v5651_v47  ;;  %v3685_v36 = vpop.eup %3684  ;;  %v3441_v47 = vld [vmem:[#allocation13 + $0x30] sm:$0xff]  }
 0x96f   :  { %v5764_v40 = vadd.f32 %v2808_v20, %v2807_v15 }
 0x971   :  { %3686 = vtanh.f32 %v5764_v40 }
 0x97e   :  { %v3687_v29 = vpop.eup %3686 }
 0x97f   :  { %v5767_v22 = vmul.f32 %v3687_v29, %v3685_v36 }
 0x981   :  { %v2812_v32 = vpack.c.bf16 %v5767_v22, %v5767_v22 }
 0x983   :  { %2847 = vmatmul.mubr.bf16.vlgmr.msra.gmra.mxu0 %v2812_v32  ;;  %2888 = vmatmul.mubr.bf16.vlgmr.msra.gmra.mxu1 %v2812_v32 }
 0x984   :  { %3254 = vmatpush3.bf16.msra.mxu0 %v3440_v31  ;;  %3269 = vmatprep.mubr.msk.bf16.mxu0 %vm4080_vm1, %v4079_v18 }
 0x985   :  { %3255 = vmatprep.subr.bf16.mxu0 %v4079_v18 }
 0x988   :  { %3256 = vmatpush3.bf16.msra.mxu0 %v3441_v47 }
 0x989   :  { %3257 = vmatprep.subr.bf16.mxu0 %v4079_v18 }
 0x98c   :  { %3258 = vmatpush3.bf16.msra.mxu0 %v3442_v19 }
 0x98d   :  { %3259 = vmatprep.subr.bf16.mxu0 %v4079_v18 }
 0x990   :  { %3260 = vmatpush3.bf16.msra.mxu0 %v3443_v21 }
 0x991   :  { %3261 = vmatprep.subr.bf16.mxu0 %v4079_v18 }
 0x994   :  { %3262 = vmatpush3.bf16.msra.mxu0 %v3444_v24 }
 0x995   :  { %3263 = vmatprep.subr.bf16.mxu0 %v4079_v18 }
 0x998   :  { %3264 = vmatpush3.bf16.msra.mxu0 %v3445_v41 }
 0x999   :  { %3265 = vmatprep.subr.bf16.mxu0 %v4079_v18 }
 0x99c   :  { %3266 = vmatpush3.bf16.msra.mxu0 %v3446_v27 }
 0x99d   :  { %3267 = vmatprep.subr.bf16.mxu0 %v4079_v18 }
 0x9a0   :  { %3268 = vmatpush3.bf16.msra.mxu0 %v3447_v45 }
 0xa43   :  { %v2848_v26 = vpop.f32.mrf.mxu0  ;;  %v2889_v55 = vpop.f32.mrf.mxu1 }
 0xa44   :  { %v2849_v30 = vadd.f32 %v2848_v26, %v6631_v39  ;;  %v2890_v9 = vadd.f32 %v2889_v55, %v6634_v42 }
 0xa45   :  { %v2850_v1 = vpop.f32.mrf.mxu0  ;;  %v2891_v59 = vpop.f32.mrf.mxu1 }
 0xa46   :  { %v3231_v28 = vmul.f32 -1.442695, %v2849_v30  ;;  %v2851_v35 = vadd.f32 %v2850_v1, %v6632_v16  ;;  %v2892_v48 = vadd.f32 %v2891_v59, %v6633_v17 }
 0xa47   :  { %v2852_v58 = vpop.f32.mrf.mxu0  ;;  %v2893_v43 = vpop.f32.mrf.mxu1 }
 0xa48   :  { %3688 = vpow2.f32 %v3231_v28  ;;  %v3232_v44 = vmul.f32 -1.442695, %v2851_v35  ;;  %v3233_v8 = vmul.f32 -1.442695, %v2892_v48 }
 0xa49   :  { %v2853_v38 = vpop.f32.mrf.mxu0  ;;  %v2894_v33 = vpop.f32.mrf.mxu1 }
 0xa4a   :  { %3690 = vpow2.f32 %v3232_v44 }
 0xa4b   :  { %3692 = vpow2.f32 %v3233_v8 }
 0xa55   :  { %v3689_v25 = vpop.eup %3688 }
 0xa56   :  { %v2899_v12 = vadd.f32 1.0, %v3689_v25 }
 0xa57   :  { %v3691_v39 = vpop.eup %3690 }
 0xa58   :  { %3694 = vrcp.f32 %v2899_v12  ;;  %v2905_v13 = vadd.f32 1.0, %v3691_v39  ;;  %v3693_v16 = vpop.eup %3692 }
 0xa59   :  { %3696 = vtanh.f32 %v2890_v9  ;;  %v2912_v49 = vadd.f32 1.0, %v3693_v16 }
 0xa5a   :  { %3698 = vrcp.f32 %v2905_v13 }
 0xa5b   :  { %3700 = vrcp.f32 %v2912_v49 }
 0xa65   :  { %v3695_v14 = vpop.eup %3694 }
 0xa66   :  { %v3697_v63 = vpop.eup %3696 }
 0xa67   :  { %v3699_v3 = vpop.eup %3698  ;;  %v2916_v50 = vmul.f32 %v3697_v63, %v3695_v14 }
 0xa68   :  { %v2915_v60 = vmul.f32 %v3699_v3, %v5757_v56  ;;  %v3701_v42 = vpop.eup %3700 }
 0xa6a   :  { %v2917_v17 = vadd.f32 %v2916_v50, %v2915_v60 }
 0xa6c   :  { %3243 = vst.sshfl [vmem:[#allocation14 + $0x8] sm:$0x3 pattern:$0x76325410] %v2917_v17  ;;  %3702 = vtanh.f32 %v2917_v17 }
 0xa79   :  { %v3703_v61 = vpop.eup %3702 }
 0xa7a   :  { %v2919_v52 = vmul.f32 %v3703_v61, %v3701_v42 }
 0xa7c   :  { %v2920_v11 = vpack.c.bf16 %v2919_v52, %v2919_v52  ;;  %v3038_v0 = vcombine.low %v2919_v52, %v5764_v40 }
 0xa7e   :  { %3270 = vmatmul.mubr.bf16.vlgmr.msra.gmra.mxu0 %v2920_v11  ;;  %v3052_v46 = vrot.slane %v3038_v0, %v4500_v37 }
 0xb3e   :  { %v3026_v34 = vpop.f32.mrf.mxu0 }
 0xb3f   :  { %v3027_v5 = vadd.f32 %v3234_v51, %v3026_v34 }
 0xb40   :  { %v3271_v62 = vpop.f32.mrf.mxu0 }
 0xb41   :  { %v3037_v56 = vcombine.low %v3027_v5, %v5767_v22 }
 0xb42   :  { %v3029_v54 = vpop.f32.mrf.mxu0 }
 0xb43   :  { %v3045_v4 = vrot.slane %v3037_v56, %v4500_v37 }
 0xb44   :  { %v3272_v10 = vpop.f32.mrf.mxu0 }
 0xb45   :  { %v3053_v53 = vcombine.low %v3045_v4, %v3052_v46 }
 0xb47   :  { %3063 = vst [vmem:[#allocation14] sm:$0xff] %v3053_v53 }
 0xb48   :  { %4047 = shalt.err (!%p4044_p11)
}
 0xb49   :  { %3074 = dma.vmem_to_hbm [thread:$0]  %s3072_s22, 160, %s5798_s12, [#allocation4]  }
 0xb4a   :  { %4064 = dma.done.wait [#allocation4], 160  }
 0xb4b   :  { %4065 = vsyncadd [#allocation4], 4294967136 }
 0xb4c   :  { %3078 = vsyncpa [#allocation3], 1 }
 0xb4d   :  { %3079 = vsyncpa [#allocation6], 1 }
 0xb4e   :  { %3080 = vsyncpa [#allocation9], 1 }
 0xb4f   :  { %3081 = vsyncpa [#allocation12], 1 }
 0xb50   :  { %3082 = vsyncpa [#allocation4], 1 }

</bundles_post_ra>
